<compile_context>
chip_gen: v5e
topology: v5e:2x2
jax: 0.10.0
libtpu: 0.0.40
codegen_flags: <defaults>
</compile_context>

<pallas_src>
import functools

import jax
import jax.numpy as jnp
from jax.experimental import pallas as pl
from jax.experimental.pallas import tpu as pltpu


# ----------------------------------------------------------------------------
# Pallas kernels
# ----------------------------------------------------------------------------
def _bidir_lstm_seq_kernel(x_ref, wih_ref, whh_f_ref, whh_b_ref, b_ref, out_ref,
                           gx_sc, hseq_f_sc, hseq_b_sc, *, hidden, unroll):
    """Bidirectional LSTM layer over the full sequence; BOTH directions are
    interleaved in one time loop (two independent latency chains in flight).

    x_ref:     (T, B, Din)  bf16
    wih_ref:   (Din, 8H)    bf16  [fwd i,f,g,o | bwd i,f,g,o], g cols pre-scaled x2
    whh_*_ref: (H, 4H)      bf16  per-direction recurrent weights, g cols x2
    b_ref:     (1, 8H)      f32   folded b_ih + b_hh, g slices x2
    out_ref:   (T, B, 2H)   bf16  [:, :, :H]=fwd, [:, :, H:]=bwd (time-aligned)
    gx_sc:     (T, B, 8H)   f32   precomputed input projection (both directions)
    hseq_*_sc: (T, B, H)    bf16  per-direction per-step hidden states
    """
    T, B, Din = x_ref.shape
    H = hidden
    G = 4 * H

    # Whole-sequence input projection for BOTH directions as one matmul with
    # N = 8H = 256 (full MXU width on v6e/v7x); bias folded in.
    # TODO(synk): for long T, stream gx over time chunks (or keep gx in bf16)
    # to respect the 64 MiB/TC VMEM budget on v7x.
    x_flat = x_ref[...].reshape(T * B, Din)
    gx = jnp.dot(x_flat, wih_ref[...], preferred_element_type=jnp.float32)
    gx_sc[...] = (gx + b_ref[...]).reshape(T, B, 8 * H)

    whh_f = whh_f_ref[...]        # hoisted loop-invariant loads (bf16)
    whh_b = whh_b_ref[...]

    def step(t, carry):
        hf, cf, hb, cb = carry
        tb = T - 1 - t
        gx_f = gx_sc[t]           # (B, 8H); forward gates live in [:, :4H]
        gx_b = gx_sc[tb]          # backward gates live in [:, 4H:]
        gates_f = gx_f[:, :G] + jnp.dot(hf, whh_f,
                                        preferred_element_type=jnp.float32)
        gates_b = gx_b[:, G:] + jnp.dot(hb, whh_b,
                                        preferred_element_type=jnp.float32)
        # Single sigmoid pass per direction; tanh(x) = 2*sigmoid(2x) - 1 with
        # the g-gate pre-activation pre-scaled by 2 at init time.
        sg_f = jax.nn.sigmoid(gates_f)
        sg_b = jax.nn.sigmoid(gates_b)
        i_f, f_f, o_f = sg_f[:, :H], sg_f[:, H:2 * H], sg_f[:, 3 * H:]
        g_f = 2.0 * sg_f[:, 2 * H:3 * H] - 1.0
        i_b, f_b, o_b = sg_b[:, :H], sg_b[:, H:2 * H], sg_b[:, 3 * H:]
        g_b = 2.0 * sg_b[:, 2 * H:3 * H] - 1.0
        cf_n = f_f * cf + i_f * g_f
        cb_n = f_b * cb + i_b * g_b
        hf_n = o_f * jnp.tanh(cf_n)
        hb_n = o_b * jnp.tanh(cb_n)
        hseq_f_sc[t] = hf_n.astype(hseq_f_sc.dtype)
        hseq_b_sc[tb] = hb_n.astype(hseq_b_sc.dtype)
        # h stays bf16 in the carry so the next recurrent matmul reads bf16.
        return (hf_n.astype(jnp.bfloat16), cf_n,
                hb_n.astype(jnp.bfloat16), cb_n)

    zero_h = jnp.zeros((B, H), jnp.bfloat16)
    zero_c = jnp.zeros((B, H), jnp.float32)
    jax.lax.fori_loop(0, T, step, (zero_h, zero_c, zero_h, zero_c),
                      unroll=unroll)

    # Lane-dense (T, B, 2H) output — removes the wrapper-level concatenate and
    # its full HBM round trip of the layer-0 activation.
    out_ref[:, :, :H] = hseq_f_sc[...]
    out_ref[:, :, H:] = hseq_b_sc[...]


def _bidir_lstm_final_head_kernel(x_ref, wih_ref, whh_f_ref, whh_b_ref, b_ref,
                                  w1_ref, b1_ref, w2_ref, b2_ref, o_ref,
                                  gx_sc, *, hidden, unroll):
    """Second bidirectional LSTM layer (final hidden states only) fused with
    dropout(eval) + Linear/ReLU/Linear head.  Both directions are interleaved
    in one time loop; no (T, B, H) writeback — hidden_cat never leaves VMEM.

    x_ref:   (T, B, 2H)  bf16 (layer-0 output)
    wih_ref: (2H, 8H)    bf16   whh_*_ref: (H, 4H) bf16   b_ref: (1, 8H) f32
    w1_ref:  (2H, 100) f32  b1_ref: (1, 100) f32
    w2_ref:  (100, 2)  f32  b2_ref: (1, 2)   f32
    o_ref:   (B, 2) f32
    """
    T, B, Din = x_ref.shape
    H = hidden
    G = 4 * H

    x_flat = x_ref[...].reshape(T * B, Din)
    gx = jnp.dot(x_flat, wih_ref[...], preferred_element_type=jnp.float32)
    gx_sc[...] = (gx + b_ref[...]).reshape(T, B, 8 * H)

    whh_f = whh_f_ref[...]
    whh_b = whh_b_ref[...]

    def step(t, carry):
        hf, cf, hb, cb = carry
        tb = T - 1 - t
        gx_f = gx_sc[t]
        gx_b = gx_sc[tb]
        gates_f = gx_f[:, :G] + jnp.dot(hf, whh_f,
                                        preferred_element_type=jnp.float32)
        gates_b = gx_b[:, G:] + jnp.dot(hb, whh_b,
                                        preferred_element_type=jnp.float32)
        sg_f = jax.nn.sigmoid(gates_f)
        sg_b = jax.nn.sigmoid(gates_b)
        i_f, f_f, o_f = sg_f[:, :H], sg_f[:, H:2 * H], sg_f[:, 3 * H:]
        g_f = 2.0 * sg_f[:, 2 * H:3 * H] - 1.0
        i_b, f_b, o_b = sg_b[:, :H], sg_b[:, H:2 * H], sg_b[:, 3 * H:]
        g_b = 2.0 * sg_b[:, 2 * H:3 * H] - 1.0
        cf_n = f_f * cf + i_f * g_f
        cb_n = f_b * cb + i_b * g_b
        hf_n = o_f * jnp.tanh(cf_n)
        hb_n = o_b * jnp.tanh(cb_n)
        return (hf_n.astype(jnp.bfloat16), cf_n,
                hb_n.astype(jnp.bfloat16), cb_n)

    zero_h = jnp.zeros((B, H), jnp.bfloat16)
    zero_c = jnp.zeros((B, H), jnp.float32)
    hf, _, hb, _ = jax.lax.fori_loop(0, T, step,
                                     (zero_h, zero_c, zero_h, zero_c),
                                     unroll=unroll)

    # hidden = cat([hidden[-2], hidden[-1]], dim=1); dropout(p=0.5) on it is
    # eval-mode identity here.
    # TODO(synk): training-mode dropout (between LSTM layers and on hidden_cat)
    # is not implemented — inference forward only.
    hidden_cat = jnp.concatenate([hf, hb], axis=-1).astype(jnp.float32)
    z = jnp.dot(hidden_cat, w1_ref[...],
                preferred_element_type=jnp.float32) + b1_ref[...]
    z = jnp.maximum(z, 0.0)
    o_ref[...] = jnp.dot(z, w2_ref[...],
                         preferred_element_type=jnp.float32) + b2_ref[...]


# ----------------------------------------------------------------------------
# Wrappers
# ----------------------------------------------------------------------------
def bidir_lstm_layer0(x_seq, layer, *, unroll):
    """Layer-0 bidirectional LSTM: one pallas_call, directions interleaved.

    Returns (T, B, 2H) bf16: forward hidden in [..., :H], backward in [..., H:]."""
    T, B, Din = x_seq.shape
    H = layer["whh_f"].shape[0]
    kernel = functools.partial(_bidir_lstm_seq_kernel, hidden=H, unroll=unroll)
    return pl.pallas_call(
        kernel,
        out_shape=jax.ShapeDtypeStruct((T, B, 2 * H), jnp.bfloat16),
        grid=(1,),
        in_specs=[
            pl.BlockSpec((T, B, Din), lambda i: (0, 0, 0)),     # x
            pl.BlockSpec((Din, 8 * H), lambda i: (0, 0)),       # W_ih (both dirs)
            pl.BlockSpec((H, 4 * H), lambda i: (0, 0)),         # W_hh fwd
            pl.BlockSpec((H, 4 * H), lambda i: (0, 0)),         # W_hh bwd
            pl.BlockSpec((1, 8 * H), lambda i: (0, 0)),         # bias (both dirs)
        ],
        out_specs=pl.BlockSpec((T, B, 2 * H), lambda i: (0, 0, 0)),
        scratch_shapes=[
            pltpu.VMEM((T, B, 8 * H), jnp.float32),   # precomputed gates_x
            pltpu.VMEM((T, B, H), jnp.bfloat16),      # fwd hidden sequence
            pltpu.VMEM((T, B, H), jnp.bfloat16),      # bwd hidden sequence
        ],
        compiler_params=pltpu.CompilerParams(
            dimension_semantics=("arbitrary",),
            # keep <= ~48 MiB headroom for v7x's 64 MiB/TC VMEM
            vmem_limit_bytes=32 * 1024 * 1024),
    )(x_seq, layer["wih"], layer["whh_f"], layer["whh_b"], layer["b"])


def lstm_layer1_with_head(x_seq, layer, head, *, unroll):
    """Layer-1 bidirectional LSTM (final states only) fused with the MLP head."""
    T, B, Din = x_seq.shape
    H = layer["whh_f"].shape[0]
    F1 = head["w1"].shape[1]
    F2 = head["w2"].shape[1]
    kernel = functools.partial(_bidir_lstm_final_head_kernel,
                               hidden=H, unroll=unroll)
    return pl.pallas_call(
        kernel,
        out_shape=jax.ShapeDtypeStruct((B, F2), jnp.float32),
        grid=(1,),
        in_specs=[
            pl.BlockSpec((T, B, Din), lambda i: (0, 0, 0)),
            pl.BlockSpec((Din, 8 * H), lambda i: (0, 0)),
            pl.BlockSpec((H, 4 * H), lambda i: (0, 0)),
            pl.BlockSpec((H, 4 * H), lambda i: (0, 0)),
            pl.BlockSpec((1, 8 * H), lambda i: (0, 0)),
            pl.BlockSpec((2 * H, F1), lambda i: (0, 0)),
            pl.BlockSpec((1, F1), lambda i: (0, 0)),
            pl.BlockSpec((F1, F2), lambda i: (0, 0)),
            pl.BlockSpec((1, F2), lambda i: (0, 0)),
        ],
        out_specs=pl.BlockSpec((B, F2), lambda i: (0, 0)),
        scratch_shapes=[
            pltpu.VMEM((T, B, 8 * H), jnp.float32),   # precomputed gates_x
        ],
        compiler_params=pltpu.CompilerParams(
            dimension_semantics=("arbitrary",),
            vmem_limit_bytes=32 * 1024 * 1024),
    )(x_seq, layer["wih"], layer["whh_f"], layer["whh_b"], layer["b"],
      head["w1"], head["b1"], head["w2"], head["b2"])


# ----------------------------------------------------------------------------
# Parameters (PyTorch-style init; pre-transposed, direction-fused, bias-folded,
# g-gate pre-activations pre-scaled x2 for the sigmoid-only gate trick)
# ----------------------------------------------------------------------------
def init_params(key, vocab_size, embedding_dim, hidden_dim):
    ks = iter(jax.random.split(key, 32))
    H = hidden_dim

    def unif(k, shape, bound):
        return jax.random.uniform(k, shape, jnp.float32, -bound, bound)

    params = {}

    # Embedding (padding_idx=1 row zeroed, as PyTorch does at init). bf16 table.
    emb = jax.random.normal(next(ks), (vocab_size, embedding_dim), jnp.float32)
    params["emb"] = emb.at[1].set(0.0).astype(jnp.bfloat16)

    k_lstm = 1.0 / jnp.sqrt(H)

    def scale_g(w):   # scale the g-gate block (cols 2H:3H of a 4H axis) by 2
        return w.at[..., 2 * H:3 * H].multiply(2.0)

    def lstm_layer_params(din):
        wih_dirs, whh_dirs, bias_dirs = [], [], []
        for _ in range(2):                        # forward, backward
            w_ih = unif(next(ks), (4 * H, din), k_lstm).T      # (din, 4H)
            w_hh = unif(next(ks), (4 * H, H), k_lstm).T        # (H, 4H)
            b_ih = unif(next(ks), (4 * H,), k_lstm)
            b_hh = unif(next(ks), (4 * H,), k_lstm)
            wih_dirs.append(scale_g(w_ih))
            whh_dirs.append(scale_g(w_hh))
            bias_dirs.append(scale_g((b_ih + b_hh).reshape(1, 4 * H)))
        return {
            "wih": jnp.concatenate(wih_dirs, -1).astype(jnp.bfloat16),  # (din, 8H)
            "whh_f": whh_dirs[0].astype(jnp.bfloat16),                  # (H, 4H)
            "whh_b": whh_dirs[1].astype(jnp.bfloat16),                  # (H, 4H)
            "b": jnp.concatenate(bias_dirs, -1),                        # (1, 8H) f32
        }

    params["l0"] = lstm_layer_params(embedding_dim)
    params["l1"] = lstm_layer_params(2 * H)

    # Head: linear_in (2H -> 100), linear_out (100 -> 2). Kept f32.
    k1 = 1.0 / jnp.sqrt(2.0 * H)
    k2 = 1.0 / jnp.sqrt(100.0)
    params["head"] = {
        "w1": unif(next(ks), (100, 2 * H), k1).T,          # (2H, 100)
        "b1": unif(next(ks), (100,), k1).reshape(1, 100),
        "w2": unif(next(ks), (2, 100), k2).T,              # (100, 2)
        "b2": unif(next(ks), (2,), k2).reshape(1, 2),
    }
    return params


# ----------------------------------------------------------------------------
# Forward
# ----------------------------------------------------------------------------
@jax.jit
def rnn_forward(tokens, params):
    T = tokens.shape[0]
    unroll = True if T <= 32 else 8

    # Embedding lookup, bf16 activations.
    # TODO(synk): fold this gather into the layer-0 kernel (tokens via scalar
    # prefetch + manual DMA gather from the HBM table) so it overlaps with the
    # input-projection matmul; kept as an XLA gather here for robustness.
    emb = params["emb"][tokens]                                   # (T, B, E) bf16

    # ---- LSTM layer 0: both directions interleaved in one kernel ----
    out0 = bidir_lstm_layer0(emb, params["l0"], unroll=unroll)    # (T, B, 2H) bf16

    # ---- LSTM layer 1 (final states only) + dropout(eval) + MLP head ----
    return lstm_layer1_with_head(out0, params["l1"], params["head"],
                                 unroll=unroll)                   # (B, 2) f32


if __name__ == "__main__":
    # Small deterministic config consistent with the module.
    vocab_size = 1000
    embedding_dim = 32
    hidden_dim = 32
    seq_len = 8
    batch = 2

    key = jax.random.PRNGKey(0)
    k_params, k_tokens = jax.random.split(key)
    params = init_params(k_params, vocab_size, embedding_dim, hidden_dim)
    tokens = jax.random.randint(k_tokens, (seq_len, batch), 0, vocab_size,
                                dtype=jnp.int32)

    out = rnn_forward(tokens, params)
    out = jax.block_until_ready(out)
    assert out.shape == (batch, 2) and out.dtype == jnp.float32
    print("KERNEL_OK")
</pallas_src>

<mosaic_0001>
module attributes {stable_mosaic.version = 11 : i64} {
  func.func @_bidir_lstm_seq_kernel(%arg0: i32, %arg1: memref<8x2x32xbf16, #tpu.memory_space<vmem>>, %arg2: memref<32x256xbf16, #tpu.memory_space<vmem>>, %arg3: memref<32x128xbf16, #tpu.memory_space<vmem>>, %arg4: memref<32x128xbf16, #tpu.memory_space<vmem>>, %arg5: memref<1x256xf32, #tpu.memory_space<vmem>>, %arg6: memref<8x2x64xbf16, #tpu.memory_space<vmem>>, %arg7: memref<8x2x256xf32, #tpu.memory_space<vmem>>, %arg8: memref<8x2x32xbf16, #tpu.memory_space<vmem>>, %arg9: memref<8x2x32xbf16, #tpu.memory_space<vmem>>) attributes {dimension_semantics = [#tpu.dimension_semantics<arbitrary>], iteration_bounds = array<i64: 1>, scalar_prefetch = 0 : i64, scratch_operands = 3 : i64, tpu.core_type = #tpu.core_type<tc>, window_params = [{pipeline_mode = #tpu.pipeline_mode<synchronous>, transform_indices = @transform_0, window_bounds = array<i64: 8, 2, 32>}, {pipeline_mode = #tpu.pipeline_mode<synchronous>, transform_indices = @transform_1, window_bounds = array<i64: 32, 256>}, {pipeline_mode = #tpu.pipeline_mode<synchronous>, transform_indices = @transform_2, window_bounds = array<i64: 32, 128>}, {pipeline_mode = #tpu.pipeline_mode<synchronous>, transform_indices = @transform_3, window_bounds = array<i64: 32, 128>}, {pipeline_mode = #tpu.pipeline_mode<synchronous>, transform_indices = @transform_4, window_bounds = array<i64: 1, 256>}, {pipeline_mode = #tpu.pipeline_mode<synchronous>, transform_indices = @transform_5, window_bounds = array<i64: 8, 2, 64>}]} {
    %c0 = arith.constant 0 : index
    %c0_0 = arith.constant 0 : index
    %c0_1 = arith.constant 0 : index
    %0 = vector.load %arg1[%c0, %c0_0, %c0_1] : memref<8x2x32xbf16, #tpu.memory_space<vmem>>, vector<8x2x32xbf16>
    %1 = vector.shape_cast %0 : vector<8x2x32xbf16> to vector<16x32xbf16>
    %c0_2 = arith.constant 0 : index
    %c0_3 = arith.constant 0 : index
    %2 = vector.load %arg2[%c0_2, %c0_3] : memref<32x256xbf16, #tpu.memory_space<vmem>>, vector<32x256xbf16>
    %cst = arith.constant dense<0.000000e+00> : vector<16x256xf32>
    %3 = tpu.matmul %1, %2, %cst {dimension_numbers = #tpu.dot_dimension_numbers<[1], [0], [0], [1], [0, 0, 1, 1], [], []>} : vector<16x32xbf16>, vector<32x256xbf16>, vector<16x256xf32> -> vector<16x256xf32>
    %c0_4 = arith.constant 0 : index
    %c0_5 = arith.constant 0 : index
    %4 = vector.load %arg5[%c0_4, %c0_5] : memref<1x256xf32, #tpu.memory_space<vmem>>, vector<1x256xf32>
    %5 = vector.broadcast %4 : vector<1x256xf32> to vector<16x256xf32>
    %6 = arith.addf %3, %5 : vector<16x256xf32>
    %7 = vector.shape_cast %6 : vector<16x256xf32> to vector<8x2x256xf32>
    %c0_6 = arith.constant 0 : index
    %c0_7 = arith.constant 0 : index
    %c0_8 = arith.constant 0 : index
    %8 = vector.load %arg7[%c0_6, %c0_7, %c0_8] : memref<8x2x256xf32, #tpu.memory_space<vmem>>, vector<8x2x256xf32>
    tpu.vector_store %arg7[%c0_6, %c0_7, %c0_8], %7 {strides = array<i32>} : memref<8x2x256xf32, #tpu.memory_space<vmem>>, vector<8x2x256xf32>,
    %c0_9 = arith.constant 0 : index
    %c0_10 = arith.constant 0 : index
    %9 = vector.load %arg3[%c0_9, %c0_10] : memref<32x128xbf16, #tpu.memory_space<vmem>>, vector<32x128xbf16>
    %c0_11 = arith.constant 0 : index
    %c0_12 = arith.constant 0 : index
    %10 = vector.load %arg4[%c0_11, %c0_12] : memref<32x128xbf16, #tpu.memory_space<vmem>>, vector<32x128xbf16>
    %cst_13 = arith.constant 0.000000e+00 : bf16
    %11 = vector.broadcast %cst_13 : bf16 to vector<2x32xbf16>
    %cst_14 = arith.constant 0.000000e+00 : f32
    %12 = vector.broadcast %cst_14 : f32 to vector<2x32xf32>
    %c0_i32 = arith.constant 0 : i32
    %c7_i32 = arith.constant 7 : i32
    %13 = arith.subi %c7_i32, %c0_i32 : i32
    %14 = arith.index_cast %c0_i32 : i32 to index
    %c0_15 = arith.constant 0 : index
    %c0_16 = arith.constant 0 : index
    %15 = vector.load %arg7[%14, %c0_15, %c0_16] : memref<8x2x256xf32, #tpu.memory_space<vmem>>, vector<1x2x256xf32>
    %16 = vector.shape_cast %15 : vector<1x2x256xf32> to vector<2x256xf32>
    %17 = arith.index_cast %13 : i32 to index
    %c0_17 = arith.constant 0 : index
    %c0_18 = arith.constant 0 : index
    %18 = vector.load %arg7[%17, %c0_17, %c0_18] : memref<8x2x256xf32, #tpu.memory_space<vmem>>, vector<1x2x256xf32>
    %19 = vector.shape_cast %18 : vector<1x2x256xf32> to vector<2x256xf32>
    %20 = vector.extract_strided_slice %16 {offsets = [0, 0], sizes = [2, 128], strides = [1, 1]} : vector<2x256xf32> to vector<2x128xf32>
    %cst_19 = arith.constant dense<0.000000e+00> : vector<2x128xf32>
    %21 = tpu.matmul %11, %9, %cst_19 {dimension_numbers = #tpu.dot_dimension_numbers<[1], [0], [0], [1], [0, 0, 1, 1], [], []>} : vector<2x32xbf16>, vector<32x128xbf16>, vector<2x128xf32> -> vector<2x128xf32>
    %22 = arith.addf %20, %21 : vector<2x128xf32>
    %23 = vector.extract_strided_slice %19 {offsets = [0, 128], sizes = [2, 128], strides = [1, 1]} : vector<2x256xf32> to vector<2x128xf32>
    %cst_20 = arith.constant dense<0.000000e+00> : vector<2x128xf32>
    %24 = tpu.matmul %11, %10, %cst_20 {dimension_numbers = #tpu.dot_dimension_numbers<[1], [0], [0], [1], [0, 0, 1, 1], [], []>} : vector<2x32xbf16>, vector<32x128xbf16>, vector<2x128xf32> -> vector<2x128xf32>
    %25 = arith.addf %23, %24 : vector<2x128xf32>
    %26 = arith.negf %22 : vector<2x128xf32>
    %27 = math.exp %26 : vector<2x128xf32>
    %cst_21 = arith.constant 1.000000e+00 : f32
    %28 = vector.broadcast %cst_21 : f32 to vector<2x128xf32>
    %29 = arith.addf %28, %27 : vector<2x128xf32>
    %30 = arith.divf %28, %29 : vector<2x128xf32>
    %31 = arith.negf %25 : vector<2x128xf32>
    %32 = math.exp %31 : vector<2x128xf32>
    %cst_22 = arith.constant 1.000000e+00 : f32
    %33 = vector.broadcast %cst_22 : f32 to vector<2x128xf32>
    %34 = arith.addf %33, %32 : vector<2x128xf32>
    %35 = arith.divf %33, %34 : vector<2x128xf32>
    %36 = vector.extract_strided_slice %30 {offsets = [0, 0], sizes = [2, 32], strides = [1, 1]} : vector<2x128xf32> to vector<2x32xf32>
    %37 = vector.extract_strided_slice %30 {offsets = [0, 32], sizes = [2, 32], strides = [1, 1]} : vector<2x128xf32> to vector<2x32xf32>
    %38 = vector.extract_strided_slice %30 {offsets = [0, 96], sizes = [2, 32], strides = [1, 1]} : vector<2x128xf32> to vector<2x32xf32>
    %39 = vector.extract_strided_slice %30 {offsets = [0, 64], sizes = [2, 32], strides = [1, 1]} : vector<2x128xf32> to vector<2x32xf32>
    %cst_23 = arith.constant 2.000000e+00 : f32
    %40 = vector.broadcast %cst_23 : f32 to vector<2x32xf32>
    %41 = arith.mulf %40, %39 : vector<2x32xf32>
    %cst_24 = arith.constant 1.000000e+00 : f32
    %42 = vector.broadcast %cst_24 : f32 to vector<2x32xf32>
    %43 = arith.subf %41, %42 : vector<2x32xf32>
    %44 = vector.extract_strided_slice %35 {offsets = [0, 0], sizes = [2, 32], strides = [1, 1]} : vector<2x128xf32> to vector<2x32xf32>
    %45 = vector.extract_strided_slice %35 {offsets = [0, 32], sizes = [2, 32], strides = [1, 1]} : vector<2x128xf32> to vector<2x32xf32>
    %46 = vector.extract_strided_slice %35 {offsets = [0, 96], sizes = [2, 32], strides = [1, 1]} : vector<2x128xf32> to vector<2x32xf32>
    %47 = vector.extract_strided_slice %35 {offsets = [0, 64], sizes = [2, 32], strides = [1, 1]} : vector<2x128xf32> to vector<2x32xf32>
    %cst_25 = arith.constant 2.000000e+00 : f32
    %48 = vector.broadcast %cst_25 : f32 to vector<2x32xf32>
    %49 = arith.mulf %48, %47 : vector<2x32xf32>
    %cst_26 = arith.constant 1.000000e+00 : f32
    %50 = vector.broadcast %cst_26 : f32 to vector<2x32xf32>
    %51 = arith.subf %49, %50 : vector<2x32xf32>
    %52 = arith.mulf %37, %12 : vector<2x32xf32>
    %53 = arith.mulf %36, %43 : vector<2x32xf32>
    %54 = arith.addf %52, %53 : vector<2x32xf32>
    %55 = arith.mulf %45, %12 : vector<2x32xf32>
    %56 = arith.mulf %44, %51 : vector<2x32xf32>
    %57 = arith.addf %55, %56 : vector<2x32xf32>
    %58 = math.tanh %54 : vector<2x32xf32>
    %59 = arith.mulf %38, %58 : vector<2x32xf32>
    %60 = math.tanh %57 : vector<2x32xf32>
    %61 = arith.mulf %46, %60 : vector<2x32xf32>
    %62 = arith.truncf %59 : vector<2x32xf32> to vector<2x32xbf16>
    %63 = arith.index_cast %c0_i32 : i32 to index
    %c0_27 = arith.constant 0 : index
    %c0_28 = arith.constant 0 : index
    %64 = vector.load %arg8[%63, %c0_27, %c0_28] : memref<8x2x32xbf16, #tpu.memory_space<vmem>>, vector<1x2x32xbf16>
    %65 = vector.shape_cast %64 : vector<1x2x32xbf16> to vector<2x32xbf16>
    %66 = vector.shape_cast %62 : vector<2x32xbf16> to vector<1x2x32xbf16>
    tpu.vector_store %arg8[%63, %c0_27, %c0_28], %66 {strides = array<i32>} : memref<8x2x32xbf16, #tpu.memory_space<vmem>>, vector<1x2x32xbf16>,
    %67 = arith.truncf %61 : vector<2x32xf32> to vector<2x32xbf16>
    %68 = arith.index_cast %13 : i32 to index
    %c0_29 = arith.constant 0 : index
    %c0_30 = arith.constant 0 : index
    %69 = vector.load %arg9[%68, %c0_29, %c0_30] : memref<8x2x32xbf16, #tpu.memory_space<vmem>>, vector<1x2x32xbf16>
    %70 = vector.shape_cast %69 : vector<1x2x32xbf16> to vector<2x32xbf16>
    %71 = vector.shape_cast %67 : vector<2x32xbf16> to vector<1x2x32xbf16>
    tpu.vector_store %arg9[%68, %c0_29, %c0_30], %71 {strides = array<i32>} : memref<8x2x32xbf16, #tpu.memory_space<vmem>>, vector<1x2x32xbf16>,
    %72 = arith.truncf %59 : vector<2x32xf32> to vector<2x32xbf16>
    %73 = arith.truncf %61 : vector<2x32xf32> to vector<2x32xbf16>
    %c1_i32 = arith.constant 1 : i32
    %c7_i32_31 = arith.constant 7 : i32
    %74 = arith.subi %c7_i32_31, %c1_i32 : i32
    %75 = arith.index_cast %c1_i32 : i32 to index
    %c0_32 = arith.constant 0 : index
    %c0_33 = arith.constant 0 : index
    %76 = vector.load %arg7[%75, %c0_32, %c0_33] : memref<8x2x256xf32, #tpu.memory_space<vmem>>, vector<1x2x256xf32>
    %77 = vector.shape_cast %76 : vector<1x2x256xf32> to vector<2x256xf32>
    %78 = arith.index_cast %74 : i32 to index
    %c0_34 = arith.constant 0 : index
    %c0_35 = arith.constant 0 : index
    %79 = vector.load %arg7[%78, %c0_34, %c0_35] : memref<8x2x256xf32, #tpu.memory_space<vmem>>, vector<1x2x256xf32>
    %80 = vector.shape_cast %79 : vector<1x2x256xf32> to vector<2x256xf32>
    %81 = vector.extract_strided_slice %77 {offsets = [0, 0], sizes = [2, 128], strides = [1, 1]} : vector<2x256xf32> to vector<2x128xf32>
    %cst_36 = arith.constant dense<0.000000e+00> : vector<2x128xf32>
    %82 = tpu.matmul %72, %9, %cst_36 {dimension_numbers = #tpu.dot_dimension_numbers<[1], [0], [0], [1], [0, 0, 1, 1], [], []>} : vector<2x32xbf16>, vector<32x128xbf16>, vector<2x128xf32> -> vector<2x128xf32>
    %83 = arith.addf %81, %82 : vector<2x128xf32>
    %84 = vector.extract_strided_slice %80 {offsets = [0, 128], sizes = [2, 128], strides = [1, 1]} : vector<2x256xf32> to vector<2x128xf32>
    %cst_37 = arith.constant dense<0.000000e+00> : vector<2x128xf32>
    %85 = tpu.matmul %73, %10, %cst_37 {dimension_numbers = #tpu.dot_dimension_numbers<[1], [0], [0], [1], [0, 0, 1, 1], [], []>} : vector<2x32xbf16>, vector<32x128xbf16>, vector<2x128xf32> -> vector<2x128xf32>
    %86 = arith.addf %84, %85 : vector<2x128xf32>
    %87 = arith.negf %83 : vector<2x128xf32>
    %88 = math.exp %87 : vector<2x128xf32>
    %cst_38 = arith.constant 1.000000e+00 : f32
    %89 = vector.broadcast %cst_38 : f32 to vector<2x128xf32>
    %90 = arith.addf %89, %88 : vector<2x128xf32>
    %91 = arith.divf %89, %90 : vector<2x128xf32>
    %92 = arith.negf %86 : vector<2x128xf32>
    %93 = math.exp %92 : vector<2x128xf32>
    %cst_39 = arith.constant 1.000000e+00 : f32
    %94 = vector.broadcast %cst_39 : f32 to vector<2x128xf32>
    %95 = arith.addf %94, %93 : vector<2x128xf32>
    %96 = arith.divf %94, %95 : vector<2x128xf32>
    %97 = vector.extract_strided_slice %91 {offsets = [0, 0], sizes = [2, 32], strides = [1, 1]} : vector<2x128xf32> to vector<2x32xf32>
    %98 = vector.extract_strided_slice %91 {offsets = [0, 32], sizes = [2, 32], strides = [1, 1]} : vector<2x128xf32> to vector<2x32xf32>
    %99 = vector.extract_strided_slice %91 {offsets = [0, 96], sizes = [2, 32], strides = [1, 1]} : vector<2x128xf32> to vector<2x32xf32>
    %100 = vector.extract_strided_slice %91 {offsets = [0, 64], sizes = [2, 32], strides = [1, 1]} : vector<2x128xf32> to vector<2x32xf32>
    %cst_40 = arith.constant 2.000000e+00 : f32
    %101 = vector.broadcast %cst_40 : f32 to vector<2x32xf32>
    %102 = arith.mulf %101, %100 : vector<2x32xf32>
    %cst_41 = arith.constant 1.000000e+00 : f32
    %103 = vector.broadcast %cst_41 : f32 to vector<2x32xf32>
    %104 = arith.subf %102, %103 : vector<2x32xf32>
    %105 = vector.extract_strided_slice %96 {offsets = [0, 0], sizes = [2, 32], strides = [1, 1]} : vector<2x128xf32> to vector<2x32xf32>
    %106 = vector.extract_strided_slice %96 {offsets = [0, 32], sizes = [2, 32], strides = [1, 1]} : vector<2x128xf32> to vector<2x32xf32>
    %107 = vector.extract_strided_slice %96 {offsets = [0, 96], sizes = [2, 32], strides = [1, 1]} : vector<2x128xf32> to vector<2x32xf32>
    %108 = vector.extract_strided_slice %96 {offsets = [0, 64], sizes = [2, 32], strides = [1, 1]} : vector<2x128xf32> to vector<2x32xf32>
    %cst_42 = arith.constant 2.000000e+00 : f32
    %109 = vector.broadcast %cst_42 : f32 to vector<2x32xf32>
    %110 = arith.mulf %109, %108 : vector<2x32xf32>
    %cst_43 = arith.constant 1.000000e+00 : f32
    %111 = vector.broadcast %cst_43 : f32 to vector<2x32xf32>
    %112 = arith.subf %110, %111 : vector<2x32xf32>
    %113 = arith.mulf %98, %54 : vector<2x32xf32>
    %114 = arith.mulf %97, %104 : vector<2x32xf32>
    %115 = arith.addf %113, %114 : vector<2x32xf32>
    %116 = arith.mulf %106, %57 : vector<2x32xf32>
    %117 = arith.mulf %105, %112 : vector<2x32xf32>
    %118 = arith.addf %116, %117 : vector<2x32xf32>
    %119 = math.tanh %115 : vector<2x32xf32>
    %120 = arith.mulf %99, %119 : vector<2x32xf32>
    %121 = math.tanh %118 : vector<2x32xf32>
    %122 = arith.mulf %107, %121 : vector<2x32xf32>
    %123 = arith.truncf %120 : vector<2x32xf32> to vector<2x32xbf16>
    %124 = arith.index_cast %c1_i32 : i32 to index
    %c0_44 = arith.constant 0 : index
    %c0_45 = arith.constant 0 : index
    %125 = vector.load %arg8[%124, %c0_44, %c0_45] : memref<8x2x32xbf16, #tpu.memory_space<vmem>>, vector<1x2x32xbf16>
    %126 = vector.shape_cast %125 : vector<1x2x32xbf16> to vector<2x32xbf16>
    %127 = vector.shape_cast %123 : vector<2x32xbf16> to vector<1x2x32xbf16>
    tpu.vector_store %arg8[%124, %c0_44, %c0_45], %127 {strides = array<i32>} : memref<8x2x32xbf16, #tpu.memory_space<vmem>>, vector<1x2x32xbf16>,
    %128 = arith.truncf %122 : vector<2x32xf32> to vector<2x32xbf16>
    %129 = arith.index_cast %74 : i32 to index
    %c0_46 = arith.constant 0 : index
    %c0_47 = arith.constant 0 : index
    %130 = vector.load %arg9[%129, %c0_46, %c0_47] : memref<8x2x32xbf16, #tpu.memory_space<vmem>>, vector<1x2x32xbf16>
    %131 = vector.shape_cast %130 : vector<1x2x32xbf16> to vector<2x32xbf16>
    %132 = vector.shape_cast %128 : vector<2x32xbf16> to vector<1x2x32xbf16>
    tpu.vector_store %arg9[%129, %c0_46, %c0_47], %132 {strides = array<i32>} : memref<8x2x32xbf16, #tpu.memory_space<vmem>>, vector<1x2x32xbf16>,
    %133 = arith.truncf %120 : vector<2x32xf32> to vector<2x32xbf16>
    %134 = arith.truncf %122 : vector<2x32xf32> to vector<2x32xbf16>
    %c2_i32 = arith.constant 2 : i32
    %c7_i32_48 = arith.constant 7 : i32
    %135 = arith.subi %c7_i32_48, %c2_i32 : i32
    %136 = arith.index_cast %c2_i32 : i32 to index
    %c0_49 = arith.constant 0 : index
    %c0_50 = arith.constant 0 : index
    %137 = vector.load %arg7[%136, %c0_49, %c0_50] : memref<8x2x256xf32, #tpu.memory_space<vmem>>, vector<1x2x256xf32>
    %138 = vector.shape_cast %137 : vector<1x2x256xf32> to vector<2x256xf32>
    %139 = arith.index_cast %135 : i32 to index
    %c0_51 = arith.constant 0 : index
    %c0_52 = arith.constant 0 : index
    %140 = vector.load %arg7[%139, %c0_51, %c0_52] : memref<8x2x256xf32, #tpu.memory_space<vmem>>, vector<1x2x256xf32>
    %141 = vector.shape_cast %140 : vector<1x2x256xf32> to vector<2x256xf32>
    %142 = vector.extract_strided_slice %138 {offsets = [0, 0], sizes = [2, 128], strides = [1, 1]} : vector<2x256xf32> to vector<2x128xf32>
    %cst_53 = arith.constant dense<0.000000e+00> : vector<2x128xf32>
    %143 = tpu.matmul %133, %9, %cst_53 {dimension_numbers = #tpu.dot_dimension_numbers<[1], [0], [0], [1], [0, 0, 1, 1], [], []>} : vector<2x32xbf16>, vector<32x128xbf16>, vector<2x128xf32> -> vector<2x128xf32>
    %144 = arith.addf %142, %143 : vector<2x128xf32>
    %145 = vector.extract_strided_slice %141 {offsets = [0, 128], sizes = [2, 128], strides = [1, 1]} : vector<2x256xf32> to vector<2x128xf32>
    %cst_54 = arith.constant dense<0.000000e+00> : vector<2x128xf32>
    %146 = tpu.matmul %134, %10, %cst_54 {dimension_numbers = #tpu.dot_dimension_numbers<[1], [0], [0], [1], [0, 0, 1, 1], [], []>} : vector<2x32xbf16>, vector<32x128xbf16>, vector<2x128xf32> -> vector<2x128xf32>
    %147 = arith.addf %145, %146 : vector<2x128xf32>
    %148 = arith.negf %144 : vector<2x128xf32>
    %149 = math.exp %148 : vector<2x128xf32>
    %cst_55 = arith.constant 1.000000e+00 : f32
    %150 = vector.broadcast %cst_55 : f32 to vector<2x128xf32>
    %151 = arith.addf %150, %149 : vector<2x128xf32>
    %152 = arith.divf %150, %151 : vector<2x128xf32>
    %153 = arith.negf %147 : vector<2x128xf32>
    %154 = math.exp %153 : vector<2x128xf32>
    %cst_56 = arith.constant 1.000000e+00 : f32
    %155 = vector.broadcast %cst_56 : f32 to vector<2x128xf32>
    %156 = arith.addf %155, %154 : vector<2x128xf32>
    %157 = arith.divf %155, %156 : vector<2x128xf32>
    %158 = vector.extract_strided_slice %152 {offsets = [0, 0], sizes = [2, 32], strides = [1, 1]} : vector<2x128xf32> to vector<2x32xf32>
    %159 = vector.extract_strided_slice %152 {offsets = [0, 32], sizes = [2, 32], strides = [1, 1]} : vector<2x128xf32> to vector<2x32xf32>
    %160 = vector.extract_strided_slice %152 {offsets = [0, 96], sizes = [2, 32], strides = [1, 1]} : vector<2x128xf32> to vector<2x32xf32>
    %161 = vector.extract_strided_slice %152 {offsets = [0, 64], sizes = [2, 32], strides = [1, 1]} : vector<2x128xf32> to vector<2x32xf32>
    %cst_57 = arith.constant 2.000000e+00 : f32
    %162 = vector.broadcast %cst_57 : f32 to vector<2x32xf32>
    %163 = arith.mulf %162, %161 : vector<2x32xf32>
    %cst_58 = arith.constant 1.000000e+00 : f32
    %164 = vector.broadcast %cst_58 : f32 to vector<2x32xf32>
    %165 = arith.subf %163, %164 : vector<2x32xf32>
    %166 = vector.extract_strided_slice %157 {offsets = [0, 0], sizes = [2, 32], strides = [1, 1]} : vector<2x128xf32> to vector<2x32xf32>
    %167 = vector.extract_strided_slice %157 {offsets = [0, 32], sizes = [2, 32], strides = [1, 1]} : vector<2x128xf32> to vector<2x32xf32>
    %168 = vector.extract_strided_slice %157 {offsets = [0, 96], sizes = [2, 32], strides = [1, 1]} : vector<2x128xf32> to vector<2x32xf32>
    %169 = vector.extract_strided_slice %157 {offsets = [0, 64], sizes = [2, 32], strides = [1, 1]} : vector<2x128xf32> to vector<2x32xf32>
    %cst_59 = arith.constant 2.000000e+00 : f32
    %170 = vector.broadcast %cst_59 : f32 to vector<2x32xf32>
    %171 = arith.mulf %170, %169 : vector<2x32xf32>
    %cst_60 = arith.constant 1.000000e+00 : f32
    %172 = vector.broadcast %cst_60 : f32 to vector<2x32xf32>
    %173 = arith.subf %171, %172 : vector<2x32xf32>
    %174 = arith.mulf %159, %115 : vector<2x32xf32>
    %175 = arith.mulf %158, %165 : vector<2x32xf32>
    %176 = arith.addf %174, %175 : vector<2x32xf32>
    %177 = arith.mulf %167, %118 : vector<2x32xf32>
    %178 = arith.mulf %166, %173 : vector<2x32xf32>
    %179 = arith.addf %177, %178 : vector<2x32xf32>
    %180 = math.tanh %176 : vector<2x32xf32>
    %181 = arith.mulf %160, %180 : vector<2x32xf32>
    %182 = math.tanh %179 : vector<2x32xf32>
    %183 = arith.mulf %168, %182 : vector<2x32xf32>
    %184 = arith.truncf %181 : vector<2x32xf32> to vector<2x32xbf16>
    %185 = arith.index_cast %c2_i32 : i32 to index
    %c0_61 = arith.constant 0 : index
    %c0_62 = arith.constant 0 : index
    %186 = vector.load %arg8[%185, %c0_61, %c0_62] : memref<8x2x32xbf16, #tpu.memory_space<vmem>>, vector<1x2x32xbf16>
    %187 = vector.shape_cast %186 : vector<1x2x32xbf16> to vector<2x32xbf16>
    %188 = vector.shape_cast %184 : vector<2x32xbf16> to vector<1x2x32xbf16>
    tpu.vector_store %arg8[%185, %c0_61, %c0_62], %188 {strides = array<i32>} : memref<8x2x32xbf16, #tpu.memory_space<vmem>>, vector<1x2x32xbf16>,
    %189 = arith.truncf %183 : vector<2x32xf32> to vector<2x32xbf16>
    %190 = arith.index_cast %135 : i32 to index
    %c0_63 = arith.constant 0 : index
    %c0_64 = arith.constant 0 : index
    %191 = vector.load %arg9[%190, %c0_63, %c0_64] : memref<8x2x32xbf16, #tpu.memory_space<vmem>>, vector<1x2x32xbf16>
    %192 = vector.shape_cast %191 : vector<1x2x32xbf16> to vector<2x32xbf16>
    %193 = vector.shape_cast %189 : vector<2x32xbf16> to vector<1x2x32xbf16>
    tpu.vector_store %arg9[%190, %c0_63, %c0_64], %193 {strides = array<i32>} : memref<8x2x32xbf16, #tpu.memory_space<vmem>>, vector<1x2x32xbf16>,
    %194 = arith.truncf %181 : vector<2x32xf32> to vector<2x32xbf16>
    %195 = arith.truncf %183 : vector<2x32xf32> to vector<2x32xbf16>
    %c3_i32 = arith.constant 3 : i32
    %c7_i32_65 = arith.constant 7 : i32
    %196 = arith.subi %c7_i32_65, %c3_i32 : i32
    %197 = arith.index_cast %c3_i32 : i32 to index
    %c0_66 = arith.constant 0 : index
    %c0_67 = arith.constant 0 : index
    %198 = vector.load %arg7[%197, %c0_66, %c0_67] : memref<8x2x256xf32, #tpu.memory_space<vmem>>, vector<1x2x256xf32>
    %199 = vector.shape_cast %198 : vector<1x2x256xf32> to vector<2x256xf32>
    %200 = arith.index_cast %196 : i32 to index
    %c0_68 = arith.constant 0 : index
    %c0_69 = arith.constant 0 : index
    %201 = vector.load %arg7[%200, %c0_68, %c0_69] : memref<8x2x256xf32, #tpu.memory_space<vmem>>, vector<1x2x256xf32>
    %202 = vector.shape_cast %201 : vector<1x2x256xf32> to vector<2x256xf32>
    %203 = vector.extract_strided_slice %199 {offsets = [0, 0], sizes = [2, 128], strides = [1, 1]} : vector<2x256xf32> to vector<2x128xf32>
    %cst_70 = arith.constant dense<0.000000e+00> : vector<2x128xf32>
    %204 = tpu.matmul %194, %9, %cst_70 {dimension_numbers = #tpu.dot_dimension_numbers<[1], [0], [0], [1], [0, 0, 1, 1], [], []>} : vector<2x32xbf16>, vector<32x128xbf16>, vector<2x128xf32> -> vector<2x128xf32>
    %205 = arith.addf %203, %204 : vector<2x128xf32>
    %206 = vector.extract_strided_slice %202 {offsets = [0, 128], sizes = [2, 128], strides = [1, 1]} : vector<2x256xf32> to vector<2x128xf32>
    %cst_71 = arith.constant dense<0.000000e+00> : vector<2x128xf32>
    %207 = tpu.matmul %195, %10, %cst_71 {dimension_numbers = #tpu.dot_dimension_numbers<[1], [0], [0], [1], [0, 0, 1, 1], [], []>} : vector<2x32xbf16>, vector<32x128xbf16>, vector<2x128xf32> -> vector<2x128xf32>
    %208 = arith.addf %206, %207 : vector<2x128xf32>
    %209 = arith.negf %205 : vector<2x128xf32>
    %210 = math.exp %209 : vector<2x128xf32>
    %cst_72 = arith.constant 1.000000e+00 : f32
    %211 = vector.broadcast %cst_72 : f32 to vector<2x128xf32>
    %212 = arith.addf %211, %210 : vector<2x128xf32>
    %213 = arith.divf %211, %212 : vector<2x128xf32>
    %214 = arith.negf %208 : vector<2x128xf32>
    %215 = math.exp %214 : vector<2x128xf32>
    %cst_73 = arith.constant 1.000000e+00 : f32
    %216 = vector.broadcast %cst_73 : f32 to vector<2x128xf32>
    %217 = arith.addf %216, %215 : vector<2x128xf32>
    %218 = arith.divf %216, %217 : vector<2x128xf32>
    %219 = vector.extract_strided_slice %213 {offsets = [0, 0], sizes = [2, 32], strides = [1, 1]} : vector<2x128xf32> to vector<2x32xf32>
    %220 = vector.extract_strided_slice %213 {offsets = [0, 32], sizes = [2, 32], strides = [1, 1]} : vector<2x128xf32> to vector<2x32xf32>
    %221 = vector.extract_strided_slice %213 {offsets = [0, 96], sizes = [2, 32], strides = [1, 1]} : vector<2x128xf32> to vector<2x32xf32>
    %222 = vector.extract_strided_slice %213 {offsets = [0, 64], sizes = [2, 32], strides = [1, 1]} : vector<2x128xf32> to vector<2x32xf32>
    %cst_74 = arith.constant 2.000000e+00 : f32
    %223 = vector.broadcast %cst_74 : f32 to vector<2x32xf32>
    %224 = arith.mulf %223, %222 : vector<2x32xf32>
    %cst_75 = arith.constant 1.000000e+00 : f32
    %225 = vector.broadcast %cst_75 : f32 to vector<2x32xf32>
    %226 = arith.subf %224, %225 : vector<2x32xf32>
    %227 = vector.extract_strided_slice %218 {offsets = [0, 0], sizes = [2, 32], strides = [1, 1]} : vector<2x128xf32> to vector<2x32xf32>
    %228 = vector.extract_strided_slice %218 {offsets = [0, 32], sizes = [2, 32], strides = [1, 1]} : vector<2x128xf32> to vector<2x32xf32>
    %229 = vector.extract_strided_slice %218 {offsets = [0, 96], sizes = [2, 32], strides = [1, 1]} : vector<2x128xf32> to vector<2x32xf32>
    %230 = vector.extract_strided_slice %218 {offsets = [0, 64], sizes = [2, 32], strides = [1, 1]} : vector<2x128xf32> to vector<2x32xf32>
    %cst_76 = arith.constant 2.000000e+00 : f32
    %231 = vector.broadcast %cst_76 : f32 to vector<2x32xf32>
    %232 = arith.mulf %231, %230 : vector<2x32xf32>
    %cst_77 = arith.constant 1.000000e+00 : f32
    %233 = vector.broadcast %cst_77 : f32 to vector<2x32xf32>
    %234 = arith.subf %232, %233 : vector<2x32xf32>
    %235 = arith.mulf %220, %176 : vector<2x32xf32>
    %236 = arith.mulf %219, %226 : vector<2x32xf32>
    %237 = arith.addf %235, %236 : vector<2x32xf32>
    %238 = arith.mulf %228, %179 : vector<2x32xf32>
    %239 = arith.mulf %227, %234 : vector<2x32xf32>
    %240 = arith.addf %238, %239 : vector<2x32xf32>
    %241 = math.tanh %237 : vector<2x32xf32>
    %242 = arith.mulf %221, %241 : vector<2x32xf32>
    %243 = math.tanh %240 : vector<2x32xf32>
    %244 = arith.mulf %229, %243 : vector<2x32xf32>
    %245 = arith.truncf %242 : vector<2x32xf32> to vector<2x32xbf16>
    %246 = arith.index_cast %c3_i32 : i32 to index
    %c0_78 = arith.constant 0 : index
    %c0_79 = arith.constant 0 : index
    %247 = vector.load %arg8[%246, %c0_78, %c0_79] : memref<8x2x32xbf16, #tpu.memory_space<vmem>>, vector<1x2x32xbf16>
    %248 = vector.shape_cast %247 : vector<1x2x32xbf16> to vector<2x32xbf16>
    %249 = vector.shape_cast %245 : vector<2x32xbf16> to vector<1x2x32xbf16>
    tpu.vector_store %arg8[%246, %c0_78, %c0_79], %249 {strides = array<i32>} : memref<8x2x32xbf16, #tpu.memory_space<vmem>>, vector<1x2x32xbf16>,
    %250 = arith.truncf %244 : vector<2x32xf32> to vector<2x32xbf16>
    %251 = arith.index_cast %196 : i32 to index
    %c0_80 = arith.constant 0 : index
    %c0_81 = arith.constant 0 : index
    %252 = vector.load %arg9[%251, %c0_80, %c0_81] : memref<8x2x32xbf16, #tpu.memory_space<vmem>>, vector<1x2x32xbf16>
    %253 = vector.shape_cast %252 : vector<1x2x32xbf16> to vector<2x32xbf16>
    %254 = vector.shape_cast %250 : vector<2x32xbf16> to vector<1x2x32xbf16>
    tpu.vector_store %arg9[%251, %c0_80, %c0_81], %254 {strides = array<i32>} : memref<8x2x32xbf16, #tpu.memory_space<vmem>>, vector<1x2x32xbf16>,
    %255 = arith.truncf %242 : vector<2x32xf32> to vector<2x32xbf16>
    %256 = arith.truncf %244 : vector<2x32xf32> to vector<2x32xbf16>
    %c4_i32 = arith.constant 4 : i32
    %c7_i32_82 = arith.constant 7 : i32
    %257 = arith.subi %c7_i32_82, %c4_i32 : i32
    %258 = arith.index_cast %c4_i32 : i32 to index
    %c0_83 = arith.constant 0 : index
    %c0_84 = arith.constant 0 : index
    %259 = vector.load %arg7[%258, %c0_83, %c0_84] : memref<8x2x256xf32, #tpu.memory_space<vmem>>, vector<1x2x256xf32>
    %260 = vector.shape_cast %259 : vector<1x2x256xf32> to vector<2x256xf32>
    %261 = arith.index_cast %257 : i32 to index
    %c0_85 = arith.constant 0 : index
    %c0_86 = arith.constant 0 : index
    %262 = vector.load %arg7[%261, %c0_85, %c0_86] : memref<8x2x256xf32, #tpu.memory_space<vmem>>, vector<1x2x256xf32>
    %263 = vector.shape_cast %262 : vector<1x2x256xf32> to vector<2x256xf32>
    %264 = vector.extract_strided_slice %260 {offsets = [0, 0], sizes = [2, 128], strides = [1, 1]} : vector<2x256xf32> to vector<2x128xf32>
    %cst_87 = arith.constant dense<0.000000e+00> : vector<2x128xf32>
    %265 = tpu.matmul %255, %9, %cst_87 {dimension_numbers = #tpu.dot_dimension_numbers<[1], [0], [0], [1], [0, 0, 1, 1], [], []>} : vector<2x32xbf16>, vector<32x128xbf16>, vector<2x128xf32> -> vector<2x128xf32>
    %266 = arith.addf %264, %265 : vector<2x128xf32>
    %267 = vector.extract_strided_slice %263 {offsets = [0, 128], sizes = [2, 128], strides = [1, 1]} : vector<2x256xf32> to vector<2x128xf32>
    %cst_88 = arith.constant dense<0.000000e+00> : vector<2x128xf32>
    %268 = tpu.matmul %256, %10, %cst_88 {dimension_numbers = #tpu.dot_dimension_numbers<[1], [0], [0], [1], [0, 0, 1, 1], [], []>} : vector<2x32xbf16>, vector<32x128xbf16>, vector<2x128xf32> -> vector<2x128xf32>
    %269 = arith.addf %267, %268 : vector<2x128xf32>
    %270 = arith.negf %266 : vector<2x128xf32>
    %271 = math.exp %270 : vector<2x128xf32>
    %cst_89 = arith.constant 1.000000e+00 : f32
    %272 = vector.broadcast %cst_89 : f32 to vector<2x128xf32>
    %273 = arith.addf %272, %271 : vector<2x128xf32>
    %274 = arith.divf %272, %273 : vector<2x128xf32>
    %275 = arith.negf %269 : vector<2x128xf32>
    %276 = math.exp %275 : vector<2x128xf32>
    %cst_90 = arith.constant 1.000000e+00 : f32
    %277 = vector.broadcast %cst_90 : f32 to vector<2x128xf32>
    %278 = arith.addf %277, %276 : vector<2x128xf32>
    %279 = arith.divf %277, %278 : vector<2x128xf32>
    %280 = vector.extract_strided_slice %274 {offsets = [0, 0], sizes = [2, 32], strides = [1, 1]} : vector<2x128xf32> to vector<2x32xf32>
    %281 = vector.extract_strided_slice %274 {offsets = [0, 32], sizes = [2, 32], strides = [1, 1]} : vector<2x128xf32> to vector<2x32xf32>
    %282 = vector.extract_strided_slice %274 {offsets = [0, 96], sizes = [2, 32], strides = [1, 1]} : vector<2x128xf32> to vector<2x32xf32>
    %283 = vector.extract_strided_slice %274 {offsets = [0, 64], sizes = [2, 32], strides = [1, 1]} : vector<2x128xf32> to vector<2x32xf32>
    %cst_91 = arith.constant 2.000000e+00 : f32
    %284 = vector.broadcast %cst_91 : f32 to vector<2x32xf32>
    %285 = arith.mulf %284, %283 : vector<2x32xf32>
    %cst_92 = arith.constant 1.000000e+00 : f32
    %286 = vector.broadcast %cst_92 : f32 to vector<2x32xf32>
    %287 = arith.subf %285, %286 : vector<2x32xf32>
    %288 = vector.extract_strided_slice %279 {offsets = [0, 0], sizes = [2, 32], strides = [1, 1]} : vector<2x128xf32> to vector<2x32xf32>
    %289 = vector.extract_strided_slice %279 {offsets = [0, 32], sizes = [2, 32], strides = [1, 1]} : vector<2x128xf32> to vector<2x32xf32>
    %290 = vector.extract_strided_slice %279 {offsets = [0, 96], sizes = [2, 32], strides = [1, 1]} : vector<2x128xf32> to vector<2x32xf32>
    %291 = vector.extract_strided_slice %279 {offsets = [0, 64], sizes = [2, 32], strides = [1, 1]} : vector<2x128xf32> to vector<2x32xf32>
    %cst_93 = arith.constant 2.000000e+00 : f32
    %292 = vector.broadcast %cst_93 : f32 to vector<2x32xf32>
    %293 = arith.mulf %292, %291 : vector<2x32xf32>
    %cst_94 = arith.constant 1.000000e+00 : f32
    %294 = vector.broadcast %cst_94 : f32 to vector<2x32xf32>
    %295 = arith.subf %293, %294 : vector<2x32xf32>
    %296 = arith.mulf %281, %237 : vector<2x32xf32>
    %297 = arith.mulf %280, %287 : vector<2x32xf32>
    %298 = arith.addf %296, %297 : vector<2x32xf32>
    %299 = arith.mulf %289, %240 : vector<2x32xf32>
    %300 = arith.mulf %288, %295 : vector<2x32xf32>
    %301 = arith.addf %299, %300 : vector<2x32xf32>
    %302 = math.tanh %298 : vector<2x32xf32>
    %303 = arith.mulf %282, %302 : vector<2x32xf32>
    %304 = math.tanh %301 : vector<2x32xf32>
    %305 = arith.mulf %290, %304 : vector<2x32xf32>
    %306 = arith.truncf %303 : vector<2x32xf32> to vector<2x32xbf16>
    %307 = arith.index_cast %c4_i32 : i32 to index
    %c0_95 = arith.constant 0 : index
    %c0_96 = arith.constant 0 : index
    %308 = vector.load %arg8[%307, %c0_95, %c0_96] : memref<8x2x32xbf16, #tpu.memory_space<vmem>>, vector<1x2x32xbf16>
    %309 = vector.shape_cast %308 : vector<1x2x32xbf16> to vector<2x32xbf16>
    %310 = vector.shape_cast %306 : vector<2x32xbf16> to vector<1x2x32xbf16>
    tpu.vector_store %arg8[%307, %c0_95, %c0_96], %310 {strides = array<i32>} : memref<8x2x32xbf16, #tpu.memory_space<vmem>>, vector<1x2x32xbf16>,
    %311 = arith.truncf %305 : vector<2x32xf32> to vector<2x32xbf16>
    %312 = arith.index_cast %257 : i32 to index
    %c0_97 = arith.constant 0 : index
    %c0_98 = arith.constant 0 : index
    %313 = vector.load %arg9[%312, %c0_97, %c0_98] : memref<8x2x32xbf16, #tpu.memory_space<vmem>>, vector<1x2x32xbf16>
    %314 = vector.shape_cast %313 : vector<1x2x32xbf16> to vector<2x32xbf16>
    %315 = vector.shape_cast %311 : vector<2x32xbf16> to vector<1x2x32xbf16>
    tpu.vector_store %arg9[%312, %c0_97, %c0_98], %315 {strides = array<i32>} : memref<8x2x32xbf16, #tpu.memory_space<vmem>>, vector<1x2x32xbf16>,
    %316 = arith.truncf %303 : vector<2x32xf32> to vector<2x32xbf16>
    %317 = arith.truncf %305 : vector<2x32xf32> to vector<2x32xbf16>
    %c5_i32 = arith.constant 5 : i32
    %c7_i32_99 = arith.constant 7 : i32
    %318 = arith.subi %c7_i32_99, %c5_i32 : i32
    %319 = arith.index_cast %c5_i32 : i32 to index
    %c0_100 = arith.constant 0 : index
    %c0_101 = arith.constant 0 : index
    %320 = vector.load %arg7[%319, %c0_100, %c0_101] : memref<8x2x256xf32, #tpu.memory_space<vmem>>, vector<1x2x256xf32>
    %321 = vector.shape_cast %320 : vector<1x2x256xf32> to vector<2x256xf32>
    %322 = arith.index_cast %318 : i32 to index
    %c0_102 = arith.constant 0 : index
    %c0_103 = arith.constant 0 : index
    %323 = vector.load %arg7[%322, %c0_102, %c0_103] : memref<8x2x256xf32, #tpu.memory_space<vmem>>, vector<1x2x256xf32>
    %324 = vector.shape_cast %323 : vector<1x2x256xf32> to vector<2x256xf32>
    %325 = vector.extract_strided_slice %321 {offsets = [0, 0], sizes = [2, 128], strides = [1, 1]} : vector<2x256xf32> to vector<2x128xf32>
    %cst_104 = arith.constant dense<0.000000e+00> : vector<2x128xf32>
    %326 = tpu.matmul %316, %9, %cst_104 {dimension_numbers = #tpu.dot_dimension_numbers<[1], [0], [0], [1], [0, 0, 1, 1], [], []>} : vector<2x32xbf16>, vector<32x128xbf16>, vector<2x128xf32> -> vector<2x128xf32>
    %327 = arith.addf %325, %326 : vector<2x128xf32>
    %328 = vector.extract_strided_slice %324 {offsets = [0, 128], sizes = [2, 128], strides = [1, 1]} : vector<2x256xf32> to vector<2x128xf32>
    %cst_105 = arith.constant dense<0.000000e+00> : vector<2x128xf32>
    %329 = tpu.matmul %317, %10, %cst_105 {dimension_numbers = #tpu.dot_dimension_numbers<[1], [0], [0], [1], [0, 0, 1, 1], [], []>} : vector<2x32xbf16>, vector<32x128xbf16>, vector<2x128xf32> -> vector<2x128xf32>
    %330 = arith.addf %328, %329 : vector<2x128xf32>
    %331 = arith.negf %327 : vector<2x128xf32>
    %332 = math.exp %331 : vector<2x128xf32>
    %cst_106 = arith.constant 1.000000e+00 : f32
    %333 = vector.broadcast %cst_106 : f32 to vector<2x128xf32>
    %334 = arith.addf %333, %332 : vector<2x128xf32>
    %335 = arith.divf %333, %334 : vector<2x128xf32>
    %336 = arith.negf %330 : vector<2x128xf32>
    %337 = math.exp %336 : vector<2x128xf32>
    %cst_107 = arith.constant 1.000000e+00 : f32
    %338 = vector.broadcast %cst_107 : f32 to vector<2x128xf32>
    %339 = arith.addf %338, %337 : vector<2x128xf32>
    %340 = arith.divf %338, %339 : vector<2x128xf32>
    %341 = vector.extract_strided_slice %335 {offsets = [0, 0], sizes = [2, 32], strides = [1, 1]} : vector<2x128xf32> to vector<2x32xf32>
    %342 = vector.extract_strided_slice %335 {offsets = [0, 32], sizes = [2, 32], strides = [1, 1]} : vector<2x128xf32> to vector<2x32xf32>
    %343 = vector.extract_strided_slice %335 {offsets = [0, 96], sizes = [2, 32], strides = [1, 1]} : vector<2x128xf32> to vector<2x32xf32>
    %344 = vector.extract_strided_slice %335 {offsets = [0, 64], sizes = [2, 32], strides = [1, 1]} : vector<2x128xf32> to vector<2x32xf32>
    %cst_108 = arith.constant 2.000000e+00 : f32
    %345 = vector.broadcast %cst_108 : f32 to vector<2x32xf32>
    %346 = arith.mulf %345, %344 : vector<2x32xf32>
    %cst_109 = arith.constant 1.000000e+00 : f32
    %347 = vector.broadcast %cst_109 : f32 to vector<2x32xf32>
    %348 = arith.subf %346, %347 : vector<2x32xf32>
    %349 = vector.extract_strided_slice %340 {offsets = [0, 0], sizes = [2, 32], strides = [1, 1]} : vector<2x128xf32> to vector<2x32xf32>
    %350 = vector.extract_strided_slice %340 {offsets = [0, 32], sizes = [2, 32], strides = [1, 1]} : vector<2x128xf32> to vector<2x32xf32>
    %351 = vector.extract_strided_slice %340 {offsets = [0, 96], sizes = [2, 32], strides = [1, 1]} : vector<2x128xf32> to vector<2x32xf32>
    %352 = vector.extract_strided_slice %340 {offsets = [0, 64], sizes = [2, 32], strides = [1, 1]} : vector<2x128xf32> to vector<2x32xf32>
    %cst_110 = arith.constant 2.000000e+00 : f32
    %353 = vector.broadcast %cst_110 : f32 to vector<2x32xf32>
    %354 = arith.mulf %353, %352 : vector<2x32xf32>
    %cst_111 = arith.constant 1.000000e+00 : f32
    %355 = vector.broadcast %cst_111 : f32 to vector<2x32xf32>
    %356 = arith.subf %354, %355 : vector<2x32xf32>
    %357 = arith.mulf %342, %298 : vector<2x32xf32>
    %358 = arith.mulf %341, %348 : vector<2x32xf32>
    %359 = arith.addf %357, %358 : vector<2x32xf32>
    %360 = arith.mulf %350, %301 : vector<2x32xf32>
    %361 = arith.mulf %349, %356 : vector<2x32xf32>
    %362 = arith.addf %360, %361 : vector<2x32xf32>
    %363 = math.tanh %359 : vector<2x32xf32>
    %364 = arith.mulf %343, %363 : vector<2x32xf32>
    %365 = math.tanh %362 : vector<2x32xf32>
    %366 = arith.mulf %351, %365 : vector<2x32xf32>
    %367 = arith.truncf %364 : vector<2x32xf32> to vector<2x32xbf16>
    %368 = arith.index_cast %c5_i32 : i32 to index
    %c0_112 = arith.constant 0 : index
    %c0_113 = arith.constant 0 : index
    %369 = vector.load %arg8[%368, %c0_112, %c0_113] : memref<8x2x32xbf16, #tpu.memory_space<vmem>>, vector<1x2x32xbf16>
    %370 = vector.shape_cast %369 : vector<1x2x32xbf16> to vector<2x32xbf16>
    %371 = vector.shape_cast %367 : vector<2x32xbf16> to vector<1x2x32xbf16>
    tpu.vector_store %arg8[%368, %c0_112, %c0_113], %371 {strides = array<i32>} : memref<8x2x32xbf16, #tpu.memory_space<vmem>>, vector<1x2x32xbf16>,
    %372 = arith.truncf %366 : vector<2x32xf32> to vector<2x32xbf16>
    %373 = arith.index_cast %318 : i32 to index
    %c0_114 = arith.constant 0 : index
    %c0_115 = arith.constant 0 : index
    %374 = vector.load %arg9[%373, %c0_114, %c0_115] : memref<8x2x32xbf16, #tpu.memory_space<vmem>>, vector<1x2x32xbf16>
    %375 = vector.shape_cast %374 : vector<1x2x32xbf16> to vector<2x32xbf16>
    %376 = vector.shape_cast %372 : vector<2x32xbf16> to vector<1x2x32xbf16>
    tpu.vector_store %arg9[%373, %c0_114, %c0_115], %376 {strides = array<i32>} : memref<8x2x32xbf16, #tpu.memory_space<vmem>>, vector<1x2x32xbf16>,
    %377 = arith.truncf %364 : vector<2x32xf32> to vector<2x32xbf16>
    %378 = arith.truncf %366 : vector<2x32xf32> to vector<2x32xbf16>
    %c6_i32 = arith.constant 6 : i32
    %c7_i32_116 = arith.constant 7 : i32
    %379 = arith.subi %c7_i32_116, %c6_i32 : i32
    %380 = arith.index_cast %c6_i32 : i32 to index
    %c0_117 = arith.constant 0 : index
    %c0_118 = arith.constant 0 : index
    %381 = vector.load %arg7[%380, %c0_117, %c0_118] : memref<8x2x256xf32, #tpu.memory_space<vmem>>, vector<1x2x256xf32>
    %382 = vector.shape_cast %381 : vector<1x2x256xf32> to vector<2x256xf32>
    %383 = arith.index_cast %379 : i32 to index
    %c0_119 = arith.constant 0 : index
    %c0_120 = arith.constant 0 : index
    %384 = vector.load %arg7[%383, %c0_119, %c0_120] : memref<8x2x256xf32, #tpu.memory_space<vmem>>, vector<1x2x256xf32>
    %385 = vector.shape_cast %384 : vector<1x2x256xf32> to vector<2x256xf32>
    %386 = vector.extract_strided_slice %382 {offsets = [0, 0], sizes = [2, 128], strides = [1, 1]} : vector<2x256xf32> to vector<2x128xf32>
    %cst_121 = arith.constant dense<0.000000e+00> : vector<2x128xf32>
    %387 = tpu.matmul %377, %9, %cst_121 {dimension_numbers = #tpu.dot_dimension_numbers<[1], [0], [0], [1], [0, 0, 1, 1], [], []>} : vector<2x32xbf16>, vector<32x128xbf16>, vector<2x128xf32> -> vector<2x128xf32>
    %388 = arith.addf %386, %387 : vector<2x128xf32>
    %389 = vector.extract_strided_slice %385 {offsets = [0, 128], sizes = [2, 128], strides = [1, 1]} : vector<2x256xf32> to vector<2x128xf32>
    %cst_122 = arith.constant dense<0.000000e+00> : vector<2x128xf32>
    %390 = tpu.matmul %378, %10, %cst_122 {dimension_numbers = #tpu.dot_dimension_numbers<[1], [0], [0], [1], [0, 0, 1, 1], [], []>} : vector<2x32xbf16>, vector<32x128xbf16>, vector<2x128xf32> -> vector<2x128xf32>
    %391 = arith.addf %389, %390 : vector<2x128xf32>
    %392 = arith.negf %388 : vector<2x128xf32>
    %393 = math.exp %392 : vector<2x128xf32>
    %cst_123 = arith.constant 1.000000e+00 : f32
    %394 = vector.broadcast %cst_123 : f32 to vector<2x128xf32>
    %395 = arith.addf %394, %393 : vector<2x128xf32>
    %396 = arith.divf %394, %395 : vector<2x128xf32>
    %397 = arith.negf %391 : vector<2x128xf32>
    %398 = math.exp %397 : vector<2x128xf32>
    %cst_124 = arith.constant 1.000000e+00 : f32
    %399 = vector.broadcast %cst_124 : f32 to vector<2x128xf32>
    %400 = arith.addf %399, %398 : vector<2x128xf32>
    %401 = arith.divf %399, %400 : vector<2x128xf32>
    %402 = vector.extract_strided_slice %396 {offsets = [0, 0], sizes = [2, 32], strides = [1, 1]} : vector<2x128xf32> to vector<2x32xf32>
    %403 = vector.extract_strided_slice %396 {offsets = [0, 32], sizes = [2, 32], strides = [1, 1]} : vector<2x128xf32> to vector<2x32xf32>
    %404 = vector.extract_strided_slice %396 {offsets = [0, 96], sizes = [2, 32], strides = [1, 1]} : vector<2x128xf32> to vector<2x32xf32>
    %405 = vector.extract_strided_slice %396 {offsets = [0, 64], sizes = [2, 32], strides = [1, 1]} : vector<2x128xf32> to vector<2x32xf32>
    %cst_125 = arith.constant 2.000000e+00 : f32
    %406 = vector.broadcast %cst_125 : f32 to vector<2x32xf32>
    %407 = arith.mulf %406, %405 : vector<2x32xf32>
    %cst_126 = arith.constant 1.000000e+00 : f32
    %408 = vector.broadcast %cst_126 : f32 to vector<2x32xf32>
    %409 = arith.subf %407, %408 : vector<2x32xf32>
    %410 = vector.extract_strided_slice %401 {offsets = [0, 0], sizes = [2, 32], strides = [1, 1]} : vector<2x128xf32> to vector<2x32xf32>
    %411 = vector.extract_strided_slice %401 {offsets = [0, 32], sizes = [2, 32], strides = [1, 1]} : vector<2x128xf32> to vector<2x32xf32>
    %412 = vector.extract_strided_slice %401 {offsets = [0, 96], sizes = [2, 32], strides = [1, 1]} : vector<2x128xf32> to vector<2x32xf32>
    %413 = vector.extract_strided_slice %401 {offsets = [0, 64], sizes = [2, 32], strides = [1, 1]} : vector<2x128xf32> to vector<2x32xf32>
    %cst_127 = arith.constant 2.000000e+00 : f32
    %414 = vector.broadcast %cst_127 : f32 to vector<2x32xf32>
    %415 = arith.mulf %414, %413 : vector<2x32xf32>
    %cst_128 = arith.constant 1.000000e+00 : f32
    %416 = vector.broadcast %cst_128 : f32 to vector<2x32xf32>
    %417 = arith.subf %415, %416 : vector<2x32xf32>
    %418 = arith.mulf %403, %359 : vector<2x32xf32>
    %419 = arith.mulf %402, %409 : vector<2x32xf32>
    %420 = arith.addf %418, %419 : vector<2x32xf32>
    %421 = arith.mulf %411, %362 : vector<2x32xf32>
    %422 = arith.mulf %410, %417 : vector<2x32xf32>
    %423 = arith.addf %421, %422 : vector<2x32xf32>
    %424 = math.tanh %420 : vector<2x32xf32>
    %425 = arith.mulf %404, %424 : vector<2x32xf32>
    %426 = math.tanh %423 : vector<2x32xf32>
    %427 = arith.mulf %412, %426 : vector<2x32xf32>
    %428 = arith.truncf %425 : vector<2x32xf32> to vector<2x32xbf16>
    %429 = arith.index_cast %c6_i32 : i32 to index
    %c0_129 = arith.constant 0 : index
    %c0_130 = arith.constant 0 : index
    %430 = vector.load %arg8[%429, %c0_129, %c0_130] : memref<8x2x32xbf16, #tpu.memory_space<vmem>>, vector<1x2x32xbf16>
    %431 = vector.shape_cast %430 : vector<1x2x32xbf16> to vector<2x32xbf16>
    %432 = vector.shape_cast %428 : vector<2x32xbf16> to vector<1x2x32xbf16>
    tpu.vector_store %arg8[%429, %c0_129, %c0_130], %432 {strides = array<i32>} : memref<8x2x32xbf16, #tpu.memory_space<vmem>>, vector<1x2x32xbf16>,
    %433 = arith.truncf %427 : vector<2x32xf32> to vector<2x32xbf16>
    %434 = arith.index_cast %379 : i32 to index
    %c0_131 = arith.constant 0 : index
    %c0_132 = arith.constant 0 : index
    %435 = vector.load %arg9[%434, %c0_131, %c0_132] : memref<8x2x32xbf16, #tpu.memory_space<vmem>>, vector<1x2x32xbf16>
    %436 = vector.shape_cast %435 : vector<1x2x32xbf16> to vector<2x32xbf16>
    %437 = vector.shape_cast %433 : vector<2x32xbf16> to vector<1x2x32xbf16>
    tpu.vector_store %arg9[%434, %c0_131, %c0_132], %437 {strides = array<i32>} : memref<8x2x32xbf16, #tpu.memory_space<vmem>>, vector<1x2x32xbf16>,
    %438 = arith.truncf %425 : vector<2x32xf32> to vector<2x32xbf16>
    %439 = arith.truncf %427 : vector<2x32xf32> to vector<2x32xbf16>
    %c7_i32_133 = arith.constant 7 : i32
    %c7_i32_134 = arith.constant 7 : i32
    %440 = arith.subi %c7_i32_134, %c7_i32_133 : i32
    %441 = arith.index_cast %c7_i32_133 : i32 to index
    %c0_135 = arith.constant 0 : index
    %c0_136 = arith.constant 0 : index
    %442 = vector.load %arg7[%441, %c0_135, %c0_136] : memref<8x2x256xf32, #tpu.memory_space<vmem>>, vector<1x2x256xf32>
    %443 = vector.shape_cast %442 : vector<1x2x256xf32> to vector<2x256xf32>
    %444 = arith.index_cast %440 : i32 to index
    %c0_137 = arith.constant 0 : index
    %c0_138 = arith.constant 0 : index
    %445 = vector.load %arg7[%444, %c0_137, %c0_138] : memref<8x2x256xf32, #tpu.memory_space<vmem>>, vector<1x2x256xf32>
    %446 = vector.shape_cast %445 : vector<1x2x256xf32> to vector<2x256xf32>
    %447 = vector.extract_strided_slice %443 {offsets = [0, 0], sizes = [2, 128], strides = [1, 1]} : vector<2x256xf32> to vector<2x128xf32>
    %cst_139 = arith.constant dense<0.000000e+00> : vector<2x128xf32>
    %448 = tpu.matmul %438, %9, %cst_139 {dimension_numbers = #tpu.dot_dimension_numbers<[1], [0], [0], [1], [0, 0, 1, 1], [], []>} : vector<2x32xbf16>, vector<32x128xbf16>, vector<2x128xf32> -> vector<2x128xf32>
    %449 = arith.addf %447, %448 : vector<2x128xf32>
    %450 = vector.extract_strided_slice %446 {offsets = [0, 128], sizes = [2, 128], strides = [1, 1]} : vector<2x256xf32> to vector<2x128xf32>
    %cst_140 = arith.constant dense<0.000000e+00> : vector<2x128xf32>
    %451 = tpu.matmul %439, %10, %cst_140 {dimension_numbers = #tpu.dot_dimension_numbers<[1], [0], [0], [1], [0, 0, 1, 1], [], []>} : vector<2x32xbf16>, vector<32x128xbf16>, vector<2x128xf32> -> vector<2x128xf32>
    %452 = arith.addf %450, %451 : vector<2x128xf32>
    %453 = arith.negf %449 : vector<2x128xf32>
    %454 = math.exp %453 : vector<2x128xf32>
    %cst_141 = arith.constant 1.000000e+00 : f32
    %455 = vector.broadcast %cst_141 : f32 to vector<2x128xf32>
    %456 = arith.addf %455, %454 : vector<2x128xf32>
    %457 = arith.divf %455, %456 : vector<2x128xf32>
    %458 = arith.negf %452 : vector<2x128xf32>
    %459 = math.exp %458 : vector<2x128xf32>
    %cst_142 = arith.constant 1.000000e+00 : f32
    %460 = vector.broadcast %cst_142 : f32 to vector<2x128xf32>
    %461 = arith.addf %460, %459 : vector<2x128xf32>
    %462 = arith.divf %460, %461 : vector<2x128xf32>
    %463 = vector.extract_strided_slice %457 {offsets = [0, 0], sizes = [2, 32], strides = [1, 1]} : vector<2x128xf32> to vector<2x32xf32>
    %464 = vector.extract_strided_slice %457 {offsets = [0, 32], sizes = [2, 32], strides = [1, 1]} : vector<2x128xf32> to vector<2x32xf32>
    %465 = vector.extract_strided_slice %457 {offsets = [0, 96], sizes = [2, 32], strides = [1, 1]} : vector<2x128xf32> to vector<2x32xf32>
    %466 = vector.extract_strided_slice %457 {offsets = [0, 64], sizes = [2, 32], strides = [1, 1]} : vector<2x128xf32> to vector<2x32xf32>
    %cst_143 = arith.constant 2.000000e+00 : f32
    %467 = vector.broadcast %cst_143 : f32 to vector<2x32xf32>
    %468 = arith.mulf %467, %466 : vector<2x32xf32>
    %cst_144 = arith.constant 1.000000e+00 : f32
    %469 = vector.broadcast %cst_144 : f32 to vector<2x32xf32>
    %470 = arith.subf %468, %469 : vector<2x32xf32>
    %471 = vector.extract_strided_slice %462 {offsets = [0, 0], sizes = [2, 32], strides = [1, 1]} : vector<2x128xf32> to vector<2x32xf32>
    %472 = vector.extract_strided_slice %462 {offsets = [0, 32], sizes = [2, 32], strides = [1, 1]} : vector<2x128xf32> to vector<2x32xf32>
    %473 = vector.extract_strided_slice %462 {offsets = [0, 96], sizes = [2, 32], strides = [1, 1]} : vector<2x128xf32> to vector<2x32xf32>
    %474 = vector.extract_strided_slice %462 {offsets = [0, 64], sizes = [2, 32], strides = [1, 1]} : vector<2x128xf32> to vector<2x32xf32>
    %cst_145 = arith.constant 2.000000e+00 : f32
    %475 = vector.broadcast %cst_145 : f32 to vector<2x32xf32>
    %476 = arith.mulf %475, %474 : vector<2x32xf32>
    %cst_146 = arith.constant 1.000000e+00 : f32
    %477 = vector.broadcast %cst_146 : f32 to vector<2x32xf32>
    %478 = arith.subf %476, %477 : vector<2x32xf32>
    %479 = arith.mulf %464, %420 : vector<2x32xf32>
    %480 = arith.mulf %463, %470 : vector<2x32xf32>
    %481 = arith.addf %479, %480 : vector<2x32xf32>
    %482 = arith.mulf %472, %423 : vector<2x32xf32>
    %483 = arith.mulf %471, %478 : vector<2x32xf32>
    %484 = arith.addf %482, %483 : vector<2x32xf32>
    %485 = math.tanh %481 : vector<2x32xf32>
    %486 = arith.mulf %465, %485 : vector<2x32xf32>
    %487 = math.tanh %484 : vector<2x32xf32>
    %488 = arith.mulf %473, %487 : vector<2x32xf32>
    %489 = arith.truncf %486 : vector<2x32xf32> to vector<2x32xbf16>
    %490 = arith.index_cast %c7_i32_133 : i32 to index
    %c0_147 = arith.constant 0 : index
    %c0_148 = arith.constant 0 : index
    %491 = vector.load %arg8[%490, %c0_147, %c0_148] : memref<8x2x32xbf16, #tpu.memory_space<vmem>>, vector<1x2x32xbf16>
    %492 = vector.shape_cast %491 : vector<1x2x32xbf16> to vector<2x32xbf16>
    %493 = vector.shape_cast %489 : vector<2x32xbf16> to vector<1x2x32xbf16>
    tpu.vector_store %arg8[%490, %c0_147, %c0_148], %493 {strides = array<i32>} : memref<8x2x32xbf16, #tpu.memory_space<vmem>>, vector<1x2x32xbf16>,
    %494 = arith.truncf %488 : vector<2x32xf32> to vector<2x32xbf16>
    %495 = arith.index_cast %440 : i32 to index
    %c0_149 = arith.constant 0 : index
    %c0_150 = arith.constant 0 : index
    %496 = vector.load %arg9[%495, %c0_149, %c0_150] : memref<8x2x32xbf16, #tpu.memory_space<vmem>>, vector<1x2x32xbf16>
    %497 = vector.shape_cast %496 : vector<1x2x32xbf16> to vector<2x32xbf16>
    %498 = vector.shape_cast %494 : vector<2x32xbf16> to vector<1x2x32xbf16>
    tpu.vector_store %arg9[%495, %c0_149, %c0_150], %498 {strides = array<i32>} : memref<8x2x32xbf16, #tpu.memory_space<vmem>>, vector<1x2x32xbf16>,
    %499 = arith.truncf %486 : vector<2x32xf32> to vector<2x32xbf16>
    %500 = arith.truncf %488 : vector<2x32xf32> to vector<2x32xbf16>
    %c8_i32 = arith.constant 8 : i32
    %c0_151 = arith.constant 0 : index
    %c0_152 = arith.constant 0 : index
    %c0_153 = arith.constant 0 : index
    %501 = vector.load %arg8[%c0_151, %c0_152, %c0_153] : memref<8x2x32xbf16, #tpu.memory_space<vmem>>, vector<8x2x32xbf16>
    %c0_154 = arith.constant 0 : index
    %c0_155 = arith.constant 0 : index
    %c0_156 = arith.constant 0 : index
    %502 = vector.load %arg6[%c0_154, %c0_155, %c0_156] : memref<8x2x64xbf16, #tpu.memory_space<vmem>>, vector<8x2x32xbf16>
    tpu.vector_store %arg6[%c0_154, %c0_155, %c0_156], %501 {strides = array<i32>} : memref<8x2x64xbf16, #tpu.memory_space<vmem>>, vector<8x2x32xbf16>,
    %c0_157 = arith.constant 0 : index
    %c0_158 = arith.constant 0 : index
    %c0_159 = arith.constant 0 : index
    %503 = vector.load %arg9[%c0_157, %c0_158, %c0_159] : memref<8x2x32xbf16, #tpu.memory_space<vmem>>, vector<8x2x32xbf16>
    %c0_160 = arith.constant 0 : index
    %c0_161 = arith.constant 0 : index
    %c32 = arith.constant 32 : index
    %504 = vector.load %arg6[%c0_160, %c0_161, %c32] : memref<8x2x64xbf16, #tpu.memory_space<vmem>>, vector<8x2x32xbf16>
    tpu.vector_store %arg6[%c0_160, %c0_161, %c32], %503 {strides = array<i32>} : memref<8x2x64xbf16, #tpu.memory_space<vmem>>, vector<8x2x32xbf16>,
    return
  }
  func.func @transform_0(%arg0: i32) -> (i32, i32, i32) {
    %c0_i32 = arith.constant 0 : i32
    %c0_i32_0 = arith.constant 0 : i32
    %c0_i32_1 = arith.constant 0 : i32
    %c0_i32_2 = arith.constant 0 : i32
    return %c0_i32, %c0_i32_0, %c0_i32_1 : i32, i32, i32
  }
  func.func @transform_1(%arg0: i32) -> (i32, i32) {
    %c0_i32 = arith.constant 0 : i32
    %c0_i32_0 = arith.constant 0 : i32
    %c0_i32_1 = arith.constant 0 : i32
    return %c0_i32, %c0_i32_0 : i32, i32
  }
  func.func @transform_2(%arg0: i32) -> (i32, i32) {
    %c0_i32 = arith.constant 0 : i32
    %c0_i32_0 = arith.constant 0 : i32
    %c0_i32_1 = arith.constant 0 : i32
    return %c0_i32, %c0_i32_0 : i32, i32
  }
  func.func @transform_3(%arg0: i32) -> (i32, i32) {
    %c0_i32 = arith.constant 0 : i32
    %c0_i32_0 = arith.constant 0 : i32
    %c0_i32_1 = arith.constant 0 : i32
    return %c0_i32, %c0_i32_0 : i32, i32
  }
  func.func @transform_4(%arg0: i32) -> (i32, i32) {
    %c0_i32 = arith.constant 0 : i32
    %c0_i32_0 = arith.constant 0 : i32
    %c0_i32_1 = arith.constant 0 : i32
    return %c0_i32, %c0_i32_0 : i32, i32
  }
  func.func @transform_5(%arg0: i32) -> (i32, i32, i32) {
    %c0_i32 = arith.constant 0 : i32
    %c0_i32_0 = arith.constant 0 : i32
    %c0_i32_1 = arith.constant 0 : i32
    %c0_i32_2 = arith.constant 0 : i32
    return %c0_i32, %c0_i32_0, %c0_i32_1 : i32, i32, i32
  }
}

module attributes {stable_mosaic.version = 11 : i64} {
  func.func @_bidir_lstm_final_head_kernel(%arg0: i32, %arg1: memref<8x2x64xbf16, #tpu.memory_space<vmem>>, %arg2: memref<64x256xbf16, #tpu.memory_space<vmem>>, %arg3: memref<32x128xbf16, #tpu.memory_space<vmem>>, %arg4: memref<32x128xbf16, #tpu.memory_space<vmem>>, %arg5: memref<1x256xf32, #tpu.memory_space<vmem>>, %arg6: memref<64x100xf32, #tpu.memory_space<vmem>>, %arg7: memref<1x100xf32, #tpu.memory_space<vmem>>, %arg8: memref<100x2xf32, #tpu.memory_space<vmem>>, %arg9: memref<1x2xf32, #tpu.memory_space<vmem>>, %arg10: memref<2x2xf32, #tpu.memory_space<vmem>>, %arg11: memref<8x2x256xf32, #tpu.memory_space<vmem>>) attributes {dimension_semantics = [#tpu.dimension_semantics<arbitrary>], iteration_bounds = array<i64: 1>, scalar_prefetch = 0 : i64, scratch_operands = 1 : i64, tpu.core_type = #tpu.core_type<tc>, window_params = [{pipeline_mode = #tpu.pipeline_mode<synchronous>, transform_indices = @transform_0, window_bounds = array<i64: 8, 2, 64>}, {pipeline_mode = #tpu.pipeline_mode<synchronous>, transform_indices = @transform_1, window_bounds = array<i64: 64, 256>}, {pipeline_mode = #tpu.pipeline_mode<synchronous>, transform_indices = @transform_2, window_bounds = array<i64: 32, 128>}, {pipeline_mode = #tpu.pipeline_mode<synchronous>, transform_indices = @transform_3, window_bounds = array<i64: 32, 128>}, {pipeline_mode = #tpu.pipeline_mode<synchronous>, transform_indices = @transform_4, window_bounds = array<i64: 1, 256>}, {pipeline_mode = #tpu.pipeline_mode<synchronous>, transform_indices = @transform_5, window_bounds = array<i64: 64, 100>}, {pipeline_mode = #tpu.pipeline_mode<synchronous>, transform_indices = @transform_6, window_bounds = array<i64: 1, 100>}, {pipeline_mode = #tpu.pipeline_mode<synchronous>, transform_indices = @transform_7, window_bounds = array<i64: 100, 2>}, {pipeline_mode = #tpu.pipeline_mode<synchronous>, transform_indices = @transform_8, window_bounds = array<i64: 1, 2>}, {pipeline_mode = #tpu.pipeline_mode<synchronous>, transform_indices = @transform_9, window_bounds = array<i64: 2, 2>}]} {
    %c0 = arith.constant 0 : index
    %c0_0 = arith.constant 0 : index
    %c0_1 = arith.constant 0 : index
    %0 = vector.load %arg1[%c0, %c0_0, %c0_1] : memref<8x2x64xbf16, #tpu.memory_space<vmem>>, vector<8x2x64xbf16>
    %1 = vector.shape_cast %0 : vector<8x2x64xbf16> to vector<16x64xbf16>
    %c0_2 = arith.constant 0 : index
    %c0_3 = arith.constant 0 : index
    %2 = vector.load %arg2[%c0_2, %c0_3] : memref<64x256xbf16, #tpu.memory_space<vmem>>, vector<64x256xbf16>
    %cst = arith.constant dense<0.000000e+00> : vector<16x256xf32>
    %3 = tpu.matmul %1, %2, %cst {dimension_numbers = #tpu.dot_dimension_numbers<[1], [0], [0], [1], [0, 0, 1, 1], [], []>} : vector<16x64xbf16>, vector<64x256xbf16>, vector<16x256xf32> -> vector<16x256xf32>
    %c0_4 = arith.constant 0 : index
    %c0_5 = arith.constant 0 : index
    %4 = vector.load %arg5[%c0_4, %c0_5] : memref<1x256xf32, #tpu.memory_space<vmem>>, vector<1x256xf32>
    %5 = vector.broadcast %4 : vector<1x256xf32> to vector<16x256xf32>
    %6 = arith.addf %3, %5 : vector<16x256xf32>
    %7 = vector.shape_cast %6 : vector<16x256xf32> to vector<8x2x256xf32>
    %c0_6 = arith.constant 0 : index
    %c0_7 = arith.constant 0 : index
    %c0_8 = arith.constant 0 : index
    %8 = vector.load %arg11[%c0_6, %c0_7, %c0_8] : memref<8x2x256xf32, #tpu.memory_space<vmem>>, vector<8x2x256xf32>
    tpu.vector_store %arg11[%c0_6, %c0_7, %c0_8], %7 {strides = array<i32>} : memref<8x2x256xf32, #tpu.memory_space<vmem>>, vector<8x2x256xf32>,
    %c0_9 = arith.constant 0 : index
    %c0_10 = arith.constant 0 : index
    %9 = vector.load %arg3[%c0_9, %c0_10] : memref<32x128xbf16, #tpu.memory_space<vmem>>, vector<32x128xbf16>
    %c0_11 = arith.constant 0 : index
    %c0_12 = arith.constant 0 : index
    %10 = vector.load %arg4[%c0_11, %c0_12] : memref<32x128xbf16, #tpu.memory_space<vmem>>, vector<32x128xbf16>
    %cst_13 = arith.constant 0.000000e+00 : bf16
    %11 = vector.broadcast %cst_13 : bf16 to vector<2x32xbf16>
    %cst_14 = arith.constant 0.000000e+00 : f32
    %12 = vector.broadcast %cst_14 : f32 to vector<2x32xf32>
    %c0_i32 = arith.constant 0 : i32
    %c7_i32 = arith.constant 7 : i32
    %13 = arith.subi %c7_i32, %c0_i32 : i32
    %14 = arith.index_cast %c0_i32 : i32 to index
    %c0_15 = arith.constant 0 : index
    %c0_16 = arith.constant 0 : index
    %15 = vector.load %arg11[%14, %c0_15, %c0_16] : memref<8x2x256xf32, #tpu.memory_space<vmem>>, vector<1x2x256xf32>
    %16 = vector.shape_cast %15 : vector<1x2x256xf32> to vector<2x256xf32>
    %17 = arith.index_cast %13 : i32 to index
    %c0_17 = arith.constant 0 : index
    %c0_18 = arith.constant 0 : index
    %18 = vector.load %arg11[%17, %c0_17, %c0_18] : memref<8x2x256xf32, #tpu.memory_space<vmem>>, vector<1x2x256xf32>
    %19 = vector.shape_cast %18 : vector<1x2x256xf32> to vector<2x256xf32>
    %20 = vector.extract_strided_slice %16 {offsets = [0, 0], sizes = [2, 128], strides = [1, 1]} : vector<2x256xf32> to vector<2x128xf32>
    %cst_19 = arith.constant dense<0.000000e+00> : vector<2x128xf32>
    %21 = tpu.matmul %11, %9, %cst_19 {dimension_numbers = #tpu.dot_dimension_numbers<[1], [0], [0], [1], [0, 0, 1, 1], [], []>} : vector<2x32xbf16>, vector<32x128xbf16>, vector<2x128xf32> -> vector<2x128xf32>
    %22 = arith.addf %20, %21 : vector<2x128xf32>
    %23 = vector.extract_strided_slice %19 {offsets = [0, 128], sizes = [2, 128], strides = [1, 1]} : vector<2x256xf32> to vector<2x128xf32>
    %cst_20 = arith.constant dense<0.000000e+00> : vector<2x128xf32>
    %24 = tpu.matmul %11, %10, %cst_20 {dimension_numbers = #tpu.dot_dimension_numbers<[1], [0], [0], [1], [0, 0, 1, 1], [], []>} : vector<2x32xbf16>, vector<32x128xbf16>, vector<2x128xf32> -> vector<2x128xf32>
    %25 = arith.addf %23, %24 : vector<2x128xf32>
    %26 = arith.negf %22 : vector<2x128xf32>
    %27 = math.exp %26 : vector<2x128xf32>
    %cst_21 = arith.constant 1.000000e+00 : f32
    %28 = vector.broadcast %cst_21 : f32 to vector<2x128xf32>
    %29 = arith.addf %28, %27 : vector<2x128xf32>
    %30 = arith.divf %28, %29 : vector<2x128xf32>
    %31 = arith.negf %25 : vector<2x128xf32>
    %32 = math.exp %31 : vector<2x128xf32>
    %cst_22 = arith.constant 1.000000e+00 : f32
    %33 = vector.broadcast %cst_22 : f32 to vector<2x128xf32>
    %34 = arith.addf %33, %32 : vector<2x128xf32>
    %35 = arith.divf %33, %34 : vector<2x128xf32>
    %36 = vector.extract_strided_slice %30 {offsets = [0, 0], sizes = [2, 32], strides = [1, 1]} : vector<2x128xf32> to vector<2x32xf32>
    %37 = vector.extract_strided_slice %30 {offsets = [0, 32], sizes = [2, 32], strides = [1, 1]} : vector<2x128xf32> to vector<2x32xf32>
    %38 = vector.extract_strided_slice %30 {offsets = [0, 96], sizes = [2, 32], strides = [1, 1]} : vector<2x128xf32> to vector<2x32xf32>
    %39 = vector.extract_strided_slice %30 {offsets = [0, 64], sizes = [2, 32], strides = [1, 1]} : vector<2x128xf32> to vector<2x32xf32>
    %cst_23 = arith.constant 2.000000e+00 : f32
    %40 = vector.broadcast %cst_23 : f32 to vector<2x32xf32>
    %41 = arith.mulf %40, %39 : vector<2x32xf32>
    %cst_24 = arith.constant 1.000000e+00 : f32
    %42 = vector.broadcast %cst_24 : f32 to vector<2x32xf32>
    %43 = arith.subf %41, %42 : vector<2x32xf32>
    %44 = vector.extract_strided_slice %35 {offsets = [0, 0], sizes = [2, 32], strides = [1, 1]} : vector<2x128xf32> to vector<2x32xf32>
    %45 = vector.extract_strided_slice %35 {offsets = [0, 32], sizes = [2, 32], strides = [1, 1]} : vector<2x128xf32> to vector<2x32xf32>
    %46 = vector.extract_strided_slice %35 {offsets = [0, 96], sizes = [2, 32], strides = [1, 1]} : vector<2x128xf32> to vector<2x32xf32>
    %47 = vector.extract_strided_slice %35 {offsets = [0, 64], sizes = [2, 32], strides = [1, 1]} : vector<2x128xf32> to vector<2x32xf32>
    %cst_25 = arith.constant 2.000000e+00 : f32
    %48 = vector.broadcast %cst_25 : f32 to vector<2x32xf32>
    %49 = arith.mulf %48, %47 : vector<2x32xf32>
    %cst_26 = arith.constant 1.000000e+00 : f32
    %50 = vector.broadcast %cst_26 : f32 to vector<2x32xf32>
    %51 = arith.subf %49, %50 : vector<2x32xf32>
    %52 = arith.mulf %37, %12 : vector<2x32xf32>
    %53 = arith.mulf %36, %43 : vector<2x32xf32>
    %54 = arith.addf %52, %53 : vector<2x32xf32>
    %55 = arith.mulf %45, %12 : vector<2x32xf32>
    %56 = arith.mulf %44, %51 : vector<2x32xf32>
    %57 = arith.addf %55, %56 : vector<2x32xf32>
    %58 = math.tanh %54 : vector<2x32xf32>
    %59 = arith.mulf %38, %58 : vector<2x32xf32>
    %60 = math.tanh %57 : vector<2x32xf32>
    %61 = arith.mulf %46, %60 : vector<2x32xf32>
    %62 = arith.truncf %59 : vector<2x32xf32> to vector<2x32xbf16>
    %63 = arith.truncf %61 : vector<2x32xf32> to vector<2x32xbf16>
    %c1_i32 = arith.constant 1 : i32
    %c7_i32_27 = arith.constant 7 : i32
    %64 = arith.subi %c7_i32_27, %c1_i32 : i32
    %65 = arith.index_cast %c1_i32 : i32 to index
    %c0_28 = arith.constant 0 : index
    %c0_29 = arith.constant 0 : index
    %66 = vector.load %arg11[%65, %c0_28, %c0_29] : memref<8x2x256xf32, #tpu.memory_space<vmem>>, vector<1x2x256xf32>
    %67 = vector.shape_cast %66 : vector<1x2x256xf32> to vector<2x256xf32>
    %68 = arith.index_cast %64 : i32 to index
    %c0_30 = arith.constant 0 : index
    %c0_31 = arith.constant 0 : index
    %69 = vector.load %arg11[%68, %c0_30, %c0_31] : memref<8x2x256xf32, #tpu.memory_space<vmem>>, vector<1x2x256xf32>
    %70 = vector.shape_cast %69 : vector<1x2x256xf32> to vector<2x256xf32>
    %71 = vector.extract_strided_slice %67 {offsets = [0, 0], sizes = [2, 128], strides = [1, 1]} : vector<2x256xf32> to vector<2x128xf32>
    %cst_32 = arith.constant dense<0.000000e+00> : vector<2x128xf32>
    %72 = tpu.matmul %62, %9, %cst_32 {dimension_numbers = #tpu.dot_dimension_numbers<[1], [0], [0], [1], [0, 0, 1, 1], [], []>} : vector<2x32xbf16>, vector<32x128xbf16>, vector<2x128xf32> -> vector<2x128xf32>
    %73 = arith.addf %71, %72 : vector<2x128xf32>
    %74 = vector.extract_strided_slice %70 {offsets = [0, 128], sizes = [2, 128], strides = [1, 1]} : vector<2x256xf32> to vector<2x128xf32>
    %cst_33 = arith.constant dense<0.000000e+00> : vector<2x128xf32>
    %75 = tpu.matmul %63, %10, %cst_33 {dimension_numbers = #tpu.dot_dimension_numbers<[1], [0], [0], [1], [0, 0, 1, 1], [], []>} : vector<2x32xbf16>, vector<32x128xbf16>, vector<2x128xf32> -> vector<2x128xf32>
    %76 = arith.addf %74, %75 : vector<2x128xf32>
    %77 = arith.negf %73 : vector<2x128xf32>
    %78 = math.exp %77 : vector<2x128xf32>
    %cst_34 = arith.constant 1.000000e+00 : f32
    %79 = vector.broadcast %cst_34 : f32 to vector<2x128xf32>
    %80 = arith.addf %79, %78 : vector<2x128xf32>
    %81 = arith.divf %79, %80 : vector<2x128xf32>
    %82 = arith.negf %76 : vector<2x128xf32>
    %83 = math.exp %82 : vector<2x128xf32>
    %cst_35 = arith.constant 1.000000e+00 : f32
    %84 = vector.broadcast %cst_35 : f32 to vector<2x128xf32>
    %85 = arith.addf %84, %83 : vector<2x128xf32>
    %86 = arith.divf %84, %85 : vector<2x128xf32>
    %87 = vector.extract_strided_slice %81 {offsets = [0, 0], sizes = [2, 32], strides = [1, 1]} : vector<2x128xf32> to vector<2x32xf32>
    %88 = vector.extract_strided_slice %81 {offsets = [0, 32], sizes = [2, 32], strides = [1, 1]} : vector<2x128xf32> to vector<2x32xf32>
    %89 = vector.extract_strided_slice %81 {offsets = [0, 96], sizes = [2, 32], strides = [1, 1]} : vector<2x128xf32> to vector<2x32xf32>
    %90 = vector.extract_strided_slice %81 {offsets = [0, 64], sizes = [2, 32], strides = [1, 1]} : vector<2x128xf32> to vector<2x32xf32>
    %cst_36 = arith.constant 2.000000e+00 : f32
    %91 = vector.broadcast %cst_36 : f32 to vector<2x32xf32>
    %92 = arith.mulf %91, %90 : vector<2x32xf32>
    %cst_37 = arith.constant 1.000000e+00 : f32
    %93 = vector.broadcast %cst_37 : f32 to vector<2x32xf32>
    %94 = arith.subf %92, %93 : vector<2x32xf32>
    %95 = vector.extract_strided_slice %86 {offsets = [0, 0], sizes = [2, 32], strides = [1, 1]} : vector<2x128xf32> to vector<2x32xf32>
    %96 = vector.extract_strided_slice %86 {offsets = [0, 32], sizes = [2, 32], strides = [1, 1]} : vector<2x128xf32> to vector<2x32xf32>
    %97 = vector.extract_strided_slice %86 {offsets = [0, 96], sizes = [2, 32], strides = [1, 1]} : vector<2x128xf32> to vector<2x32xf32>
    %98 = vector.extract_strided_slice %86 {offsets = [0, 64], sizes = [2, 32], strides = [1, 1]} : vector<2x128xf32> to vector<2x32xf32>
    %cst_38 = arith.constant 2.000000e+00 : f32
    %99 = vector.broadcast %cst_38 : f32 to vector<2x32xf32>
    %100 = arith.mulf %99, %98 : vector<2x32xf32>
    %cst_39 = arith.constant 1.000000e+00 : f32
    %101 = vector.broadcast %cst_39 : f32 to vector<2x32xf32>
    %102 = arith.subf %100, %101 : vector<2x32xf32>
    %103 = arith.mulf %88, %54 : vector<2x32xf32>
    %104 = arith.mulf %87, %94 : vector<2x32xf32>
    %105 = arith.addf %103, %104 : vector<2x32xf32>
    %106 = arith.mulf %96, %57 : vector<2x32xf32>
    %107 = arith.mulf %95, %102 : vector<2x32xf32>
    %108 = arith.addf %106, %107 : vector<2x32xf32>
    %109 = math.tanh %105 : vector<2x32xf32>
    %110 = arith.mulf %89, %109 : vector<2x32xf32>
    %111 = math.tanh %108 : vector<2x32xf32>
    %112 = arith.mulf %97, %111 : vector<2x32xf32>
    %113 = arith.truncf %110 : vector<2x32xf32> to vector<2x32xbf16>
    %114 = arith.truncf %112 : vector<2x32xf32> to vector<2x32xbf16>
    %c2_i32 = arith.constant 2 : i32
    %c7_i32_40 = arith.constant 7 : i32
    %115 = arith.subi %c7_i32_40, %c2_i32 : i32
    %116 = arith.index_cast %c2_i32 : i32 to index
    %c0_41 = arith.constant 0 : index
    %c0_42 = arith.constant 0 : index
    %117 = vector.load %arg11[%116, %c0_41, %c0_42] : memref<8x2x256xf32, #tpu.memory_space<vmem>>, vector<1x2x256xf32>
    %118 = vector.shape_cast %117 : vector<1x2x256xf32> to vector<2x256xf32>
    %119 = arith.index_cast %115 : i32 to index
    %c0_43 = arith.constant 0 : index
    %c0_44 = arith.constant 0 : index
    %120 = vector.load %arg11[%119, %c0_43, %c0_44] : memref<8x2x256xf32, #tpu.memory_space<vmem>>, vector<1x2x256xf32>
    %121 = vector.shape_cast %120 : vector<1x2x256xf32> to vector<2x256xf32>
    %122 = vector.extract_strided_slice %118 {offsets = [0, 0], sizes = [2, 128], strides = [1, 1]} : vector<2x256xf32> to vector<2x128xf32>
    %cst_45 = arith.constant dense<0.000000e+00> : vector<2x128xf32>
    %123 = tpu.matmul %113, %9, %cst_45 {dimension_numbers = #tpu.dot_dimension_numbers<[1], [0], [0], [1], [0, 0, 1, 1], [], []>} : vector<2x32xbf16>, vector<32x128xbf16>, vector<2x128xf32> -> vector<2x128xf32>
    %124 = arith.addf %122, %123 : vector<2x128xf32>
    %125 = vector.extract_strided_slice %121 {offsets = [0, 128], sizes = [2, 128], strides = [1, 1]} : vector<2x256xf32> to vector<2x128xf32>
    %cst_46 = arith.constant dense<0.000000e+00> : vector<2x128xf32>
    %126 = tpu.matmul %114, %10, %cst_46 {dimension_numbers = #tpu.dot_dimension_numbers<[1], [0], [0], [1], [0, 0, 1, 1], [], []>} : vector<2x32xbf16>, vector<32x128xbf16>, vector<2x128xf32> -> vector<2x128xf32>
    %127 = arith.addf %125, %126 : vector<2x128xf32>
    %128 = arith.negf %124 : vector<2x128xf32>
    %129 = math.exp %128 : vector<2x128xf32>
    %cst_47 = arith.constant 1.000000e+00 : f32
    %130 = vector.broadcast %cst_47 : f32 to vector<2x128xf32>
    %131 = arith.addf %130, %129 : vector<2x128xf32>
    %132 = arith.divf %130, %131 : vector<2x128xf32>
    %133 = arith.negf %127 : vector<2x128xf32>
    %134 = math.exp %133 : vector<2x128xf32>
    %cst_48 = arith.constant 1.000000e+00 : f32
    %135 = vector.broadcast %cst_48 : f32 to vector<2x128xf32>
    %136 = arith.addf %135, %134 : vector<2x128xf32>
    %137 = arith.divf %135, %136 : vector<2x128xf32>
    %138 = vector.extract_strided_slice %132 {offsets = [0, 0], sizes = [2, 32], strides = [1, 1]} : vector<2x128xf32> to vector<2x32xf32>
    %139 = vector.extract_strided_slice %132 {offsets = [0, 32], sizes = [2, 32], strides = [1, 1]} : vector<2x128xf32> to vector<2x32xf32>
    %140 = vector.extract_strided_slice %132 {offsets = [0, 96], sizes = [2, 32], strides = [1, 1]} : vector<2x128xf32> to vector<2x32xf32>
    %141 = vector.extract_strided_slice %132 {offsets = [0, 64], sizes = [2, 32], strides = [1, 1]} : vector<2x128xf32> to vector<2x32xf32>
    %cst_49 = arith.constant 2.000000e+00 : f32
    %142 = vector.broadcast %cst_49 : f32 to vector<2x32xf32>
    %143 = arith.mulf %142, %141 : vector<2x32xf32>
    %cst_50 = arith.constant 1.000000e+00 : f32
    %144 = vector.broadcast %cst_50 : f32 to vector<2x32xf32>
    %145 = arith.subf %143, %144 : vector<2x32xf32>
    %146 = vector.extract_strided_slice %137 {offsets = [0, 0], sizes = [2, 32], strides = [1, 1]} : vector<2x128xf32> to vector<2x32xf32>
    %147 = vector.extract_strided_slice %137 {offsets = [0, 32], sizes = [2, 32], strides = [1, 1]} : vector<2x128xf32> to vector<2x32xf32>
    %148 = vector.extract_strided_slice %137 {offsets = [0, 96], sizes = [2, 32], strides = [1, 1]} : vector<2x128xf32> to vector<2x32xf32>
    %149 = vector.extract_strided_slice %137 {offsets = [0, 64], sizes = [2, 32], strides = [1, 1]} : vector<2x128xf32> to vector<2x32xf32>
    %cst_51 = arith.constant 2.000000e+00 : f32
    %150 = vector.broadcast %cst_51 : f32 to vector<2x32xf32>
    %151 = arith.mulf %150, %149 : vector<2x32xf32>
    %cst_52 = arith.constant 1.000000e+00 : f32
    %152 = vector.broadcast %cst_52 : f32 to vector<2x32xf32>
    %153 = arith.subf %151, %152 : vector<2x32xf32>
    %154 = arith.mulf %139, %105 : vector<2x32xf32>
    %155 = arith.mulf %138, %145 : vector<2x32xf32>
    %156 = arith.addf %154, %155 : vector<2x32xf32>
    %157 = arith.mulf %147, %108 : vector<2x32xf32>
    %158 = arith.mulf %146, %153 : vector<2x32xf32>
    %159 = arith.addf %157, %158 : vector<2x32xf32>
    %160 = math.tanh %156 : vector<2x32xf32>
    %161 = arith.mulf %140, %160 : vector<2x32xf32>
    %162 = math.tanh %159 : vector<2x32xf32>
    %163 = arith.mulf %148, %162 : vector<2x32xf32>
    %164 = arith.truncf %161 : vector<2x32xf32> to vector<2x32xbf16>
    %165 = arith.truncf %163 : vector<2x32xf32> to vector<2x32xbf16>
    %c3_i32 = arith.constant 3 : i32
    %c7_i32_53 = arith.constant 7 : i32
    %166 = arith.subi %c7_i32_53, %c3_i32 : i32
    %167 = arith.index_cast %c3_i32 : i32 to index
    %c0_54 = arith.constant 0 : index
    %c0_55 = arith.constant 0 : index
    %168 = vector.load %arg11[%167, %c0_54, %c0_55] : memref<8x2x256xf32, #tpu.memory_space<vmem>>, vector<1x2x256xf32>
    %169 = vector.shape_cast %168 : vector<1x2x256xf32> to vector<2x256xf32>
    %170 = arith.index_cast %166 : i32 to index
    %c0_56 = arith.constant 0 : index
    %c0_57 = arith.constant 0 : index
    %171 = vector.load %arg11[%170, %c0_56, %c0_57] : memref<8x2x256xf32, #tpu.memory_space<vmem>>, vector<1x2x256xf32>
    %172 = vector.shape_cast %171 : vector<1x2x256xf32> to vector<2x256xf32>
    %173 = vector.extract_strided_slice %169 {offsets = [0, 0], sizes = [2, 128], strides = [1, 1]} : vector<2x256xf32> to vector<2x128xf32>
    %cst_58 = arith.constant dense<0.000000e+00> : vector<2x128xf32>
    %174 = tpu.matmul %164, %9, %cst_58 {dimension_numbers = #tpu.dot_dimension_numbers<[1], [0], [0], [1], [0, 0, 1, 1], [], []>} : vector<2x32xbf16>, vector<32x128xbf16>, vector<2x128xf32> -> vector<2x128xf32>
    %175 = arith.addf %173, %174 : vector<2x128xf32>
    %176 = vector.extract_strided_slice %172 {offsets = [0, 128], sizes = [2, 128], strides = [1, 1]} : vector<2x256xf32> to vector<2x128xf32>
    %cst_59 = arith.constant dense<0.000000e+00> : vector<2x128xf32>
    %177 = tpu.matmul %165, %10, %cst_59 {dimension_numbers = #tpu.dot_dimension_numbers<[1], [0], [0], [1], [0, 0, 1, 1], [], []>} : vector<2x32xbf16>, vector<32x128xbf16>, vector<2x128xf32> -> vector<2x128xf32>
    %178 = arith.addf %176, %177 : vector<2x128xf32>
    %179 = arith.negf %175 : vector<2x128xf32>
    %180 = math.exp %179 : vector<2x128xf32>
    %cst_60 = arith.constant 1.000000e+00 : f32
    %181 = vector.broadcast %cst_60 : f32 to vector<2x128xf32>
    %182 = arith.addf %181, %180 : vector<2x128xf32>
    %183 = arith.divf %181, %182 : vector<2x128xf32>
    %184 = arith.negf %178 : vector<2x128xf32>
    %185 = math.exp %184 : vector<2x128xf32>
    %cst_61 = arith.constant 1.000000e+00 : f32
    %186 = vector.broadcast %cst_61 : f32 to vector<2x128xf32>
    %187 = arith.addf %186, %185 : vector<2x128xf32>
    %188 = arith.divf %186, %187 : vector<2x128xf32>
    %189 = vector.extract_strided_slice %183 {offsets = [0, 0], sizes = [2, 32], strides = [1, 1]} : vector<2x128xf32> to vector<2x32xf32>
    %190 = vector.extract_strided_slice %183 {offsets = [0, 32], sizes = [2, 32], strides = [1, 1]} : vector<2x128xf32> to vector<2x32xf32>
    %191 = vector.extract_strided_slice %183 {offsets = [0, 96], sizes = [2, 32], strides = [1, 1]} : vector<2x128xf32> to vector<2x32xf32>
    %192 = vector.extract_strided_slice %183 {offsets = [0, 64], sizes = [2, 32], strides = [1, 1]} : vector<2x128xf32> to vector<2x32xf32>
    %cst_62 = arith.constant 2.000000e+00 : f32
    %193 = vector.broadcast %cst_62 : f32 to vector<2x32xf32>
    %194 = arith.mulf %193, %192 : vector<2x32xf32>
    %cst_63 = arith.constant 1.000000e+00 : f32
    %195 = vector.broadcast %cst_63 : f32 to vector<2x32xf32>
    %196 = arith.subf %194, %195 : vector<2x32xf32>
    %197 = vector.extract_strided_slice %188 {offsets = [0, 0], sizes = [2, 32], strides = [1, 1]} : vector<2x128xf32> to vector<2x32xf32>
    %198 = vector.extract_strided_slice %188 {offsets = [0, 32], sizes = [2, 32], strides = [1, 1]} : vector<2x128xf32> to vector<2x32xf32>
    %199 = vector.extract_strided_slice %188 {offsets = [0, 96], sizes = [2, 32], strides = [1, 1]} : vector<2x128xf32> to vector<2x32xf32>
    %200 = vector.extract_strided_slice %188 {offsets = [0, 64], sizes = [2, 32], strides = [1, 1]} : vector<2x128xf32> to vector<2x32xf32>
    %cst_64 = arith.constant 2.000000e+00 : f32
    %201 = vector.broadcast %cst_64 : f32 to vector<2x32xf32>
    %202 = arith.mulf %201, %200 : vector<2x32xf32>
    %cst_65 = arith.constant 1.000000e+00 : f32
    %203 = vector.broadcast %cst_65 : f32 to vector<2x32xf32>
    %204 = arith.subf %202, %203 : vector<2x32xf32>
    %205 = arith.mulf %190, %156 : vector<2x32xf32>
    %206 = arith.mulf %189, %196 : vector<2x32xf32>
    %207 = arith.addf %205, %206 : vector<2x32xf32>
    %208 = arith.mulf %198, %159 : vector<2x32xf32>
    %209 = arith.mulf %197, %204 : vector<2x32xf32>
    %210 = arith.addf %208, %209 : vector<2x32xf32>
    %211 = math.tanh %207 : vector<2x32xf32>
    %212 = arith.mulf %191, %211 : vector<2x32xf32>
    %213 = math.tanh %210 : vector<2x32xf32>
    %214 = arith.mulf %199, %213 : vector<2x32xf32>
    %215 = arith.truncf %212 : vector<2x32xf32> to vector<2x32xbf16>
    %216 = arith.truncf %214 : vector<2x32xf32> to vector<2x32xbf16>
    %c4_i32 = arith.constant 4 : i32
    %c7_i32_66 = arith.constant 7 : i32
    %217 = arith.subi %c7_i32_66, %c4_i32 : i32
    %218 = arith.index_cast %c4_i32 : i32 to index
    %c0_67 = arith.constant 0 : index
    %c0_68 = arith.constant 0 : index
    %219 = vector.load %arg11[%218, %c0_67, %c0_68] : memref<8x2x256xf32, #tpu.memory_space<vmem>>, vector<1x2x256xf32>
    %220 = vector.shape_cast %219 : vector<1x2x256xf32> to vector<2x256xf32>
    %221 = arith.index_cast %217 : i32 to index
    %c0_69 = arith.constant 0 : index
    %c0_70 = arith.constant 0 : index
    %222 = vector.load %arg11[%221, %c0_69, %c0_70] : memref<8x2x256xf32, #tpu.memory_space<vmem>>, vector<1x2x256xf32>
    %223 = vector.shape_cast %222 : vector<1x2x256xf32> to vector<2x256xf32>
    %224 = vector.extract_strided_slice %220 {offsets = [0, 0], sizes = [2, 128], strides = [1, 1]} : vector<2x256xf32> to vector<2x128xf32>
    %cst_71 = arith.constant dense<0.000000e+00> : vector<2x128xf32>
    %225 = tpu.matmul %215, %9, %cst_71 {dimension_numbers = #tpu.dot_dimension_numbers<[1], [0], [0], [1], [0, 0, 1, 1], [], []>} : vector<2x32xbf16>, vector<32x128xbf16>, vector<2x128xf32> -> vector<2x128xf32>
    %226 = arith.addf %224, %225 : vector<2x128xf32>
    %227 = vector.extract_strided_slice %223 {offsets = [0, 128], sizes = [2, 128], strides = [1, 1]} : vector<2x256xf32> to vector<2x128xf32>
    %cst_72 = arith.constant dense<0.000000e+00> : vector<2x128xf32>
    %228 = tpu.matmul %216, %10, %cst_72 {dimension_numbers = #tpu.dot_dimension_numbers<[1], [0], [0], [1], [0, 0, 1, 1], [], []>} : vector<2x32xbf16>, vector<32x128xbf16>, vector<2x128xf32> -> vector<2x128xf32>
    %229 = arith.addf %227, %228 : vector<2x128xf32>
    %230 = arith.negf %226 : vector<2x128xf32>
    %231 = math.exp %230 : vector<2x128xf32>
    %cst_73 = arith.constant 1.000000e+00 : f32
    %232 = vector.broadcast %cst_73 : f32 to vector<2x128xf32>
    %233 = arith.addf %232, %231 : vector<2x128xf32>
    %234 = arith.divf %232, %233 : vector<2x128xf32>
    %235 = arith.negf %229 : vector<2x128xf32>
    %236 = math.exp %235 : vector<2x128xf32>
    %cst_74 = arith.constant 1.000000e+00 : f32
    %237 = vector.broadcast %cst_74 : f32 to vector<2x128xf32>
    %238 = arith.addf %237, %236 : vector<2x128xf32>
    %239 = arith.divf %237, %238 : vector<2x128xf32>
    %240 = vector.extract_strided_slice %234 {offsets = [0, 0], sizes = [2, 32], strides = [1, 1]} : vector<2x128xf32> to vector<2x32xf32>
    %241 = vector.extract_strided_slice %234 {offsets = [0, 32], sizes = [2, 32], strides = [1, 1]} : vector<2x128xf32> to vector<2x32xf32>
    %242 = vector.extract_strided_slice %234 {offsets = [0, 96], sizes = [2, 32], strides = [1, 1]} : vector<2x128xf32> to vector<2x32xf32>
    %243 = vector.extract_strided_slice %234 {offsets = [0, 64], sizes = [2, 32], strides = [1, 1]} : vector<2x128xf32> to vector<2x32xf32>
    %cst_75 = arith.constant 2.000000e+00 : f32
    %244 = vector.broadcast %cst_75 : f32 to vector<2x32xf32>
    %245 = arith.mulf %244, %243 : vector<2x32xf32>
    %cst_76 = arith.constant 1.000000e+00 : f32
    %246 = vector.broadcast %cst_76 : f32 to vector<2x32xf32>
    %247 = arith.subf %245, %246 : vector<2x32xf32>
    %248 = vector.extract_strided_slice %239 {offsets = [0, 0], sizes = [2, 32], strides = [1, 1]} : vector<2x128xf32> to vector<2x32xf32>
    %249 = vector.extract_strided_slice %239 {offsets = [0, 32], sizes = [2, 32], strides = [1, 1]} : vector<2x128xf32> to vector<2x32xf32>
    %250 = vector.extract_strided_slice %239 {offsets = [0, 96], sizes = [2, 32], strides = [1, 1]} : vector<2x128xf32> to vector<2x32xf32>
    %251 = vector.extract_strided_slice %239 {offsets = [0, 64], sizes = [2, 32], strides = [1, 1]} : vector<2x128xf32> to vector<2x32xf32>
    %cst_77 = arith.constant 2.000000e+00 : f32
    %252 = vector.broadcast %cst_77 : f32 to vector<2x32xf32>
    %253 = arith.mulf %252, %251 : vector<2x32xf32>
    %cst_78 = arith.constant 1.000000e+00 : f32
    %254 = vector.broadcast %cst_78 : f32 to vector<2x32xf32>
    %255 = arith.subf %253, %254 : vector<2x32xf32>
    %256 = arith.mulf %241, %207 : vector<2x32xf32>
    %257 = arith.mulf %240, %247 : vector<2x32xf32>
    %258 = arith.addf %256, %257 : vector<2x32xf32>
    %259 = arith.mulf %249, %210 : vector<2x32xf32>
    %260 = arith.mulf %248, %255 : vector<2x32xf32>
    %261 = arith.addf %259, %260 : vector<2x32xf32>
    %262 = math.tanh %258 : vector<2x32xf32>
    %263 = arith.mulf %242, %262 : vector<2x32xf32>
    %264 = math.tanh %261 : vector<2x32xf32>
    %265 = arith.mulf %250, %264 : vector<2x32xf32>
    %266 = arith.truncf %263 : vector<2x32xf32> to vector<2x32xbf16>
    %267 = arith.truncf %265 : vector<2x32xf32> to vector<2x32xbf16>
    %c5_i32 = arith.constant 5 : i32
    %c7_i32_79 = arith.constant 7 : i32
    %268 = arith.subi %c7_i32_79, %c5_i32 : i32
    %269 = arith.index_cast %c5_i32 : i32 to index
    %c0_80 = arith.constant 0 : index
    %c0_81 = arith.constant 0 : index
    %270 = vector.load %arg11[%269, %c0_80, %c0_81] : memref<8x2x256xf32, #tpu.memory_space<vmem>>, vector<1x2x256xf32>
    %271 = vector.shape_cast %270 : vector<1x2x256xf32> to vector<2x256xf32>
    %272 = arith.index_cast %268 : i32 to index
    %c0_82 = arith.constant 0 : index
    %c0_83 = arith.constant 0 : index
    %273 = vector.load %arg11[%272, %c0_82, %c0_83] : memref<8x2x256xf32, #tpu.memory_space<vmem>>, vector<1x2x256xf32>
    %274 = vector.shape_cast %273 : vector<1x2x256xf32> to vector<2x256xf32>
    %275 = vector.extract_strided_slice %271 {offsets = [0, 0], sizes = [2, 128], strides = [1, 1]} : vector<2x256xf32> to vector<2x128xf32>
    %cst_84 = arith.constant dense<0.000000e+00> : vector<2x128xf32>
    %276 = tpu.matmul %266, %9, %cst_84 {dimension_numbers = #tpu.dot_dimension_numbers<[1], [0], [0], [1], [0, 0, 1, 1], [], []>} : vector<2x32xbf16>, vector<32x128xbf16>, vector<2x128xf32> -> vector<2x128xf32>
    %277 = arith.addf %275, %276 : vector<2x128xf32>
    %278 = vector.extract_strided_slice %274 {offsets = [0, 128], sizes = [2, 128], strides = [1, 1]} : vector<2x256xf32> to vector<2x128xf32>
    %cst_85 = arith.constant dense<0.000000e+00> : vector<2x128xf32>
    %279 = tpu.matmul %267, %10, %cst_85 {dimension_numbers = #tpu.dot_dimension_numbers<[1], [0], [0], [1], [0, 0, 1, 1], [], []>} : vector<2x32xbf16>, vector<32x128xbf16>, vector<2x128xf32> -> vector<2x128xf32>
    %280 = arith.addf %278, %279 : vector<2x128xf32>
    %281 = arith.negf %277 : vector<2x128xf32>
    %282 = math.exp %281 : vector<2x128xf32>
    %cst_86 = arith.constant 1.000000e+00 : f32
    %283 = vector.broadcast %cst_86 : f32 to vector<2x128xf32>
    %284 = arith.addf %283, %282 : vector<2x128xf32>
    %285 = arith.divf %283, %284 : vector<2x128xf32>
    %286 = arith.negf %280 : vector<2x128xf32>
    %287 = math.exp %286 : vector<2x128xf32>
    %cst_87 = arith.constant 1.000000e+00 : f32
    %288 = vector.broadcast %cst_87 : f32 to vector<2x128xf32>
    %289 = arith.addf %288, %287 : vector<2x128xf32>
    %290 = arith.divf %288, %289 : vector<2x128xf32>
    %291 = vector.extract_strided_slice %285 {offsets = [0, 0], sizes = [2, 32], strides = [1, 1]} : vector<2x128xf32> to vector<2x32xf32>
    %292 = vector.extract_strided_slice %285 {offsets = [0, 32], sizes = [2, 32], strides = [1, 1]} : vector<2x128xf32> to vector<2x32xf32>
    %293 = vector.extract_strided_slice %285 {offsets = [0, 96], sizes = [2, 32], strides = [1, 1]} : vector<2x128xf32> to vector<2x32xf32>
    %294 = vector.extract_strided_slice %285 {offsets = [0, 64], sizes = [2, 32], strides = [1, 1]} : vector<2x128xf32> to vector<2x32xf32>
    %cst_88 = arith.constant 2.000000e+00 : f32
    %295 = vector.broadcast %cst_88 : f32 to vector<2x32xf32>
    %296 = arith.mulf %295, %294 : vector<2x32xf32>
    %cst_89 = arith.constant 1.000000e+00 : f32
    %297 = vector.broadcast %cst_89 : f32 to vector<2x32xf32>
    %298 = arith.subf %296, %297 : vector<2x32xf32>
    %299 = vector.extract_strided_slice %290 {offsets = [0, 0], sizes = [2, 32], strides = [1, 1]} : vector<2x128xf32> to vector<2x32xf32>
    %300 = vector.extract_strided_slice %290 {offsets = [0, 32], sizes = [2, 32], strides = [1, 1]} : vector<2x128xf32> to vector<2x32xf32>
    %301 = vector.extract_strided_slice %290 {offsets = [0, 96], sizes = [2, 32], strides = [1, 1]} : vector<2x128xf32> to vector<2x32xf32>
    %302 = vector.extract_strided_slice %290 {offsets = [0, 64], sizes = [2, 32], strides = [1, 1]} : vector<2x128xf32> to vector<2x32xf32>
    %cst_90 = arith.constant 2.000000e+00 : f32
    %303 = vector.broadcast %cst_90 : f32 to vector<2x32xf32>
    %304 = arith.mulf %303, %302 : vector<2x32xf32>
    %cst_91 = arith.constant 1.000000e+00 : f32
    %305 = vector.broadcast %cst_91 : f32 to vector<2x32xf32>
    %306 = arith.subf %304, %305 : vector<2x32xf32>
    %307 = arith.mulf %292, %258 : vector<2x32xf32>
    %308 = arith.mulf %291, %298 : vector<2x32xf32>
    %309 = arith.addf %307, %308 : vector<2x32xf32>
    %310 = arith.mulf %300, %261 : vector<2x32xf32>
    %311 = arith.mulf %299, %306 : vector<2x32xf32>
    %312 = arith.addf %310, %311 : vector<2x32xf32>
    %313 = math.tanh %309 : vector<2x32xf32>
    %314 = arith.mulf %293, %313 : vector<2x32xf32>
    %315 = math.tanh %312 : vector<2x32xf32>
    %316 = arith.mulf %301, %315 : vector<2x32xf32>
    %317 = arith.truncf %314 : vector<2x32xf32> to vector<2x32xbf16>
    %318 = arith.truncf %316 : vector<2x32xf32> to vector<2x32xbf16>
    %c6_i32 = arith.constant 6 : i32
    %c7_i32_92 = arith.constant 7 : i32
    %319 = arith.subi %c7_i32_92, %c6_i32 : i32
    %320 = arith.index_cast %c6_i32 : i32 to index
    %c0_93 = arith.constant 0 : index
    %c0_94 = arith.constant 0 : index
    %321 = vector.load %arg11[%320, %c0_93, %c0_94] : memref<8x2x256xf32, #tpu.memory_space<vmem>>, vector<1x2x256xf32>
    %322 = vector.shape_cast %321 : vector<1x2x256xf32> to vector<2x256xf32>
    %323 = arith.index_cast %319 : i32 to index
    %c0_95 = arith.constant 0 : index
    %c0_96 = arith.constant 0 : index
    %324 = vector.load %arg11[%323, %c0_95, %c0_96] : memref<8x2x256xf32, #tpu.memory_space<vmem>>, vector<1x2x256xf32>
    %325 = vector.shape_cast %324 : vector<1x2x256xf32> to vector<2x256xf32>
    %326 = vector.extract_strided_slice %322 {offsets = [0, 0], sizes = [2, 128], strides = [1, 1]} : vector<2x256xf32> to vector<2x128xf32>
    %cst_97 = arith.constant dense<0.000000e+00> : vector<2x128xf32>
    %327 = tpu.matmul %317, %9, %cst_97 {dimension_numbers = #tpu.dot_dimension_numbers<[1], [0], [0], [1], [0, 0, 1, 1], [], []>} : vector<2x32xbf16>, vector<32x128xbf16>, vector<2x128xf32> -> vector<2x128xf32>
    %328 = arith.addf %326, %327 : vector<2x128xf32>
    %329 = vector.extract_strided_slice %325 {offsets = [0, 128], sizes = [2, 128], strides = [1, 1]} : vector<2x256xf32> to vector<2x128xf32>
    %cst_98 = arith.constant dense<0.000000e+00> : vector<2x128xf32>
    %330 = tpu.matmul %318, %10, %cst_98 {dimension_numbers = #tpu.dot_dimension_numbers<[1], [0], [0], [1], [0, 0, 1, 1], [], []>} : vector<2x32xbf16>, vector<32x128xbf16>, vector<2x128xf32> -> vector<2x128xf32>
    %331 = arith.addf %329, %330 : vector<2x128xf32>
    %332 = arith.negf %328 : vector<2x128xf32>
    %333 = math.exp %332 : vector<2x128xf32>
    %cst_99 = arith.constant 1.000000e+00 : f32
    %334 = vector.broadcast %cst_99 : f32 to vector<2x128xf32>
    %335 = arith.addf %334, %333 : vector<2x128xf32>
    %336 = arith.divf %334, %335 : vector<2x128xf32>
    %337 = arith.negf %331 : vector<2x128xf32>
    %338 = math.exp %337 : vector<2x128xf32>
    %cst_100 = arith.constant 1.000000e+00 : f32
    %339 = vector.broadcast %cst_100 : f32 to vector<2x128xf32>
    %340 = arith.addf %339, %338 : vector<2x128xf32>
    %341 = arith.divf %339, %340 : vector<2x128xf32>
    %342 = vector.extract_strided_slice %336 {offsets = [0, 0], sizes = [2, 32], strides = [1, 1]} : vector<2x128xf32> to vector<2x32xf32>
    %343 = vector.extract_strided_slice %336 {offsets = [0, 32], sizes = [2, 32], strides = [1, 1]} : vector<2x128xf32> to vector<2x32xf32>
    %344 = vector.extract_strided_slice %336 {offsets = [0, 96], sizes = [2, 32], strides = [1, 1]} : vector<2x128xf32> to vector<2x32xf32>
    %345 = vector.extract_strided_slice %336 {offsets = [0, 64], sizes = [2, 32], strides = [1, 1]} : vector<2x128xf32> to vector<2x32xf32>
    %cst_101 = arith.constant 2.000000e+00 : f32
    %346 = vector.broadcast %cst_101 : f32 to vector<2x32xf32>
    %347 = arith.mulf %346, %345 : vector<2x32xf32>
    %cst_102 = arith.constant 1.000000e+00 : f32
    %348 = vector.broadcast %cst_102 : f32 to vector<2x32xf32>
    %349 = arith.subf %347, %348 : vector<2x32xf32>
    %350 = vector.extract_strided_slice %341 {offsets = [0, 0], sizes = [2, 32], strides = [1, 1]} : vector<2x128xf32> to vector<2x32xf32>
    %351 = vector.extract_strided_slice %341 {offsets = [0, 32], sizes = [2, 32], strides = [1, 1]} : vector<2x128xf32> to vector<2x32xf32>
    %352 = vector.extract_strided_slice %341 {offsets = [0, 96], sizes = [2, 32], strides = [1, 1]} : vector<2x128xf32> to vector<2x32xf32>
    %353 = vector.extract_strided_slice %341 {offsets = [0, 64], sizes = [2, 32], strides = [1, 1]} : vector<2x128xf32> to vector<2x32xf32>
    %cst_103 = arith.constant 2.000000e+00 : f32
    %354 = vector.broadcast %cst_103 : f32 to vector<2x32xf32>
    %355 = arith.mulf %354, %353 : vector<2x32xf32>
    %cst_104 = arith.constant 1.000000e+00 : f32
    %356 = vector.broadcast %cst_104 : f32 to vector<2x32xf32>
    %357 = arith.subf %355, %356 : vector<2x32xf32>
    %358 = arith.mulf %343, %309 : vector<2x32xf32>
    %359 = arith.mulf %342, %349 : vector<2x32xf32>
    %360 = arith.addf %358, %359 : vector<2x32xf32>
    %361 = arith.mulf %351, %312 : vector<2x32xf32>
    %362 = arith.mulf %350, %357 : vector<2x32xf32>
    %363 = arith.addf %361, %362 : vector<2x32xf32>
    %364 = math.tanh %360 : vector<2x32xf32>
    %365 = arith.mulf %344, %364 : vector<2x32xf32>
    %366 = math.tanh %363 : vector<2x32xf32>
    %367 = arith.mulf %352, %366 : vector<2x32xf32>
    %368 = arith.truncf %365 : vector<2x32xf32> to vector<2x32xbf16>
    %369 = arith.truncf %367 : vector<2x32xf32> to vector<2x32xbf16>
    %c7_i32_105 = arith.constant 7 : i32
    %c7_i32_106 = arith.constant 7 : i32
    %370 = arith.subi %c7_i32_106, %c7_i32_105 : i32
    %371 = arith.index_cast %c7_i32_105 : i32 to index
    %c0_107 = arith.constant 0 : index
    %c0_108 = arith.constant 0 : index
    %372 = vector.load %arg11[%371, %c0_107, %c0_108] : memref<8x2x256xf32, #tpu.memory_space<vmem>>, vector<1x2x256xf32>
    %373 = vector.shape_cast %372 : vector<1x2x256xf32> to vector<2x256xf32>
    %374 = arith.index_cast %370 : i32 to index
    %c0_109 = arith.constant 0 : index
    %c0_110 = arith.constant 0 : index
    %375 = vector.load %arg11[%374, %c0_109, %c0_110] : memref<8x2x256xf32, #tpu.memory_space<vmem>>, vector<1x2x256xf32>
    %376 = vector.shape_cast %375 : vector<1x2x256xf32> to vector<2x256xf32>
    %377 = vector.extract_strided_slice %373 {offsets = [0, 0], sizes = [2, 128], strides = [1, 1]} : vector<2x256xf32> to vector<2x128xf32>
    %cst_111 = arith.constant dense<0.000000e+00> : vector<2x128xf32>
    %378 = tpu.matmul %368, %9, %cst_111 {dimension_numbers = #tpu.dot_dimension_numbers<[1], [0], [0], [1], [0, 0, 1, 1], [], []>} : vector<2x32xbf16>, vector<32x128xbf16>, vector<2x128xf32> -> vector<2x128xf32>
    %379 = arith.addf %377, %378 : vector<2x128xf32>
    %380 = vector.extract_strided_slice %376 {offsets = [0, 128], sizes = [2, 128], strides = [1, 1]} : vector<2x256xf32> to vector<2x128xf32>
    %cst_112 = arith.constant dense<0.000000e+00> : vector<2x128xf32>
    %381 = tpu.matmul %369, %10, %cst_112 {dimension_numbers = #tpu.dot_dimension_numbers<[1], [0], [0], [1], [0, 0, 1, 1], [], []>} : vector<2x32xbf16>, vector<32x128xbf16>, vector<2x128xf32> -> vector<2x128xf32>
    %382 = arith.addf %380, %381 : vector<2x128xf32>
    %383 = arith.negf %379 : vector<2x128xf32>
    %384 = math.exp %383 : vector<2x128xf32>
    %cst_113 = arith.constant 1.000000e+00 : f32
    %385 = vector.broadcast %cst_113 : f32 to vector<2x128xf32>
    %386 = arith.addf %385, %384 : vector<2x128xf32>
    %387 = arith.divf %385, %386 : vector<2x128xf32>
    %388 = arith.negf %382 : vector<2x128xf32>
    %389 = math.exp %388 : vector<2x128xf32>
    %cst_114 = arith.constant 1.000000e+00 : f32
    %390 = vector.broadcast %cst_114 : f32 to vector<2x128xf32>
    %391 = arith.addf %390, %389 : vector<2x128xf32>
    %392 = arith.divf %390, %391 : vector<2x128xf32>
    %393 = vector.extract_strided_slice %387 {offsets = [0, 0], sizes = [2, 32], strides = [1, 1]} : vector<2x128xf32> to vector<2x32xf32>
    %394 = vector.extract_strided_slice %387 {offsets = [0, 32], sizes = [2, 32], strides = [1, 1]} : vector<2x128xf32> to vector<2x32xf32>
    %395 = vector.extract_strided_slice %387 {offsets = [0, 96], sizes = [2, 32], strides = [1, 1]} : vector<2x128xf32> to vector<2x32xf32>
    %396 = vector.extract_strided_slice %387 {offsets = [0, 64], sizes = [2, 32], strides = [1, 1]} : vector<2x128xf32> to vector<2x32xf32>
    %cst_115 = arith.constant 2.000000e+00 : f32
    %397 = vector.broadcast %cst_115 : f32 to vector<2x32xf32>
    %398 = arith.mulf %397, %396 : vector<2x32xf32>
    %cst_116 = arith.constant 1.000000e+00 : f32
    %399 = vector.broadcast %cst_116 : f32 to vector<2x32xf32>
    %400 = arith.subf %398, %399 : vector<2x32xf32>
    %401 = vector.extract_strided_slice %392 {offsets = [0, 0], sizes = [2, 32], strides = [1, 1]} : vector<2x128xf32> to vector<2x32xf32>
    %402 = vector.extract_strided_slice %392 {offsets = [0, 32], sizes = [2, 32], strides = [1, 1]} : vector<2x128xf32> to vector<2x32xf32>
    %403 = vector.extract_strided_slice %392 {offsets = [0, 96], sizes = [2, 32], strides = [1, 1]} : vector<2x128xf32> to vector<2x32xf32>
    %404 = vector.extract_strided_slice %392 {offsets = [0, 64], sizes = [2, 32], strides = [1, 1]} : vector<2x128xf32> to vector<2x32xf32>
    %cst_117 = arith.constant 2.000000e+00 : f32
    %405 = vector.broadcast %cst_117 : f32 to vector<2x32xf32>
    %406 = arith.mulf %405, %404 : vector<2x32xf32>
    %cst_118 = arith.constant 1.000000e+00 : f32
    %407 = vector.broadcast %cst_118 : f32 to vector<2x32xf32>
    %408 = arith.subf %406, %407 : vector<2x32xf32>
    %409 = arith.mulf %394, %360 : vector<2x32xf32>
    %410 = arith.mulf %393, %400 : vector<2x32xf32>
    %411 = arith.addf %409, %410 : vector<2x32xf32>
    %412 = arith.mulf %402, %363 : vector<2x32xf32>
    %413 = arith.mulf %401, %408 : vector<2x32xf32>
    %414 = arith.addf %412, %413 : vector<2x32xf32>
    %415 = math.tanh %411 : vector<2x32xf32>
    %416 = arith.mulf %395, %415 : vector<2x32xf32>
    %417 = math.tanh %414 : vector<2x32xf32>
    %418 = arith.mulf %403, %417 : vector<2x32xf32>
    %419 = arith.truncf %416 : vector<2x32xf32> to vector<2x32xbf16>
    %420 = arith.truncf %418 : vector<2x32xf32> to vector<2x32xbf16>
    %c8_i32 = arith.constant 8 : i32
    %421 = tpu.concatenate %419, %420 in 1 : vector<2x32xbf16>, vector<2x32xbf16> -> vector<2x64xbf16>
    %422 = arith.extf %421 : vector<2x64xbf16> to vector<2x64xf32>
    %c0_119 = arith.constant 0 : index
    %c0_120 = arith.constant 0 : index
    %423 = vector.load %arg6[%c0_119, %c0_120] : memref<64x100xf32, #tpu.memory_space<vmem>>, vector<64x100xf32>
    %cst_121 = arith.constant dense<0.000000e+00> : vector<2x100xf32>
    %424 = tpu.matmul %422, %423, %cst_121 {dimension_numbers = #tpu.dot_dimension_numbers<[1], [0], [0], [1], [0, 0, 1, 1], [], []>} : vector<2x64xf32>, vector<64x100xf32>, vector<2x100xf32> -> vector<2x100xf32>
    %c0_122 = arith.constant 0 : index
    %c0_123 = arith.constant 0 : index
    %425 = vector.load %arg7[%c0_122, %c0_123] : memref<1x100xf32, #tpu.memory_space<vmem>>, vector<1x100xf32>
    %426 = vector.broadcast %425 : vector<1x100xf32> to vector<2x100xf32>
    %427 = arith.addf %424, %426 : vector<2x100xf32>
    %cst_124 = arith.constant 0.000000e+00 : f32
    %428 = vector.broadcast %cst_124 : f32 to vector<2x100xf32>
    %429 = arith.maximumf %427, %428 : vector<2x100xf32>
    %c0_125 = arith.constant 0 : index
    %c0_126 = arith.constant 0 : index
    %430 = vector.load %arg8[%c0_125, %c0_126] : memref<100x2xf32, #tpu.memory_space<vmem>>, vector<100x2xf32>
    %cst_127 = arith.constant dense<0.000000e+00> : vector<2x2xf32>
    %431 = tpu.matmul %429, %430, %cst_127 {dimension_numbers = #tpu.dot_dimension_numbers<[1], [0], [0], [1], [0, 0, 1, 1], [], []>} : vector<2x100xf32>, vector<100x2xf32>, vector<2x2xf32> -> vector<2x2xf32>
    %c0_128 = arith.constant 0 : index
    %c0_129 = arith.constant 0 : index
    %432 = vector.load %arg9[%c0_128, %c0_129] : memref<1x2xf32, #tpu.memory_space<vmem>>, vector<1x2xf32>
    %433 = vector.broadcast %432 : vector<1x2xf32> to vector<2x2xf32>
    %434 = arith.addf %431, %433 : vector<2x2xf32>
    %c0_130 = arith.constant 0 : index
    %c0_131 = arith.constant 0 : index
    %435 = vector.load %arg10[%c0_130, %c0_131] : memref<2x2xf32, #tpu.memory_space<vmem>>, vector<2x2xf32>
    tpu.vector_store %arg10[%c0_130, %c0_131], %434 {strides = array<i32>} : memref<2x2xf32, #tpu.memory_space<vmem>>, vector<2x2xf32>,
    return
  }
  func.func @transform_0(%arg0: i32) -> (i32, i32, i32) {
    %c0_i32 = arith.constant 0 : i32
    %c0_i32_0 = arith.constant 0 : i32
    %c0_i32_1 = arith.constant 0 : i32
    %c0_i32_2 = arith.constant 0 : i32
    return %c0_i32, %c0_i32_0, %c0_i32_1 : i32, i32, i32
  }
  func.func @transform_1(%arg0: i32) -> (i32, i32) {
    %c0_i32 = arith.constant 0 : i32
    %c0_i32_0 = arith.constant 0 : i32
    %c0_i32_1 = arith.constant 0 : i32
    return %c0_i32, %c0_i32_0 : i32, i32
  }
  func.func @transform_2(%arg0: i32) -> (i32, i32) {
    %c0_i32 = arith.constant 0 : i32
    %c0_i32_0 = arith.constant 0 : i32
    %c0_i32_1 = arith.constant 0 : i32
    return %c0_i32, %c0_i32_0 : i32, i32
  }
  func.func @transform_3(%arg0: i32) -> (i32, i32) {
    %c0_i32 = arith.constant 0 : i32
    %c0_i32_0 = arith.constant 0 : i32
    %c0_i32_1 = arith.constant 0 : i32
    return %c0_i32, %c0_i32_0 : i32, i32
  }
  func.func @transform_4(%arg0: i32) -> (i32, i32) {
    %c0_i32 = arith.constant 0 : i32
    %c0_i32_0 = arith.constant 0 : i32
    %c0_i32_1 = arith.constant 0 : i32
    return %c0_i32, %c0_i32_0 : i32, i32
  }
  func.func @transform_5(%arg0: i32) -> (i32, i32) {
    %c0_i32 = arith.constant 0 : i32
    %c0_i32_0 = arith.constant 0 : i32
    %c0_i32_1 = arith.constant 0 : i32
    return %c0_i32, %c0_i32_0 : i32, i32
  }
  func.func @transform_6(%arg0: i32) -> (i32, i32) {
    %c0_i32 = arith.constant 0 : i32
    %c0_i32_0 = arith.constant 0 : i32
    %c0_i32_1 = arith.constant 0 : i32
    return %c0_i32, %c0_i32_0 : i32, i32
  }
  func.func @transform_7(%arg0: i32) -> (i32, i32) {
    %c0_i32 = arith.constant 0 : i32
    %c0_i32_0 = arith.constant 0 : i32
    %c0_i32_1 = arith.constant 0 : i32
    return %c0_i32, %c0_i32_0 : i32, i32
  }
  func.func @transform_8(%arg0: i32) -> (i32, i32) {
    %c0_i32 = arith.constant 0 : i32
    %c0_i32_0 = arith.constant 0 : i32
    %c0_i32_1 = arith.constant 0 : i32
    return %c0_i32, %c0_i32_0 : i32, i32
  }
  func.func @transform_9(%arg0: i32) -> (i32, i32) {
    %c0_i32 = arith.constant 0 : i32
    %c0_i32_0 = arith.constant 0 : i32
    %c0_i32_1 = arith.constant 0 : i32
    return %c0_i32, %c0_i32_0 : i32, i32
  }
}

</mosaic_0001>

<bundles_post_ra>
// kernel: rnn_forward.2
= control target key start
LH: loop header
LB: loop body
LE: loop exit
PB: predicated region body
PF: predicated region fallthrough
CT: control target
= control target key end

     0   :  { %v1614_v24 = vmov 0   ;;  %vm83_vm0 = vcmask 261120   ;;  %vm120_vm1 = vcmask 1041408   ;;  %vm122_vm2 = vcmask 1043458   ;;  %s2094_s1 = inlined_call_operand.vmem [shape: bf16[32,256], index: 1, kind: input, shape index: {}]   ;;  %s2095_s0 = inlined_call_operand.vmem [shape: bf16[8,2,32], index: 0, kind: input, shape index: {}]   ;;  %s2096_s2 = inlined_call_operand.vmem [shape: bf16[32,128], index: 2, kind: input, shape index: {}]   ;;  %s2097_s3 = inlined_call_operand.vmem [shape: bf16[32,128], index: 3, kind: input, shape index: {}]   ;;  %s2098_s4 = inlined_call_operand.vmem [shape: f32[1,256], index: 4, kind: input, shape index: {}]   ;;  %s2099_s5 = inlined_call_operand.vmem [shape: bf16[8,2,64], index: 5, kind: output, shape index: {}]  }
   0x1   :  { %v1437_v0 = vld [vmem:[%s2094_s1 + $0x10] sm:$0xf]  ;;  %v1510_v1 = vld [vmem:[%s2094_s1 + $0x14] sm:$0xf0]  ;;  %v1509_v2 = vld [vmem:[%s2094_s1 + $0x14] sm:$0xf] }
   0x2   :  { %v1438_v3 = vor.u32 %v1510_v1, %v1437_v0  ;;  %v1439_v4 = vld [vmem:[%s2094_s1 + $0x18] sm:$0xf0]  ;;  %v1429_v5 = vld [vmem:[%s2094_s1] sm:$0xf]  ;;  %v1508_v6 = vld [vmem:[%s2094_s1 + $0x4] sm:$0xf0] }
   0x3   :  { %v1442_v7 = vor.u32 %v1509_v2, %v1439_v4  ;;  %v1507_v8 = vld [vmem:[%s2094_s1 + $0x4] sm:$0xf]  ;;  %v1431_v9 = vld [vmem:[%s2094_s1 + $0x8] sm:$0xf0]  ;;  %v21_v10 = vld [vmem:[%s2095_s0] sm:$0x1]  ;;  %v1430_v11 = vor.u32 %v1508_v6, %v1429_v5 }
   0x4   :  { %92 = vmatpush.bf16.msra.mxu0 %v1438_v3  ;;  %v22_v12 = vld [vmem:[%s2095_s0 + $0x1] sm:$0x1]  ;;  %v1434_v13 = vor.u32 %v1507_v8, %v1431_v9  ;;  %v23_v14 = vld [vmem:[%s2095_s0 + $0x2] sm:$0x1]  ;;  %v24_v15 = vld [vmem:[%s2095_s0 + $0x3] sm:$0x1] }
   0x5   :  { %106 = vmatpush.bf16.msra.mxu1 %v1442_v7  ;;  %40 = vst [vmem:[#allocation1] ss:$9 sm:$0xff] %v21_v10  ;;  %v1686_v16 = vld [vmem:[%s2096_s2 + $0x8] sm:$0xff]  ;;  %v25_v17 = vld [vmem:[%s2095_s0 + $0x4] sm:$0x1]  ;;  %vm125_vm3 = vcmask 1045508  }
   0x6   :  { %43 = vst [vmem:[#allocation1 + $0x1] ss:$9 sm:$0xff] %v22_v12  ;;  %v1694_v18 = vld [vmem:[%s2097_s3 + $0x8] sm:$0xff]  ;;  %v26_v19 = vld [vmem:[%s2095_s0 + $0x5] sm:$0x1]  ;;  %186 = vmatpush.bf16.msra.mxu2 %v1686_v16  ;;  %vm128_vm4 = vcmask 1045504  }
   0x7   :  { %46 = vst [vmem:[#allocation1 + $0x2] ss:$9 sm:$0xff] %v23_v14  ;;  %v1703_v20 = vld [vmem:[%s2096_s2] sm:$0xff]  ;;  %212 = vmatpush.bf16.msra.mxu3 %v1694_v18 }
   0x8   :  { %93 = vmatpush.bf16.msra.mxu0 %v1430_v11  ;;  %v27_v21 = vld [vmem:[%s2095_s0 + $0x6] sm:$0x1]  ;;  %49 = vst [vmem:[#allocation1 + $0x3] ss:$9 sm:$0xff] %v24_v15  ;;  %v28_v23 = vld [vmem:[%s2095_s0 + $0x7] sm:$0x1] }
   0x9   :  { %107 = vmatpush.bf16.msra.mxu1 %v1434_v13  ;;  %v1712_v22 = vld [vmem:[%s2097_s3] sm:$0xff]  ;;  %52 = vst [vmem:[#allocation1 + $0x4] ss:$9 sm:$0xff] %v25_v17  ;;  %s1615_s3 = smov 64  }
   0xa   :  { %55 = vst [vmem:[#allocation1 + $0x5] ss:$9 sm:$0xff] %v26_v19  ;;  %187 = vmatpush.bf16.msra.mxu2 %v1703_v20  ;;  %v33_v26 = vld [vmem:[%s2098_s4] sm:$0x3]  ;;  %s1616_s4 = smov 32  }
   0xb   :  { %58 = vst [vmem:[#allocation1 + $0x6] ss:$9 sm:$0xff] %v27_v21  ;;  %213 = vmatpush.bf16.msra.mxu3 %v1712_v22  ;;  %v35_v27 = vperm.slane %v33_v26, 0  ;;  %v36_v28 = vperm.slane %v33_v26, 1 }
   0xc   :  { %341 = vmatpush.bf16.msrb.mxu0 %v1686_v16  ;;  %61 = vst [vmem:[#allocation1 + $0x7] ss:$9 sm:$0xff] %v28_v23 }
   0xd   :  { %362 = vmatpush.bf16.msrb.mxu1 %v1694_v18  ;;  %188 = vmatmul.bf16.vlgmr.msra.gmra.mxu2 %v1614_v24 }
   0xe   :  { %490 = vmatpush.bf16.msrb.mxu2 %v1686_v16  ;;  %214 = vmatmul.bf16.vlgmr.msra.gmra.mxu3 %v1614_v24 }
   0xf   :  { %511 = vmatpush.bf16.msrb.mxu3 %v1694_v18 }
  0x10   :  { %342 = vmatpush.bf16.msrb.mxu0 %v1703_v20 }
  0x11   :  { %363 = vmatpush.bf16.msrb.mxu1 %v1712_v22 }
  0x12   :  { %491 = vmatpush.bf16.msrb.mxu2 %v1703_v20 }
  0x13   :  { %512 = vmatpush.bf16.msrb.mxu3 %v1712_v22  ;;  %v62_v25 = vld [vmem:[#allocation1] sm:$0xff] }
  0x14   :  { %1443 = vmatmul.msk.bf16.vlgmr.msra.gmra.mxu0 %vm83_vm0, %v62_v25  ;;  %1444 = vmatmul.msk.bf16.vlgmr.msra.gmra.mxu1 %vm83_vm0, %v62_v25 }
  0x15   :  { %660 = vmatpush.bf16.msra.mxu1 %v1694_v18  ;;  %639 = vmatpush.bf16.msra.mxu0 %v1686_v16 }
  0x16   :  { %786 = vmatpush.bf16.msra.mxu2 %v1686_v16 }
  0x17   :  { %807 = vmatpush.bf16.msra.mxu3 %v1694_v18 }
  0x19   :  { %661 = vmatpush.bf16.msra.mxu1 %v1712_v22  ;;  %640 = vmatpush.bf16.msra.mxu0 %v1703_v20 }
  0x1a   :  { %787 = vmatpush.bf16.msra.mxu2 %v1703_v20 }
  0x1b   :  { %808 = vmatpush.bf16.msra.mxu3 %v1712_v22 }
  0x90   :  { %v189_v33 = vpop.f32.mrf.mxu2 }
  0x91   :  { %v95_v29 = vpop.f32.mrf.mxu0  ;;  %v109_v30 = vpop.f32.mrf.mxu1 }
  0x92   :  { %v96_v31 = vadd.f32 %v95_v29, %v35_v27  ;;  %v110_v32 = vadd.f32 %v109_v30, %v36_v28  ;;  %v215_v34 = vpop.f32.mrf.mxu3 }
  0x94   :  { %v118_v35 = vrot.slane %v110_v32, 6 }
  0x96   :  { %v121_v36 = vsel %vm120_vm1, %v96_v31, %v118_v35  ;;  %v123_v37 = vsel %vm122_vm2, %v96_v31, %v118_v35  ;;  %v126_v38 = vsel %vm125_vm3, %v96_v31, %v118_v35  ;;  %v129_v39 = vsel %vm128_vm4, %v118_v35, %v96_v31 }
  0x97   :  { %v124_v40 = vrot.slane %v123_v37, 2  ;;  %v127_v41 = vrot.slane %v126_v38, 4  ;;  %v130_v42 = vrot.slane %v129_v39, 6  ;;  %146 = vst [vmem:[#allocation2] sm:$0xf] %v121_v36 }
  0x98   :  { %v191_v47 = vpop.f32.mrf.mxu2 }
  0x99   :  { %147 = vst [vmem:[#allocation2 + $0x4] sm:$0xf] %v124_v40  ;;  %v97_v43 = vpop.f32.mrf.mxu0  ;;  %v111_v44 = vpop.f32.mrf.mxu1 }
  0x9a   :  { %148 = vst [vmem:[#allocation2 + $0x8] sm:$0xf] %v127_v41  ;;  %v112_v45 = vadd.f32 %v111_v44, %v36_v28  ;;  %v217_v46 = vpop.f32.mrf.mxu3  ;;  %v98_v48 = vadd.f32 %v97_v43, %v35_v27 }
  0x9b   :  { %149 = vst [vmem:[#allocation2 + $0xc] sm:$0xf] %v130_v42 }
  0x9c   :  { %v119_v49 = vrot.slane %v112_v45, 6 }
  0x9e   :  { %v131_v50 = vsel %vm120_vm1, %v98_v48, %v119_v49  ;;  %v132_v51 = vsel %vm122_vm2, %v98_v48, %v119_v49  ;;  %v134_v52 = vsel %vm125_vm3, %v98_v48, %v119_v49  ;;  %v136_v53 = vsel %vm128_vm4, %v119_v49, %v98_v48  ;;  %v162_v54 = vld [vmem:[#allocation2] sm:$0xf] }
  0x9f   :  { %v133_v55 = vrot.slane %v132_v51, 2  ;;  %v135_v56 = vrot.slane %v134_v52, 4  ;;  %v137_v57 = vrot.slane %v136_v53, 6  ;;  %150 = vst [vmem:[#allocation2 + $0x10] sm:$0xf] %v131_v50  ;;  %v193_v58 = vadd.f32 %v189_v33, %v162_v54 }
  0xa1   :  { %151 = vst [vmem:[#allocation2 + $0x14] sm:$0xf] %v133_v55  ;;  %v1461_v59 = vmul.f32 -1.442695, %v193_v58 }
  0xa2   :  { %152 = vst [vmem:[#allocation2 + $0x18] sm:$0xf] %v135_v56 }
  0xa3   :  { %153 = vst [vmem:[#allocation2 + $0x1c] sm:$0xf] %v137_v57  ;;  %1518 = vpow2.f32 %v1461_v59 }
  0xa9   :  { %v1519_v61 = vpop.eup %1518  ;;  %v327_v56 = vld [vmem:[#allocation2 + $0x18] sm:$0xf] }
  0xaa   :  { %v164_v60 = vld [vmem:[#allocation2 + $0x1c] sm:$0xf]  ;;  %v226_v0 = vadd.f32 1.0, %v1519_v61  ;;  %v370_v57 = vrot.slane %v327_v56, 2  ;;  %v325_v61 = vld [vmem:[#allocation2 + $0x4] sm:$0xf] }
  0xab   :  { %v220_v62 = vrot.slane %v164_v60, 2 }
  0xac   :  { %v238_v19 = vand.u32 2147483648, %v226_v0  ;;  %vm232_vm10 = vweird.f32 %v226_v0  ;;  %v236_v23 = vand.u32 2147483647, %v226_v0 }
  0xad   :  { %v222_v63 = vadd.f32 %v220_v62, %v215_v34 }
  0xae   :  { %v239_v27 = vor.u32 1.1754944e-38, %v238_v19  ;;  %vm237_vm12 = vcmp.eq.f32.partialorder %v236_v23, 8.507059e+37 }
  0xaf   :  { %v1462_v1 = vmul.f32 -1.442695, %v222_v63 }
  0xb1   :  { %1520 = vpow2.f32 %v1462_v1 }
  0xb2   :  { %1522 = vrcp.f32 %v226_v0 }
  0xb7   :  { %v1521_v2 = vpop.eup %1520 }
  0xb8   :  { %v1523_v3 = vpop.eup %1522  ;;  %v245_v4 = vadd.f32 1.0, %v1521_v2 }
  0xb9   :  { %v228_v5 = vmul.f32 %v1523_v3, %v226_v0  ;;  %vm233_vm7 = vweird.f32 %v1523_v3 }
  0xba   :  { %1524 = vrcp.f32 %v245_v4  ;;  %v257_v11 = vand.u32 2147483648, %v245_v4  ;;  %v255_v13 = vand.u32 2147483647, %v245_v4  ;;  %vm251_vm6 = vweird.f32 %v245_v4  ;;  %vm234_vm11 = vmor %vm232_vm10, %vm233_vm7 }
  0xbb   :  { %v229_v6 = vsub.f32 1.0, %v228_v5 }
  0xbc   :  { %v258_v17 = vor.u32 1.1754944e-38, %v257_v11  ;;  %vm256_vm9 = vcmp.eq.f32.partialorder %v255_v13, 8.507059e+37 }
  0xbd   :  { %v230_v10 = vmul.f32 %v1523_v3, %v229_v6 }
  0xbf   :  { %v231_v15 = vadd.f32 %v1523_v3, %v230_v10 }
  0xc0   :  { %v1525_v7 = vpop.eup %1524 }
  0xc1   :  { %v247_v8 = vmul.f32 %v1525_v7, %v245_v4  ;;  %vm252_vm5 = vweird.f32 %v1525_v7  ;;  %v235_v26 = vsel %vm234_vm11, %v1523_v3, %v231_v15 }
  0xc2   :  { %vm253_vm8 = vmor %vm251_vm6, %vm252_vm5  ;;  %v240_v29 = vsel %vm237_vm12, %v239_v27, %v235_v26 }
  0xc3   :  { %v248_v9 = vsub.f32 1.0, %v247_v8  ;;  %v261_v30 = vmul.f32 2.0, %v240_v29  ;;  %v265_v39 = vmul.f32 0.0, %v240_v29 }
  0xc5   :  { %v249_v12 = vmul.f32 %v1525_v7, %v248_v9  ;;  %v1463_v31 = vadd.f32 -1.0, %v261_v30 }
  0xc7   :  { %v250_v14 = vadd.f32 %v1525_v7, %v249_v12 }
  0xc9   :  { %v254_v21 = vsel %vm253_vm8, %v1525_v7, %v250_v14 }
  0xca   :  { %v259_v24 = vsel %vm256_vm9, %v258_v17, %v254_v21 }
  0xcb   :  { %v263_v25 = vmul.f32 2.0, %v259_v24  ;;  %v276_v36 = vmul.f32 0.0, %v259_v24 }
  0xcd   :  { %v1464_v28 = vadd.f32 -1.0, %v263_v25 }
  0xcf   :  { %278 = vrot.lane.b32.xlu0 %v1464_v28, %s1615_s3 }
  0xd7   :  { %267 = vrot.lane.b32.xlu0 %v1463_v31, %s1615_s3 }
 0x141   :  { %v279_v32 = vpop.permute.xlu0 %278 }
 0x142   :  { %v281_v33 = vmul.f32 %v279_v32, %v259_v24 }
 0x144   :  { %283 = vrot.lane.b32.xlu1 %v281_v33, %s1616_s4 }
 0x149   :  { %v268_v34 = vpop.permute.xlu0 %267 }
 0x14a   :  { %v270_v35 = vmul.f32 %v268_v34, %v240_v29 }
 0x14c   :  { %272 = vrot.lane.b32.xlu1 %v270_v35, %s1616_s4 }
 0x1b6   :  { %v284_v37 = vpop.permute.xlu1 %283 }
 0x1b7   :  { %v1752_v38 = vadd.f32 %v284_v37, %v276_v36 }
 0x1b9   :  { %1526 = vtanh.f32 %v1752_v38 }
 0x1be   :  { %v273_v40 = vpop.permute.xlu1 %272 }
 0x1bf   :  { %v1527_v41 = vpop.eup %1526  ;;  %v1755_v42 = vadd.f32 %v273_v40, %v265_v39 }
 0x1c0   :  { %295 = vrot.lane.b32.xlu2 %v1527_v41, %s1615_s3 }
 0x1c1   :  { %1528 = vtanh.f32 %v1755_v42 }
 0x1c7   :  { %v1529_v43 = vpop.eup %1528 }
 0x1c8   :  { %289 = vrot.lane.b32.xlu2 %v1529_v43, %s1615_s3 }
 0x21a   :  { %v296_v44 = vpop.permute.xlu2 %295 }
 0x21b   :  { %v298_v45 = vmul.f32 %v296_v44, %v259_v24 }
 0x21d   :  { %v1760_v46 = vpack.c.bf16 %v298_v45, %v298_v45 }
 0x21f   :  { %v349_v47 = vunpack.c.l.b16 %v1760_v46 }
 0x221   :  { %v350_v48 = vpack.c.b16 %v349_v47, %v349_v47 }
 0x222   :  { %v290_v49 = vpop.permute.xlu2 %289 }
 0x223   :  { %v292_v50 = vmul.f32 %v290_v49, %v240_v29  ;;  %351 = vrot.lane.b32.xlu0 %v350_v48, %s1616_s4 }
 0x225   :  { %v1764_v51 = vpack.c.bf16 %v292_v50, %v292_v50 }
 0x227   :  { %v328_v52 = vunpack.c.l.b16 %v1764_v51 }
 0x229   :  { %v329_v53 = vpack.c.b16 %v328_v52, %v328_v52 }
 0x22b   :  { %330 = vrot.lane.b32.xlu1 %v329_v53, %s1616_s4 }
 0x295   :  { %v352_v54 = vpop.permute.xlu0 %351 }
 0x296   :  { %1466 = vmatmul.msk.bf16.vlgmr.msrb.gmra.mxu1 %vm83_vm0, %v352_v54 }
 0x297   :  { %954 = vmatpush.bf16.msrb.mxu1 %v1694_v18 }
 0x29b   :  { %955 = vmatpush.bf16.msrb.mxu1 %v1712_v22 }
 0x29d   :  { %v331_v55 = vpop.permute.xlu1 %330 }
 0x29e   :  { %1465 = vmatmul.msk.bf16.vlgmr.msrb.gmra.mxu0 %vm83_vm0, %v331_v55 }
 0x29f   :  { %933 = vmatpush.bf16.msrb.mxu0 %v1686_v16 }
 0x2a3   :  { %934 = vmatpush.bf16.msrb.mxu0 %v1703_v20 }
 0x313   :  { %v365_v58 = vpop.f32.mrf.mxu1 }
 0x314   :  { %v372_v59 = vadd.f32 %v370_v57, %v365_v58 }
 0x316   :  { %v1468_v60 = vmul.f32 -1.442695, %v372_v59 }
 0x318   :  { %1530 = vpow2.f32 %v1468_v60 }
 0x31b   :  { %v344_v62 = vpop.f32.mrf.mxu0  ;;  %v367_v63 = vpop.f32.mrf.mxu1 }
 0x31c   :  { %v348_v0 = vadd.f32 %v344_v62, %v325_v61  ;;  %v476_v61 = vld [vmem:[#allocation2 + $0x14] sm:$0xf] }
 0x31d   :  { %v519_v62 = vrot.slane %v476_v61, 2 }
 0x31e   :  { %v1531_v1 = vpop.eup %1530  ;;  %v1467_v2 = vmul.f32 -1.442695, %v348_v0 }
 0x31f   :  { %v395_v3 = vadd.f32 1.0, %v1531_v1 }
 0x320   :  { %1532 = vpow2.f32 %v1467_v2 }
 0x321   :  { %1534 = vrcp.f32 %v395_v3  ;;  %v407_v10 = vand.u32 2147483648, %v395_v3  ;;  %v405_v12 = vand.u32 2147483647, %v395_v3  ;;  %vm401_vm14 = vweird.f32 %v395_v3 }
 0x323   :  { %v346_v4 = vpop.f32.mrf.mxu0  ;;  %v408_v15 = vor.u32 1.1754944e-38, %v407_v10  ;;  %vm406_vm1 = vcmp.eq.f32.partialorder %v405_v12, 8.507059e+37 }
 0x326   :  { %v1533_v5 = vpop.eup %1532 }
 0x327   :  { %v1535_v6 = vpop.eup %1534  ;;  %v376_v7 = vadd.f32 1.0, %v1533_v5 }
 0x328   :  { %v397_v8 = vmul.f32 %v1535_v6, %v395_v3  ;;  %vm402_vm13 = vweird.f32 %v1535_v6 }
 0x329   :  { %1536 = vrcp.f32 %v376_v7  ;;  %vm403_vm15 = vmor %vm401_vm14, %vm402_vm13  ;;  %v388_v25 = vand.u32 2147483648, %v376_v7  ;;  %v386_v28 = vand.u32 2147483647, %v376_v7  ;;  %vm382_vm3 = vweird.f32 %v376_v7 }
 0x32a   :  { %v398_v9 = vsub.f32 1.0, %v397_v8 }
 0x32b   :  { %v389_v30 = vor.u32 1.1754944e-38, %v388_v25  ;;  %vm387_vm5 = vcmp.eq.f32.partialorder %v386_v28, 8.507059e+37 }
 0x32c   :  { %v399_v11 = vmul.f32 %v1535_v6, %v398_v9 }
 0x32e   :  { %v400_v13 = vadd.f32 %v1535_v6, %v399_v11 }
 0x32f   :  { %v1537_v14 = vpop.eup %1536 }
 0x330   :  { %v378_v17 = vmul.f32 %v1537_v14, %v376_v7  ;;  %v404_v19 = vsel %vm403_vm15, %v1535_v6, %v400_v13  ;;  %vm383_vm2 = vweird.f32 %v1537_v14 }
 0x331   :  { %v409_v21 = vsel %vm406_vm1, %v408_v15, %v404_v19  ;;  %vm384_vm4 = vmor %vm382_vm3, %vm383_vm2 }
 0x332   :  { %v379_v23 = vsub.f32 1.0, %v378_v17  ;;  %v413_v24 = vmul.f32 2.0, %v409_v21  ;;  %v426_v40 = vmul.f32 %v409_v21, %v1752_v38  ;;  %v474_v17 = vld [vmem:[#allocation2 + $0x8] sm:$0xf] }
 0x334   :  { %v1470_v26 = vadd.f32 -1.0, %v413_v24  ;;  %v380_v27 = vmul.f32 %v1537_v14, %v379_v23 }
 0x336   :  { %428 = vrot.lane.b32.xlu2 %v1470_v26, %s1615_s3  ;;  %v381_v29 = vadd.f32 %v1537_v14, %v380_v27 }
 0x338   :  { %v385_v31 = vsel %vm384_vm4, %v1537_v14, %v381_v29 }
 0x339   :  { %v390_v32 = vsel %vm387_vm5, %v389_v30, %v385_v31 }
 0x33a   :  { %v411_v33 = vmul.f32 2.0, %v390_v32  ;;  %v415_v44 = vmul.f32 %v390_v32, %v1755_v42 }
 0x33c   :  { %v1469_v34 = vadd.f32 -1.0, %v411_v33 }
 0x33e   :  { %417 = vrot.lane.b32.xlu0 %v1469_v34, %s1615_s3 }
 0x390   :  { %v429_v35 = vpop.permute.xlu2 %428 }
 0x391   :  { %v431_v36 = vmul.f32 %v429_v35, %v409_v21 }
 0x393   :  { %433 = vrot.lane.b32.xlu1 %v431_v36, %s1616_s4 }
 0x3b0   :  { %v418_v37 = vpop.permute.xlu0 %417 }
 0x3b1   :  { %v420_v39 = vmul.f32 %v418_v37, %v390_v32 }
 0x3b3   :  { %422 = vrot.lane.b32.xlu2 %v420_v39, %s1616_s4 }
 0x405   :  { %v434_v41 = vpop.permute.xlu1 %433 }
 0x406   :  { %v1779_v43 = vadd.f32 %v434_v41, %v426_v40 }
 0x408   :  { %1538 = vtanh.f32 %v1779_v43 }
 0x40d   :  { %v423_v45 = vpop.permute.xlu2 %422 }
 0x40e   :  { %v1539_v47 = vpop.eup %1538  ;;  %v1783_v48 = vadd.f32 %v423_v45, %v415_v44 }
 0x40f   :  { %445 = vrot.lane.b32.xlu0 %v1539_v47, %s1615_s3 }
 0x410   :  { %1540 = vtanh.f32 %v1783_v48 }
 0x416   :  { %v1541_v49 = vpop.eup %1540 }
 0x417   :  { %439 = vrot.lane.b32.xlu1 %v1541_v49, %s1615_s3 }
 0x481   :  { %v446_v50 = vpop.permute.xlu0 %445 }
 0x482   :  { %v448_v38 = vmul.f32 %v446_v50, %v409_v21 }
 0x484   :  { %v1788_v52 = vpack.c.bf16 %v448_v38, %v448_v38 }
 0x486   :  { %v498_v53 = vunpack.c.l.b16 %v1788_v52 }
 0x488   :  { %v499_v54 = vpack.c.b16 %v498_v53, %v498_v53 }
 0x489   :  { %v440_v55 = vpop.permute.xlu1 %439 }
 0x48a   :  { %v442_v42 = vmul.f32 %v440_v55, %v390_v32  ;;  %500 = vrot.lane.b32.xlu2 %v499_v54, %s1616_s4 }
 0x48c   :  { %v1792_v56 = vpack.c.bf16 %v442_v42, %v442_v42 }
 0x48e   :  { %v477_v57 = vunpack.c.l.b16 %v1792_v56 }
 0x490   :  { %v478_v58 = vpack.c.b16 %v477_v57, %v477_v57 }
 0x492   :  { %479 = vrot.lane.b32.xlu0 %v478_v58, %s1616_s4 }
 0x4e4   :  { %v501_v59 = vpop.permute.xlu2 %500 }
 0x4e5   :  { %1472 = vmatmul.msk.bf16.vlgmr.msrb.gmra.mxu3 %vm83_vm0, %v501_v59 }
 0x4e6   :  { %1101 = vmatpush.bf16.msrb.mxu3 %v1694_v18 }
 0x4ea   :  { %1102 = vmatpush.bf16.msrb.mxu3 %v1712_v22 }
 0x504   :  { %v480_v60 = vpop.permute.xlu0 %479 }
 0x505   :  { %1471 = vmatmul.msk.bf16.vlgmr.msrb.gmra.mxu2 %vm83_vm0, %v480_v60 }
 0x506   :  { %1080 = vmatpush.bf16.msrb.mxu2 %v1686_v16 }
 0x50a   :  { %1081 = vmatpush.bf16.msrb.mxu2 %v1703_v20 }
 0x568   :  { %v514_v63 = vpop.f32.mrf.mxu3 }
 0x569   :  { %v521_v0 = vadd.f32 %v519_v62, %v514_v63 }
 0x56b   :  { %v1474_v1 = vmul.f32 -1.442695, %v521_v0 }
 0x56d   :  { %1542 = vpow2.f32 %v1474_v1 }
 0x570   :  { %v516_v2 = vpop.f32.mrf.mxu3 }
 0x573   :  { %v1543_v3 = vpop.eup %1542 }
 0x574   :  { %v544_v4 = vadd.f32 1.0, %v1543_v3 }
 0x576   :  { %1544 = vrcp.f32 %v544_v4  ;;  %v556_v8 = vand.u32 2147483648, %v544_v4  ;;  %v554_v10 = vand.u32 2147483647, %v544_v4  ;;  %vm550_vm7 = vweird.f32 %v544_v4 }
 0x578   :  { %v557_v12 = vor.u32 1.1754944e-38, %v556_v8  ;;  %vm555_vm9 = vcmp.eq.f32.partialorder %v554_v10, 8.507059e+37 }
 0x57c   :  { %v1545_v5 = vpop.eup %1544 }
 0x57d   :  { %v546_v6 = vmul.f32 %v1545_v5, %v544_v4  ;;  %vm551_vm6 = vweird.f32 %v1545_v5  ;;  %v625_v4 = vld [vmem:[#allocation2 + $0x10] sm:$0xf] }
 0x57e   :  { %vm552_vm8 = vmor %vm550_vm7, %vm551_vm6 }
 0x57f   :  { %v547_v7 = vsub.f32 1.0, %v546_v6 }
 0x581   :  { %v548_v9 = vmul.f32 %v1545_v5, %v547_v7 }
 0x583   :  { %v549_v11 = vadd.f32 %v1545_v5, %v548_v9  ;;  %v623_v9 = vld [vmem:[#allocation2 + $0xc] sm:$0xf] }
 0x585   :  { %v553_v13 = vsel %vm552_vm8, %v1545_v5, %v549_v11  ;;  %v668_v5 = vrot.slane %v625_v4, 2 }
 0x586   :  { %v558_v14 = vsel %vm555_vm9, %v557_v12, %v553_v13 }
 0x587   :  { %v562_v15 = vmul.f32 2.0, %v558_v14  ;;  %v575_v49 = vmul.f32 %v558_v14, %v1779_v43 }
 0x588   :  { %v493_v19 = vpop.f32.mrf.mxu2 }
 0x589   :  { %v497_v21 = vadd.f32 %v493_v19, %v474_v17  ;;  %v1476_v23 = vadd.f32 -1.0, %v562_v15 }
 0x58b   :  { %v1473_v24 = vmul.f32 -1.442695, %v497_v21  ;;  %577 = vrot.lane.b32.xlu1 %v1476_v23, %s1615_s3 }
 0x58d   :  { %1546 = vpow2.f32 %v1473_v24 }
 0x590   :  { %v495_v25 = vpop.f32.mrf.mxu2 }
 0x593   :  { %v1547_v26 = vpop.eup %1546 }
 0x594   :  { %v525_v27 = vadd.f32 1.0, %v1547_v26 }
 0x596   :  { %1548 = vrcp.f32 %v525_v27  ;;  %v537_v31 = vand.u32 2147483648, %v525_v27  ;;  %v535_v33 = vand.u32 2147483647, %v525_v27  ;;  %vm531_vm11 = vweird.f32 %v525_v27 }
 0x598   :  { %v538_v35 = vor.u32 1.1754944e-38, %v537_v31  ;;  %vm536_vm13 = vcmp.eq.f32.partialorder %v535_v33, 8.507059e+37 }
 0x59c   :  { %v1549_v28 = vpop.eup %1548 }
 0x59d   :  { %v527_v29 = vmul.f32 %v1549_v28, %v525_v27  ;;  %vm532_vm10 = vweird.f32 %v1549_v28 }
 0x59e   :  { %vm533_vm12 = vmor %vm531_vm11, %vm532_vm10 }
 0x59f   :  { %v528_v30 = vsub.f32 1.0, %v527_v29 }
 0x5a1   :  { %v529_v32 = vmul.f32 %v1549_v28, %v528_v30 }
 0x5a3   :  { %v530_v34 = vadd.f32 %v1549_v28, %v529_v32 }
 0x5a5   :  { %v534_v36 = vsel %vm533_vm12, %v1549_v28, %v530_v34 }
 0x5a6   :  { %v539_v37 = vsel %vm536_vm13, %v538_v35, %v534_v36 }
 0x5a7   :  { %v560_v39 = vmul.f32 2.0, %v539_v37  ;;  %v564_v53 = vmul.f32 %v539_v37, %v1783_v48 }
 0x5a9   :  { %v1475_v40 = vadd.f32 -1.0, %v560_v39 }
 0x5ab   :  { %566 = vrot.lane.b32.xlu2 %v1475_v40, %s1615_s3 }
 0x5fd   :  { %v578_v41 = vpop.permute.xlu1 %577 }
 0x5fe   :  { %v580_v44 = vmul.f32 %v578_v41, %v558_v14 }
 0x600   :  { %582 = vrot.lane.b32.xlu0 %v580_v44, %s1616_s4 }
 0x605   :  { %v567_v45 = vpop.permute.xlu2 %566 }
 0x606   :  { %v569_v47 = vmul.f32 %v567_v45, %v539_v37 }
 0x608   :  { %571 = vrot.lane.b32.xlu1 %v569_v47, %s1616_s4 }
 0x672   :  { %v583_v50 = vpop.permute.xlu0 %582 }
 0x673   :  { %v1807_v38 = vadd.f32 %v583_v50, %v575_v49 }
 0x675   :  { %1550 = vtanh.f32 %v1807_v38 }
 0x67a   :  { %v572_v54 = vpop.permute.xlu1 %571 }
 0x67b   :  { %v1551_v55 = vpop.eup %1550  ;;  %v1811_v42 = vadd.f32 %v572_v54, %v564_v53 }
 0x67c   :  { %594 = vrot.lane.b32.xlu2 %v1551_v55, %s1615_s3 }
 0x67d   :  { %1552 = vtanh.f32 %v1811_v42 }
 0x683   :  { %v1553_v57 = vpop.eup %1552 }
 0x684   :  { %588 = vrot.lane.b32.xlu0 %v1553_v57, %s1615_s3 }
 0x6d6   :  { %v595_v58 = vpop.permute.xlu2 %594 }
 0x6d7   :  { %v597_v43 = vmul.f32 %v595_v58, %v558_v14 }
 0x6d9   :  { %v1816_v59 = vpack.c.bf16 %v597_v43, %v597_v43 }
 0x6db   :  { %v647_v60 = vunpack.c.l.b16 %v1816_v59 }
 0x6dd   :  { %v648_v61 = vpack.c.b16 %v647_v60, %v647_v60 }
 0x6df   :  { %649 = vrot.lane.b32.xlu1 %v648_v61, %s1616_s4 }
 0x6f6   :  { %v589_v48 = vpop.permute.xlu0 %588 }
 0x6f7   :  { %v591_v62 = vmul.f32 %v589_v48, %v539_v37 }
 0x6f9   :  { %v1820_v63 = vpack.c.bf16 %v591_v62, %v591_v62 }
 0x6fb   :  { %v626_v0 = vunpack.c.l.b16 %v1820_v63 }
 0x6fd   :  { %v627_v1 = vpack.c.b16 %v626_v0, %v626_v0 }
 0x6ff   :  { %628 = vrot.lane.b32.xlu2 %v627_v1, %s1616_s4 }
 0x751   :  { %v650_v2 = vpop.permute.xlu1 %649 }
 0x752   :  { %1478 = vmatmul.msk.bf16.vlgmr.msra.gmra.mxu1 %vm83_vm0, %v650_v2 }
 0x753   :  { %1248 = vmatpush.bf16.msra.mxu1 %v1694_v18 }
 0x757   :  { %1249 = vmatpush.bf16.msra.mxu1 %v1712_v22 }
 0x759   :  { %v629_v3 = vpop.permute.xlu2 %628 }
 0x75a   :  { %1477 = vmatmul.msk.bf16.vlgmr.msra.gmra.mxu0 %vm83_vm0, %v629_v3 }
 0x75b   :  { %1227 = vmatpush.bf16.msra.mxu0 %v1686_v16 }
 0x75f   :  { %1228 = vmatpush.bf16.msra.mxu0 %v1703_v20 }
 0x7cf   :  { %v663_v6 = vpop.f32.mrf.mxu1 }
 0x7d0   :  { %v670_v7 = vadd.f32 %v668_v5, %v663_v6 }
 0x7d2   :  { %v1480_v8 = vmul.f32 -1.442695, %v670_v7 }
 0x7d4   :  { %1554 = vpow2.f32 %v1480_v8 }
 0x7d7   :  { %v642_v10 = vpop.f32.mrf.mxu0  ;;  %v665_v11 = vpop.f32.mrf.mxu1 }
 0x7d8   :  { %v646_v12 = vadd.f32 %v642_v10, %v623_v9  ;;  %v772_v9 = vld [vmem:[#allocation2 + $0xc] sm:$0xf] }
 0x7d9   :  { %v815_v10 = vrot.slane %v772_v9, 2 }
 0x7da   :  { %v1555_v18 = vpop.eup %1554  ;;  %v1479_v13 = vmul.f32 -1.442695, %v646_v12 }
 0x7db   :  { %v693_v22 = vadd.f32 1.0, %v1555_v18 }
 0x7dc   :  { %1556 = vpow2.f32 %v1479_v13  ;;  %v771_v13 = vld [vmem:[#allocation2 + $0x10] sm:$0xf] }
 0x7dd   :  { %1558 = vrcp.f32 %v693_v22  ;;  %v705_v21 = vand.u32 2147483648, %v693_v22  ;;  %v703_v24 = vand.u32 2147483647, %v693_v22  ;;  %vm699_vm15 = vweird.f32 %v693_v22 }
 0x7df   :  { %v644_v14 = vpop.f32.mrf.mxu0  ;;  %v706_v27 = vor.u32 1.1754944e-38, %v705_v21  ;;  %vm704_vm2 = vcmp.eq.f32.partialorder %v703_v24, 8.507059e+37 }
 0x7e2   :  { %v1557_v15 = vpop.eup %1556 }
 0x7e3   :  { %v1559_v16 = vpop.eup %1558  ;;  %v674_v17 = vadd.f32 1.0, %v1557_v15 }
 0x7e4   :  { %v695_v20 = vmul.f32 %v1559_v16, %v693_v22  ;;  %vm700_vm14 = vweird.f32 %v1559_v16 }
 0x7e5   :  { %1560 = vrcp.f32 %v674_v17  ;;  %vm701_vm1 = vmor %vm699_vm15, %vm700_vm14  ;;  %v686_v33 = vand.u32 2147483648, %v674_v17  ;;  %v684_v36 = vand.u32 2147483647, %v674_v17  ;;  %vm680_vm4 = vweird.f32 %v674_v17 }
 0x7e6   :  { %v696_v19 = vsub.f32 1.0, %v695_v20 }
 0x7e7   :  { %v687_v39 = vor.u32 1.1754944e-38, %v686_v33  ;;  %vm685_vm6 = vcmp.eq.f32.partialorder %v684_v36, 8.507059e+37 }
 0x7e8   :  { %v697_v23 = vmul.f32 %v1559_v16, %v696_v19 }
 0x7ea   :  { %v698_v25 = vadd.f32 %v1559_v16, %v697_v23 }
 0x7eb   :  { %v1561_v26 = vpop.eup %1560 }
 0x7ec   :  { %v676_v28 = vmul.f32 %v1561_v26, %v674_v17  ;;  %v702_v29 = vsel %vm701_vm1, %v1559_v16, %v698_v25  ;;  %vm681_vm3 = vweird.f32 %v1561_v26 }
 0x7ed   :  { %v707_v30 = vsel %vm704_vm2, %v706_v27, %v702_v29  ;;  %vm682_vm5 = vmor %vm680_vm4, %vm681_vm3 }
 0x7ee   :  { %v677_v31 = vsub.f32 1.0, %v676_v28  ;;  %v711_v32 = vmul.f32 2.0, %v707_v30  ;;  %v724_v54 = vmul.f32 %v707_v30, %v1807_v38 }
 0x7f0   :  { %v1482_v34 = vadd.f32 -1.0, %v711_v32  ;;  %v678_v35 = vmul.f32 %v1561_v26, %v677_v31 }
 0x7f2   :  { %726 = vrot.lane.b32.xlu0 %v1482_v34, %s1615_s3  ;;  %v679_v37 = vadd.f32 %v1561_v26, %v678_v35 }
 0x7f4   :  { %v683_v40 = vsel %vm682_vm5, %v1561_v26, %v679_v37 }
 0x7f5   :  { %v688_v41 = vsel %vm685_vm6, %v687_v39, %v683_v40 }
 0x7f6   :  { %v709_v44 = vmul.f32 2.0, %v688_v41  ;;  %v713_v43 = vmul.f32 %v688_v41, %v1811_v42 }
 0x7f8   :  { %v1481_v45 = vadd.f32 -1.0, %v709_v44 }
 0x7fa   :  { %715 = vrot.lane.b32.xlu1 %v1481_v45, %s1615_s3 }
 0x864   :  { %v727_v47 = vpop.permute.xlu0 %726 }
 0x865   :  { %v729_v49 = vmul.f32 %v727_v47, %v707_v30 }
 0x867   :  { %731 = vrot.lane.b32.xlu2 %v729_v49, %s1616_s4 }
 0x86c   :  { %v716_v50 = vpop.permute.xlu1 %715 }
 0x86d   :  { %v718_v53 = vmul.f32 %v716_v50, %v688_v41 }
 0x86f   :  { %720 = vrot.lane.b32.xlu0 %v718_v53, %s1616_s4 }
 0x8c1   :  { %v732_v55 = vpop.permute.xlu2 %731 }
 0x8c2   :  { %v1835_v57 = vadd.f32 %v732_v55, %v724_v54 }
 0x8c4   :  { %1562 = vtanh.f32 %v1835_v57 }
 0x8ca   :  { %v1563_v58 = vpop.eup %1562 }
 0x8cb   :  { %743 = vrot.lane.b32.xlu1 %v1563_v58, %s1615_s3 }
 0x8e1   :  { %v721_v60 = vpop.permute.xlu0 %720 }
 0x8e2   :  { %v1840_v61 = vadd.f32 %v721_v60, %v713_v43 }
 0x8e4   :  { %1564 = vtanh.f32 %v1840_v61 }
 0x8ea   :  { %v1565_v48 = vpop.eup %1564 }
 0x8eb   :  { %737 = vrot.lane.b32.xlu2 %v1565_v48, %s1615_s3 }
 0x93d   :  { %v744_v62 = vpop.permute.xlu1 %743 }
 0x93e   :  { %v746_v38 = vmul.f32 %v744_v62, %v707_v30 }
 0x940   :  { %v1844_v0 = vpack.c.bf16 %v746_v38, %v746_v38 }
 0x942   :  { %v794_v1 = vunpack.c.l.b16 %v1844_v0 }
 0x944   :  { %v795_v2 = vpack.c.b16 %v794_v1, %v794_v1 }
 0x945   :  { %v738_v3 = vpop.permute.xlu2 %737 }
 0x946   :  { %v740_v4 = vmul.f32 %v738_v3, %v688_v41  ;;  %796 = vrot.lane.b32.xlu0 %v795_v2, %s1616_s4 }
 0x948   :  { %v1848_v42 = vpack.c.bf16 %v740_v4, %v740_v4 }
 0x94a   :  { %v773_v5 = vunpack.c.l.b16 %v1848_v42 }
 0x94c   :  { %v774_v6 = vpack.c.b16 %v773_v5, %v773_v5 }
 0x94e   :  { %775 = vrot.lane.b32.xlu1 %v774_v6, %s1616_s4 }
 0x9b8   :  { %v797_v7 = vpop.permute.xlu0 %796 }
 0x9b9   :  { %1484 = vmatmul.msk.bf16.vlgmr.msra.gmra.mxu3 %vm83_vm0, %v797_v7 }
 0x9c0   :  { %v776_v8 = vpop.permute.xlu1 %775 }
 0x9c1   :  { %1483 = vmatmul.msk.bf16.vlgmr.msra.gmra.mxu2 %vm83_vm0, %v776_v8 }
 0xa3c   :  { %v810_v11 = vpop.f32.mrf.mxu3 }
 0xa3d   :  { %v817_v12 = vadd.f32 %v815_v10, %v810_v11 }
 0xa3f   :  { %v1486_v18 = vmul.f32 -1.442695, %v817_v12 }
 0xa41   :  { %1566 = vpow2.f32 %v1486_v18 }
 0xa44   :  { %v789_v22 = vpop.f32.mrf.mxu2  ;;  %v812_v14 = vpop.f32.mrf.mxu3 }
 0xa45   :  { %v793_v15 = vadd.f32 %v789_v22, %v771_v13  ;;  %v919_v14 = vld [vmem:[#allocation2 + $0x8] sm:$0xf] }
 0xa47   :  { %v1567_v16 = vpop.eup %1566  ;;  %v1485_v17 = vmul.f32 -1.442695, %v793_v15  ;;  %v962_v15 = vrot.slane %v919_v14, 2 }
 0xa48   :  { %v840_v20 = vadd.f32 1.0, %v1567_v16 }
 0xa49   :  { %1568 = vpow2.f32 %v1485_v17 }
 0xa4a   :  { %1570 = vrcp.f32 %v840_v20  ;;  %v852_v27 = vand.u32 2147483648, %v840_v20  ;;  %v850_v29 = vand.u32 2147483647, %v840_v20  ;;  %vm846_vm8 = vweird.f32 %v840_v20 }
 0xa4c   :  { %v791_v19 = vpop.f32.mrf.mxu2  ;;  %v853_v32 = vor.u32 1.1754944e-38, %v852_v27  ;;  %vm851_vm10 = vcmp.eq.f32.partialorder %v850_v29, 8.507059e+37 }
 0xa4f   :  { %v1569_v21 = vpop.eup %1568 }
 0xa50   :  { %v1571_v23 = vpop.eup %1570  ;;  %v821_v24 = vadd.f32 1.0, %v1569_v21 }
 0xa51   :  { %v842_v25 = vmul.f32 %v1571_v23, %v840_v20  ;;  %vm847_vm7 = vweird.f32 %v1571_v23 }
 0xa52   :  { %1572 = vrcp.f32 %v821_v24  ;;  %vm848_vm9 = vmor %vm846_vm8, %vm847_vm7  ;;  %v833_v39 = vand.u32 2147483648, %v821_v24  ;;  %v831_v44 = vand.u32 2147483647, %v821_v24  ;;  %vm827_vm12 = vweird.f32 %v821_v24 }
 0xa53   :  { %v843_v26 = vsub.f32 1.0, %v842_v25 }
 0xa54   :  { %v834_v47 = vor.u32 1.1754944e-38, %v833_v39  ;;  %vm832_vm14 = vcmp.eq.f32.partialorder %v831_v44, 8.507059e+37 }
 0xa55   :  { %v844_v28 = vmul.f32 %v1571_v23, %v843_v26 }
 0xa57   :  { %v845_v30 = vadd.f32 %v1571_v23, %v844_v28 }
 0xa58   :  { %v1573_v31 = vpop.eup %1572 }
 0xa59   :  { %v823_v33 = vmul.f32 %v1573_v31, %v821_v24  ;;  %v849_v34 = vsel %vm848_vm9, %v1571_v23, %v845_v30  ;;  %vm828_vm11 = vweird.f32 %v1573_v31 }
 0xa5a   :  { %v854_v35 = vsel %vm851_vm10, %v853_v32, %v849_v34  ;;  %vm829_vm13 = vmor %vm827_vm12, %vm828_vm11 }
 0xa5b   :  { %v824_v36 = vsub.f32 1.0, %v823_v33  ;;  %v858_v37 = vmul.f32 2.0, %v854_v35  ;;  %v871_v48 = vmul.f32 %v854_v35, %v1835_v57 }
 0xa5d   :  { %v1488_v40 = vadd.f32 -1.0, %v858_v37  ;;  %v825_v41 = vmul.f32 %v1573_v31, %v824_v36 }
 0xa5f   :  { %873 = vrot.lane.b32.xlu2 %v1488_v40, %s1615_s3  ;;  %v826_v45 = vadd.f32 %v1573_v31, %v825_v41 }
 0xa61   :  { %v830_v49 = vsel %vm829_vm13, %v1573_v31, %v826_v45 }
 0xa62   :  { %v835_v50 = vsel %vm832_vm14, %v834_v47, %v830_v49 }
 0xa63   :  { %v856_v53 = vmul.f32 2.0, %v835_v50  ;;  %v860_v1 = vmul.f32 %v835_v50, %v1840_v61 }
 0xa65   :  { %v1487_v54 = vadd.f32 -1.0, %v856_v53 }
 0xa67   :  { %862 = vrot.lane.b32.xlu0 %v1487_v54, %s1615_s3 }
 0xab9   :  { %v874_v55 = vpop.permute.xlu2 %873 }
 0xaba   :  { %v876_v58 = vmul.f32 %v874_v55, %v854_v35 }
 0xabc   :  { %878 = vrot.lane.b32.xlu1 %v876_v58, %s1616_s4 }
 0xad9   :  { %v863_v43 = vpop.permute.xlu0 %862 }
 0xada   :  { %v865_v60 = vmul.f32 %v863_v43, %v835_v50 }
 0xadc   :  { %867 = vrot.lane.b32.xlu2 %v865_v60, %s1616_s4 }
 0xb2e   :  { %v879_v62 = vpop.permute.xlu1 %878 }
 0xb2f   :  { %v1859_v38 = vadd.f32 %v879_v62, %v871_v48 }
 0xb31   :  { %1574 = vtanh.f32 %v1859_v38 }
 0xb36   :  { %v868_v2 = vpop.permute.xlu2 %867 }
 0xb37   :  { %v1575_v3 = vpop.eup %1574  ;;  %v1863_v4 = vadd.f32 %v868_v2, %v860_v1 }
 0xb38   :  { %890 = vrot.lane.b32.xlu0 %v1575_v3, %s1615_s3 }
 0xb39   :  { %1576 = vtanh.f32 %v1863_v4 }
 0xb3f   :  { %v1577_v5 = vpop.eup %1576 }
 0xb40   :  { %884 = vrot.lane.b32.xlu1 %v1577_v5, %s1615_s3 }
 0xbaa   :  { %v891_v6 = vpop.permute.xlu0 %890 }
 0xbab   :  { %v893_v57 = vmul.f32 %v891_v6, %v854_v35  ;;  %v918_v35 = vld [vmem:[#allocation2 + $0x14] sm:$0xf] }
 0xbad   :  { %v1868_v7 = vpack.c.bf16 %v893_v57, %v893_v57 }
 0xbaf   :  { %v941_v8 = vunpack.c.l.b16 %v1868_v7 }
 0xbb1   :  { %v942_v9 = vpack.c.b16 %v941_v8, %v941_v8 }
 0xbb2   :  { %v885_v10 = vpop.permute.xlu1 %884 }
 0xbb3   :  { %v887_v61 = vmul.f32 %v885_v10, %v835_v50  ;;  %943 = vrot.lane.b32.xlu2 %v942_v9, %s1616_s4 }
 0xbb5   :  { %v1872_v11 = vpack.c.bf16 %v887_v61, %v887_v61 }
 0xbb7   :  { %v920_v12 = vunpack.c.l.b16 %v1872_v11 }
 0xbb9   :  { %v921_v18 = vpack.c.b16 %v920_v12, %v920_v12 }
 0xbbb   :  { %922 = vrot.lane.b32.xlu0 %v921_v18, %s1616_s4 }
 0xc0d   :  { %v944_v13 = vpop.permute.xlu2 %943 }
 0xc0e   :  { %1490 = vmatmul.msk.bf16.vlgmr.msrb.gmra.mxu1 %vm83_vm0, %v944_v13 }
 0xc2d   :  { %v923_v22 = vpop.permute.xlu0 %922 }
 0xc2e   :  { %1489 = vmatmul.msk.bf16.vlgmr.msrb.gmra.mxu0 %vm83_vm0, %v923_v22 }
 0xc8b   :  { %v957_v16 = vpop.f32.mrf.mxu1 }
 0xc8c   :  { %v964_v17 = vadd.f32 %v962_v15, %v957_v16 }
 0xc8e   :  { %v1492_v20 = vmul.f32 -1.442695, %v964_v17 }
 0xc90   :  { %1578 = vpow2.f32 %v1492_v20 }
 0xc93   :  { %v959_v19 = vpop.f32.mrf.mxu1 }
 0xc96   :  { %v1579_v21 = vpop.eup %1578 }
 0xc97   :  { %v987_v23 = vadd.f32 1.0, %v1579_v21 }
 0xc99   :  { %1580 = vrcp.f32 %v987_v23  ;;  %v999_v27 = vand.u32 2147483648, %v987_v23  ;;  %v997_v29 = vand.u32 2147483647, %v987_v23  ;;  %vm993_vm1 = vweird.f32 %v987_v23 }
 0xc9b   :  { %v1000_v31 = vor.u32 1.1754944e-38, %v999_v27  ;;  %vm998_vm3 = vcmp.eq.f32.partialorder %v997_v29, 8.507059e+37 }
 0xc9f   :  { %v1581_v24 = vpop.eup %1580 }
 0xca0   :  { %v989_v25 = vmul.f32 %v1581_v24, %v987_v23  ;;  %vm994_vm15 = vweird.f32 %v1581_v24 }
 0xca1   :  { %vm995_vm2 = vmor %vm993_vm1, %vm994_vm15 }
 0xca2   :  { %v990_v26 = vsub.f32 1.0, %v989_v25  ;;  %v1066_v25 = vld [vmem:[#allocation2 + $0x4] sm:$0xf] }
 0xca4   :  { %v991_v28 = vmul.f32 %v1581_v24, %v990_v26  ;;  %v1109_v26 = vrot.slane %v1066_v25, 2 }
 0xca6   :  { %v992_v30 = vadd.f32 %v1581_v24, %v991_v28 }
 0xca8   :  { %v996_v32 = vsel %vm995_vm2, %v1581_v24, %v992_v30  ;;  %v1065_v30 = vld [vmem:[#allocation2 + $0x18] sm:$0xf] }
 0xca9   :  { %v1001_v33 = vsel %vm998_vm3, %v1000_v31, %v996_v32 }
 0xcaa   :  { %v1005_v34 = vmul.f32 2.0, %v1001_v33  ;;  %v1018_v57 = vmul.f32 %v1001_v33, %v1859_v38 }
 0xcab   :  { %v936_v36 = vpop.f32.mrf.mxu0 }
 0xcac   :  { %v940_v37 = vadd.f32 %v936_v36, %v918_v35  ;;  %v1494_v39 = vadd.f32 -1.0, %v1005_v34 }
 0xcae   :  { %v1491_v40 = vmul.f32 -1.442695, %v940_v37  ;;  %1020 = vrot.lane.b32.xlu1 %v1494_v39, %s1615_s3 }
 0xcb0   :  { %1582 = vpow2.f32 %v1491_v40 }
 0xcb3   :  { %v938_v41 = vpop.f32.mrf.mxu0 }
 0xcb6   :  { %v1583_v44 = vpop.eup %1582 }
 0xcb7   :  { %v968_v45 = vadd.f32 1.0, %v1583_v44 }
 0xcb9   :  { %1584 = vrcp.f32 %v968_v45  ;;  %v980_v53 = vand.u32 2147483648, %v968_v45  ;;  %v978_v55 = vand.u32 2147483647, %v968_v45  ;;  %vm974_vm5 = vweird.f32 %v968_v45 }
 0xcbb   :  { %v981_v43 = vor.u32 1.1754944e-38, %v980_v53  ;;  %vm979_vm7 = vcmp.eq.f32.partialorder %v978_v55, 8.507059e+37 }
 0xcbf   :  { %v1585_v47 = vpop.eup %1584 }
 0xcc0   :  { %v970_v49 = vmul.f32 %v1585_v47, %v968_v45  ;;  %vm975_vm4 = vweird.f32 %v1585_v47 }
 0xcc1   :  { %vm976_vm6 = vmor %vm974_vm5, %vm975_vm4 }
 0xcc2   :  { %v971_v50 = vsub.f32 1.0, %v970_v49 }
 0xcc4   :  { %v972_v54 = vmul.f32 %v1585_v47, %v971_v50 }
 0xcc6   :  { %v973_v58 = vadd.f32 %v1585_v47, %v972_v54 }
 0xcc8   :  { %v977_v60 = vsel %vm976_vm6, %v1585_v47, %v973_v58 }
 0xcc9   :  { %v982_v48 = vsel %vm979_vm7, %v981_v43, %v977_v60 }
 0xcca   :  { %v1003_v62 = vmul.f32 2.0, %v982_v48  ;;  %v1007_v10 = vmul.f32 %v982_v48, %v1863_v4 }
 0xccc   :  { %v1493_v1 = vadd.f32 -1.0, %v1003_v62 }
 0xcce   :  { %1009 = vrot.lane.b32.xlu2 %v1493_v1, %s1615_s3 }
 0xd20   :  { %v1021_v2 = vpop.permute.xlu1 %1020 }
 0xd21   :  { %v1023_v3 = vmul.f32 %v1021_v2, %v1001_v33 }
 0xd23   :  { %1025 = vrot.lane.b32.xlu0 %v1023_v3, %s1616_s4 }
 0xd28   :  { %v1010_v5 = vpop.permute.xlu2 %1009 }
 0xd29   :  { %v1012_v6 = vmul.f32 %v1010_v5, %v982_v48 }
 0xd2b   :  { %1014 = vrot.lane.b32.xlu1 %v1012_v6, %s1616_s4 }
 0xd95   :  { %v1026_v8 = vpop.permute.xlu0 %1025 }
 0xd96   :  { %v1883_v9 = vadd.f32 %v1026_v8, %v1018_v57 }
 0xd98   :  { %1586 = vtanh.f32 %v1883_v9 }
 0xd9d   :  { %v1015_v61 = vpop.permute.xlu1 %1014 }
 0xd9e   :  { %v1587_v12 = vpop.eup %1586  ;;  %v1887_v18 = vadd.f32 %v1015_v61, %v1007_v10 }
 0xd9f   :  { %1037 = vrot.lane.b32.xlu2 %v1587_v12, %s1615_s3 }
 0xda0   :  { %1588 = vtanh.f32 %v1887_v18 }
 0xda6   :  { %v1589_v13 = vpop.eup %1588 }
 0xda7   :  { %1031 = vrot.lane.b32.xlu0 %v1589_v13, %s1615_s3 }
 0xdf9   :  { %v1038_v22 = vpop.permute.xlu2 %1037 }
 0xdfa   :  { %v1040_v38 = vmul.f32 %v1038_v22, %v1001_v33 }
 0xdfc   :  { %v1892_v14 = vpack.c.bf16 %v1040_v38, %v1040_v38 }
 0xdfe   :  { %v1088_v15 = vunpack.c.l.b16 %v1892_v14 }
 0xe00   :  { %v1089_v16 = vpack.c.b16 %v1088_v15, %v1088_v15 }
 0xe02   :  { %1090 = vrot.lane.b32.xlu1 %v1089_v16, %s1616_s4 }
 0xe19   :  { %v1032_v4 = vpop.permute.xlu0 %1031 }
 0xe1a   :  { %v1034_v17 = vmul.f32 %v1032_v4, %v982_v48 }
 0xe1c   :  { %v1896_v20 = vpack.c.bf16 %v1034_v17, %v1034_v17 }
 0xe1e   :  { %v1067_v19 = vunpack.c.l.b16 %v1896_v20 }
 0xe20   :  { %v1068_v21 = vpack.c.b16 %v1067_v19, %v1067_v19 }
 0xe22   :  { %1069 = vrot.lane.b32.xlu2 %v1068_v21, %s1616_s4 }
 0xe74   :  { %v1091_v23 = vpop.permute.xlu1 %1090 }
 0xe75   :  { %1496 = vmatmul.msk.bf16.vlgmr.msrb.gmra.mxu3 %vm83_vm0, %v1091_v23 }
 0xe7c   :  { %v1070_v24 = vpop.permute.xlu2 %1069 }
 0xe7d   :  { %1495 = vmatmul.msk.bf16.vlgmr.msrb.gmra.mxu2 %vm83_vm0, %v1070_v24 }
 0xef8   :  { %v1104_v27 = vpop.f32.mrf.mxu3 }
 0xef9   :  { %v1111_v28 = vadd.f32 %v1109_v26, %v1104_v27 }
 0xefb   :  { %v1498_v29 = vmul.f32 -1.442695, %v1111_v28 }
 0xefd   :  { %1590 = vpow2.f32 %v1498_v29 }
 0xf00   :  { %v1083_v31 = vpop.f32.mrf.mxu2  ;;  %v1106_v32 = vpop.f32.mrf.mxu3 }
 0xf01   :  { %v1087_v33 = vadd.f32 %v1083_v31, %v1065_v30 }
 0xf03   :  { %v1591_v34 = vpop.eup %1590  ;;  %v1497_v35 = vmul.f32 -1.442695, %v1087_v33 }
 0xf04   :  { %v1134_v36 = vadd.f32 1.0, %v1591_v34 }
 0xf05   :  { %1592 = vpow2.f32 %v1497_v35 }
 0xf06   :  { %1594 = vrcp.f32 %v1134_v36  ;;  %v1146_v47 = vand.u32 2147483648, %v1134_v36  ;;  %v1144_v50 = vand.u32 2147483647, %v1134_v36  ;;  %vm1140_vm9 = vweird.f32 %v1134_v36 }
 0xf08   :  { %v1085_v37 = vpop.f32.mrf.mxu2  ;;  %v1147_v55 = vor.u32 1.1754944e-38, %v1146_v47  ;;  %vm1145_vm11 = vcmp.eq.f32.partialorder %v1144_v50, 8.507059e+37 }
 0xf0b   :  { %v1593_v39 = vpop.eup %1592 }
 0xf0c   :  { %v1595_v40 = vpop.eup %1594  ;;  %v1115_v41 = vadd.f32 1.0, %v1593_v39 }
 0xf0d   :  { %v1136_v44 = vmul.f32 %v1595_v40, %v1134_v36  ;;  %vm1141_vm8 = vweird.f32 %v1595_v40  ;;  %v1213_v36 = vld [vmem:[#allocation2] sm:$0xf] }
 0xf0e   :  { %1596 = vrcp.f32 %v1115_v41  ;;  %vm1142_vm10 = vmor %vm1140_vm9, %vm1141_vm8  ;;  %v1127_v1 = vand.u32 2147483648, %v1115_v41  ;;  %v1125_v5 = vand.u32 2147483647, %v1115_v41  ;;  %vm1121_vm13 = vweird.f32 %v1115_v41 }
 0xf0f   :  { %v1137_v45 = vsub.f32 1.0, %v1136_v44  ;;  %v1256_v37 = vrot.slane %v1213_v36, 2  ;;  %v1212_v44 = vld [vmem:[#allocation2 + $0x1c] sm:$0xf]  ;;  %vm302_vm8 = vcmask 1040384   ;;  %vm310_vm9 = vcmask 253952  }
 0xf10   :  { %v1128_v57 = vor.u32 1.1754944e-38, %v1127_v1  ;;  %vm1126_vm15 = vcmp.eq.f32.partialorder %v1125_v5, 8.507059e+37 }
 0xf11   :  { %v1138_v49 = vmul.f32 %v1595_v40, %v1137_v45 }
 0xf13   :  { %v1139_v53 = vadd.f32 %v1595_v40, %v1138_v49 }
 0xf14   :  { %v1597_v54 = vpop.eup %1596 }
 0xf15   :  { %v1117_v58 = vmul.f32 %v1597_v54, %v1115_v41  ;;  %v1143_v43 = vsel %vm1142_vm10, %v1595_v40, %v1139_v53  ;;  %vm1122_vm12 = vweird.f32 %v1597_v54  ;;  %vm1414_vm10 = vcmask 516352  }
 0xf16   :  { %v1148_v60 = vsel %vm1145_vm11, %v1147_v55, %v1143_v43  ;;  %vm1123_vm14 = vmor %vm1121_vm13, %vm1122_vm12 }
 0xf17   :  { %v1118_v48 = vsub.f32 1.0, %v1117_v58  ;;  %v1152_v62 = vmul.f32 2.0, %v1148_v60  ;;  %v1165_v16 = vmul.f32 %v1148_v60, %v1883_v9 }
 0xf19   :  { %v1500_v2 = vadd.f32 -1.0, %v1152_v62  ;;  %v1119_v3 = vmul.f32 %v1597_v54, %v1118_v48 }
 0xf1b   :  { %1167 = vrot.lane.b32.xlu0 %v1500_v2, %s1615_s3  ;;  %v1120_v6 = vadd.f32 %v1597_v54, %v1119_v3 }
 0xf1d   :  { %v1124_v8 = vsel %vm1123_vm14, %v1597_v54, %v1120_v6 }
 0xf1e   :  { %v1129_v10 = vsel %vm1126_vm15, %v1128_v57, %v1124_v8 }
 0xf1f   :  { %v1150_v61 = vmul.f32 2.0, %v1129_v10  ;;  %v1154_v21 = vmul.f32 %v1129_v10, %v1887_v18 }
 0xf21   :  { %v1499_v12 = vadd.f32 -1.0, %v1150_v61 }
 0xf23   :  { %1156 = vrot.lane.b32.xlu1 %v1499_v12, %s1615_s3 }
 0xf8d   :  { %v1168_v13 = vpop.permute.xlu0 %1167 }
 0xf8e   :  { %v1170_v22 = vmul.f32 %v1168_v13, %v1148_v60 }
 0xf90   :  { %1172 = vrot.lane.b32.xlu2 %v1170_v22, %s1616_s4 }
 0xf95   :  { %v1157_v38 = vpop.permute.xlu1 %1156 }
 0xf96   :  { %v1159_v15 = vmul.f32 %v1157_v38, %v1129_v10 }
 0xf98   :  { %1161 = vrot.lane.b32.xlu0 %v1159_v15, %s1616_s4 }
 0xfea   :  { %v1173_v4 = vpop.permute.xlu2 %1172 }
 0xfeb   :  { %v1907_v17 = vadd.f32 %v1173_v4, %v1165_v16 }
 0xfed   :  { %1598 = vtanh.f32 %v1907_v17 }
 0xff3   :  { %v1599_v19 = vpop.eup %1598 }
 0xff4   :  { %1184 = vrot.lane.b32.xlu1 %v1599_v19, %s1615_s3 }
0x100a   :  { %v1162_v23 = vpop.permute.xlu0 %1161 }
0x100b   :  { %v1912_v24 = vadd.f32 %v1162_v23, %v1154_v21 }
0x100d   :  { %1600 = vtanh.f32 %v1912_v24 }
0x1013   :  { %v1601_v25 = vpop.eup %1600 }
0x1014   :  { %1178 = vrot.lane.b32.xlu2 %v1601_v25, %s1615_s3 }
0x1066   :  { %v1185_v26 = vpop.permute.xlu1 %1184 }
0x1067   :  { %v1187_v9 = vmul.f32 %v1185_v26, %v1148_v60 }
0x1069   :  { %v1916_v27 = vpack.c.bf16 %v1187_v9, %v1187_v9 }
0x106b   :  { %v1235_v28 = vunpack.c.l.b16 %v1916_v27 }
0x106d   :  { %v1236_v29 = vpack.c.b16 %v1235_v28, %v1235_v28 }
0x106e   :  { %v1179_v30 = vpop.permute.xlu2 %1178 }
0x106f   :  { %v1181_v31 = vmul.f32 %v1179_v30, %v1129_v10  ;;  %1237 = vrot.lane.b32.xlu0 %v1236_v29, %s1616_s4 }
0x1071   :  { %v1920_v18 = vpack.c.bf16 %v1181_v31, %v1181_v31  ;;  %v314_v31 = vrot.slane %v1760_v46, 3 }
0x1073   :  { %v1214_v32 = vunpack.c.l.b16 %v1920_v18 }
0x1075   :  { %v1215_v33 = vpack.c.b16 %v1214_v32, %v1214_v32  ;;  %v317_v32 = vsel %vm302_vm8, %v1760_v46, %v314_v31 }
0x1077   :  { %1216 = vrot.lane.b32.xlu1 %v1215_v33, %s1616_s4  ;;  %v761_v33 = vrot.slane %v1844_v0, 3 }
0x10e1   :  { %v1238_v34 = vpop.permute.xlu0 %1237 }
0x10e2   :  { %1502 = vmatmul.msk.bf16.vlgmr.msra.gmra.mxu1 %vm83_vm0, %v1238_v34  ;;  %v764_v34 = vsel %vm302_vm8, %v1844_v0, %v761_v33 }
0x10e9   :  { %v1217_v35 = vpop.permute.xlu1 %1216 }
0x10ea   :  { %1501 = vmatmul.msk.bf16.vlgmr.msra.gmra.mxu0 %vm83_vm0, %v1217_v35  ;;  %v1202_v35 = vrot.slane %v1916_v27, 3 }
0x10ec   :  { %v1205_v36 = vsel %vm302_vm8, %v1916_v27, %v1202_v35 }
0x115f   :  { %v1251_v39 = vpop.f32.mrf.mxu1 }
0x1160   :  { %v1258_v40 = vadd.f32 %v1256_v37, %v1251_v39  ;;  %v451_v37 = vrot.slane %v1792_v56, 3  ;;  %v896_v39 = vrot.slane %v1872_v11, 3 }
0x1162   :  { %v1504_v41 = vmul.f32 -1.442695, %v1258_v40  ;;  %v454_v46 = vsel %vm302_vm8, %v1792_v56, %v451_v37  ;;  %v899_v0 = vsel %vm302_vm8, %v1872_v11, %v896_v39 }
0x1164   :  { %1602 = vpow2.f32 %v1504_v41 }
0x1167   :  { %v1230_v45 = vpop.f32.mrf.mxu0  ;;  %v1253_v47 = vpop.f32.mrf.mxu1 }
0x1168   :  { %v1234_v49 = vadd.f32 %v1230_v45, %v1212_v44 }
0x116a   :  { %v1603_v50 = vpop.eup %1602  ;;  %v1503_v53 = vmul.f32 -1.442695, %v1234_v49  ;;  %v463_v49 = vrot.slane %v1788_v52, 3 }
0x116b   :  { %v1281_v54 = vadd.f32 1.0, %v1603_v50 }
0x116c   :  { %1604 = vpow2.f32 %v1503_v53  ;;  %v908_v53 = vrot.slane %v1868_v7, 3 }
0x116d   :  { %1606 = vrcp.f32 %v1281_v54  ;;  %v1293_v1 = vand.u32 2147483648, %v1281_v54  ;;  %v1291_v3 = vand.u32 2147483647, %v1281_v54  ;;  %vm1287_vm1 = vweird.f32 %v1281_v54 }
0x116f   :  { %v1232_v55 = vpop.f32.mrf.mxu0  ;;  %v1294_v57 = vor.u32 1.1754944e-38, %v1293_v1  ;;  %vm1292_vm3 = vcmp.eq.f32.partialorder %v1291_v3, 8.507059e+37 }
0x1170   :  { %v911_v55 = vsel %vm302_vm8, %v1868_v7, %v908_v53 }
0x1172   :  { %v1605_v58 = vpop.eup %1604 }
0x1173   :  { %v1607_v43 = vpop.eup %1606  ;;  %v1262_v60 = vadd.f32 1.0, %v1605_v58 }
0x1174   :  { %v1283_v48 = vmul.f32 %v1607_v43, %v1281_v54  ;;  %vm1288_vm0 = vweird.f32 %v1607_v43 }
0x1175   :  { %1608 = vrcp.f32 %v1262_v60  ;;  %vm1289_vm2 = vmor %vm1287_vm1, %vm1288_vm0  ;;  %v1274_v22 = vand.u32 2147483648, %v1262_v60  ;;  %v1272_v16 = vand.u32 2147483647, %v1262_v60  ;;  %vm1268_vm5 = vweird.f32 %v1262_v60 }
0x1176   :  { %v1284_v62 = vsub.f32 1.0, %v1283_v48  ;;  %v301_v48 = vrot.slane %v1764_v51, 3 }
0x1177   :  { %v1275_v19 = vor.u32 1.1754944e-38, %v1274_v22  ;;  %vm1273_vm7 = vcmp.eq.f32.partialorder %v1272_v16, 8.507059e+37  ;;  %v600_v16 = vrot.slane %v1820_v63, 3 }
0x1178   :  { %v1285_v2 = vmul.f32 %v1607_v43, %v1284_v62  ;;  %v749_v62 = vrot.slane %v1848_v42, 3 }
0x117a   :  { %v1286_v5 = vadd.f32 %v1607_v43, %v1285_v2 }
0x117b   :  { %v1609_v6 = vpop.eup %1608 }
0x117c   :  { %v1264_v8 = vmul.f32 %v1609_v6, %v1262_v60  ;;  %v1290_v10 = vsel %vm1289_vm2, %v1607_v43, %v1286_v5  ;;  %vm1269_vm4 = vweird.f32 %v1609_v6 }
0x117d   :  { %v1926_v61 = vsel %vm1292_vm3, %v1294_v57, %v1290_v10  ;;  %vm1270_vm6 = vmor %vm1268_vm5, %vm1269_vm4 }
0x117e   :  { %v1265_v12 = vsub.f32 1.0, %v1264_v8  ;;  %v1299_v13 = vmul.f32 2.0, %v1926_v61  ;;  %v1312_v40 = vmul.f32 %v1926_v61, %v1907_v17  ;;  %v466_v17 = vsel %vm302_vm8, %v1788_v52, %v463_v49 }
0x117f   :  { %v1055_v52 = vrot.slane %v1892_v14, 3 }
0x1180   :  { %v1506_v38 = vadd.f32 -1.0, %v1299_v13  ;;  %v1266_v15 = vmul.f32 %v1609_v6, %v1265_v12 }
0x1181   :  { %v1058_v60 = vsel %vm302_vm8, %v1892_v14, %v1055_v52  ;;  %v752_v14 = vsel %vm302_vm8, %v1848_v42, %v749_v62 }
0x1182   :  { %1314 = vrot.lane.b32.xlu2 %v1506_v38, %s1615_s3  ;;  %v1267_v4 = vadd.f32 %v1609_v6, %v1266_v15 }
0x1184   :  { %v1271_v21 = vsel %vm1270_vm6, %v1609_v6, %v1267_v4 }
0x1185   :  { %v1930_v23 = vsel %vm1273_vm7, %v1275_v19, %v1271_v21 }
0x1186   :  { %v1297_v25 = vmul.f32 2.0, %v1930_v23  ;;  %v1301_v44 = vmul.f32 %v1930_v23, %v1912_v24  ;;  %v612_v24 = vrot.slane %v1816_v59, 3 }
0x1188   :  { %v1505_v26 = vadd.f32 -1.0, %v1297_v25  ;;  %v615_v58 = vsel %vm302_vm8, %v1816_v59, %v612_v24  ;;  %v305_v59 = vsel %vm302_vm8, %v1764_v51, %v301_v48  ;;  %v1190_v51 = vrot.slane %v1920_v18, 3 }
0x118a   :  { %1303 = vrot.lane.b32.xlu0 %v1505_v26, %s1615_s3  ;;  %v1193_v5 = vsel %vm302_vm8, %v1920_v18, %v1190_v51 }
0x11dc   :  { %v1315_v9 = vpop.permute.xlu2 %1314 }
0x11dd   :  { %v1317_v28 = vmul.f32 %v1315_v9, %v1926_v61 }
0x11df   :  { %1319 = vrot.lane.b32.xlu1 %v1317_v28, %s1616_s4 }
0x11fc   :  { %v1304_v29 = vpop.permute.xlu0 %1303 }
0x11fd   :  { %v1306_v30 = vmul.f32 %v1304_v29, %v1930_v23 }
0x11ff   :  { %1308 = vrot.lane.b32.xlu2 %v1306_v30, %s1616_s4 }
0x1207   :  { %319 = vrot.lane.b32.xlu2 %v317_v32, %s1616_s4 }
0x120f   :  { %766 = vrot.lane.b32.xlu2 %v764_v34, %s1616_s4 }
0x1217   :  { %1207 = vrot.lane.b32.xlu2 %v1205_v36, %s1616_s4 }
0x121f   :  { %456 = vrot.lane.b32.xlu2 %v454_v46, %s1616_s4 }
0x1227   :  { %901 = vrot.lane.b32.xlu2 %v899_v0, %s1616_s4 }
0x1251   :  { %v1320_v27 = vpop.permute.xlu1 %1319 }
0x1252   :  { %v1322_v41 = vadd.f32 %v1320_v27, %v1312_v40 }
0x1254   :  { %1610 = vtanh.f32 %v1322_v41 }
0x1259   :  { %v1309_v45 = vpop.permute.xlu2 %1308 }
0x125a   :  { %v1611_v56 = vpop.eup %1610  ;;  %v1311_v47 = vadd.f32 %v1309_v45, %v1301_v44 }
0x125b   :  { %1331 = vrot.lane.b32.xlu0 %v1611_v56, %s1615_s3 }
0x125c   :  { %1612 = vtanh.f32 %v1311_v47 }
0x1261   :  { %v320_v11 = vpop.permute.xlu2 %319 }
0x1262   :  { %v1613_v50 = vpop.eup %1612  ;;  %323 = vst.msk [vmem:[#allocation4 + $0x7] sm:$0x1] %vm310_vm9, %v320_v11 }
0x1263   :  { %468 = vrot.lane.b32.xlu0 %v466_v17, %s1616_s4  ;;  %1325 = vrot.lane.b32.xlu1 %v1613_v50, %s1615_s3 }
0x1269   :  { %v767_v54 = vpop.permute.xlu2 %766  ;;  %v1381_v57 = vld [vmem:[#allocation4 + $0x7] sm:$0x1] }
0x126a   :  { %770 = vst.msk [vmem:[#allocation4 + $0x4] sm:$0x1] %vm310_vm9, %v767_v54 }
0x126b   :  { %913 = vrot.lane.b32.xlu0 %v911_v55, %s1616_s4  ;;  %617 = vrot.lane.b32.xlu1 %v615_v58, %s1616_s4 }
0x1271   :  { %v1208_v43 = vpop.permute.xlu2 %1207  ;;  %v1378_v6 = vld [vmem:[#allocation4 + $0x4] sm:$0x1] }
0x1272   :  { %1211 = vst.msk [vmem:[#allocation4 + $0x1] sm:$0x1] %vm310_vm9, %v1208_v43 }
0x1273   :  { %1060 = vrot.lane.b32.xlu1 %v1058_v60, %s1616_s4 }
0x1279   :  { %v457_v7 = vpop.permute.xlu2 %456  ;;  %v1375_v42 = vld [vmem:[#allocation4 + $0x1] sm:$0x1] }
0x127a   :  { %460 = vst.msk [vmem:[#allocation3 + $0x1] sm:$0x1] %vm310_vm9, %v457_v7 }
0x127b   :  { %307 = vrot.lane.b32.xlu1 %v305_v59, %s1616_s4 }
0x1281   :  { %v902_v1 = vpop.permute.xlu2 %901  ;;  %v1359_v2 = vld [vmem:[#allocation3 + $0x1] sm:$0x1] }
0x1282   :  { %905 = vst.msk [vmem:[#allocation3 + $0x4] sm:$0x1] %vm310_vm9, %v902_v1 }
0x1283   :  { %754 = vrot.lane.b32.xlu1 %v752_v14, %s1616_s4  ;;  %1367 = vst.msk [vmem:[%s2099_s5 + $0x1] sm:$0x1] %vm310_vm9, %v1359_v2 }
0x1289   :  { %v1362_v3 = vld [vmem:[#allocation3 + $0x4] sm:$0x1] }
0x128a   :  { %1370 = vst.msk [vmem:[%s2099_s5 + $0x4] sm:$0x1] %vm310_vm9, %v1362_v3 }
0x128b   :  { %1195 = vrot.lane.b32.xlu1 %v1193_v5, %s1616_s4 }
0x1293   :  { %1392 = vrot.lane.b32.xlu1 %v1375_v42, %s1616_s4 }
0x129b   :  { %1398 = vrot.lane.b32.xlu1 %v1378_v6, %s1616_s4 }
0x12a3   :  { %1404 = vrot.lane.b32.xlu1 %v1381_v57, %s1616_s4 }
0x12cd   :  { %v1332_v8 = vpop.permute.xlu0 %1331 }
0x12ce   :  { %v1334_v10 = vmul.f32 %v1332_v8, %v1926_v61  ;;  %v603_v61 = vsel %vm302_vm8, %v1820_v63, %v600_v16 }
0x12d0   :  { %v1347_v18 = vpack.c.bf16 %v1334_v10, %v1334_v10 }
0x12d2   :  { %v1349_v12 = vrot.slane %v1347_v18, 3 }
0x12d4   :  { %v1352_v13 = vsel %vm302_vm8, %v1347_v18, %v1349_v12 }
0x12d5   :  { %v1326_v22 = vpop.permute.xlu1 %1325  ;;  %1354 = vrot.lane.b32.xlu0 %v1352_v13, %s1616_s4  ;;  %v469_v38 = vpop.permute.xlu0 %468 }
0x12d6   :  { %v1328_v15 = vmul.f32 %v1326_v22, %v1930_v23  ;;  %472 = vst.msk [vmem:[#allocation4 + $0x6] sm:$0x1] %vm310_vm9, %v469_v38  ;;  %v1043_v23 = vrot.slane %v1896_v20, 3 }
0x12d8   :  { %v1335_v4 = vpack.c.bf16 %v1328_v15, %v1328_v15  ;;  %v1046_v9 = vsel %vm302_vm8, %v1896_v20, %v1043_v23 }
0x12da   :  { %v1337_v19 = vrot.slane %v1335_v4, 3 }
0x12dc   :  { %v1340_v21 = vsel %vm302_vm8, %v1335_v4, %v1337_v19 }
0x12dd   :  { %1342 = vrot.lane.b32.xlu2 %v1340_v21, %s1616_s4  ;;  %v618_v25 = vpop.permute.xlu1 %617  ;;  %605 = vrot.lane.b32.xlu0 %v603_v61, %s1616_s4  ;;  %v914_v26 = vpop.permute.xlu0 %913  ;;  %v1380_v56 = vld [vmem:[#allocation4 + $0x6] sm:$0x1] }
0x12de   :  { %621 = vst.msk [vmem:[#allocation4 + $0x5] sm:$0x1] %vm310_vm9, %v618_v25 }
0x12df   :  { %917 = vst.msk [vmem:[#allocation4 + $0x3] sm:$0x1] %vm310_vm9, %v914_v26 }
0x12e5   :  { %v1061_v28 = vpop.permute.xlu1 %1060  ;;  %1048 = vrot.lane.b32.xlu0 %v1046_v9, %s1616_s4  ;;  %v1379_v32 = vld [vmem:[#allocation4 + $0x5] sm:$0x1] }
0x12e6   :  { %1064 = vst.msk [vmem:[#allocation4 + $0x2] sm:$0x1] %vm310_vm9, %v1061_v28  ;;  %v1377_v63 = vld [vmem:[#allocation4 + $0x3] sm:$0x1] }
0x12ed   :  { %v308_v29 = vpop.permute.xlu1 %307  ;;  %1396 = vrot.lane.b32.xlu0 %v1377_v63, %s1616_s4  ;;  %v1376_v30 = vld [vmem:[#allocation4 + $0x2] sm:$0x1] }
0x12ee   :  { %311 = vst.msk [vmem:[#allocation3] sm:$0x1] %vm310_vm9, %v308_v29  ;;  %1394 = vrot.lane.b32.xlu2 %v1376_v30, %s1616_s4 }
0x12f5   :  { %v755_v31 = vpop.permute.xlu1 %754  ;;  %v1358_v33 = vld [vmem:[#allocation3] sm:$0x1] }
0x12f6   :  { %758 = vst.msk [vmem:[#allocation3 + $0x3] sm:$0x1] %vm310_vm9, %v755_v31  ;;  %1400 = vrot.lane.b32.xlu2 %v1379_v32, %s1616_s4 }
0x12f7   :  { %1366 = vst.msk [vmem:[%s2099_s5] sm:$0x1] %vm310_vm9, %v1358_v33 }
0x12fd   :  { %v1196_v20 = vpop.permute.xlu1 %1195  ;;  %v1361_v34 = vld [vmem:[#allocation3 + $0x3] sm:$0x1] }
0x12fe   :  { %1199 = vst.msk [vmem:[#allocation3 + $0x6] sm:$0x1] %vm310_vm9, %v1196_v20 }
0x12ff   :  { %1369 = vst.msk [vmem:[%s2099_s5 + $0x3] sm:$0x1] %vm310_vm9, %v1361_v34 }
0x1305   :  { %v1393_v35 = vpop.permute.xlu1 %1392  ;;  %v1364_v36 = vld [vmem:[#allocation3 + $0x6] sm:$0x1] }
0x1306   :  { %1416 = vst.msk [vmem:[%s2099_s5 + $0x1] sm:$0x1] %vm1414_vm10, %v1393_v35 }
0x1307   :  { %1372 = vst.msk [vmem:[%s2099_s5 + $0x6] sm:$0x1] %vm310_vm9, %v1364_v36 }
0x130d   :  { %v1399_v37 = vpop.permute.xlu1 %1398 }
0x130e   :  { %1419 = vst.msk [vmem:[%s2099_s5 + $0x4] sm:$0x1] %vm1414_vm10, %v1399_v37 }
0x1315   :  { %v1405_v0 = vpop.permute.xlu1 %1404 }
0x1337   :  { %v1343_v46 = vpop.permute.xlu2 %1342 }
0x1338   :  { %1346 = vst.msk [vmem:[#allocation3 + $0x7] sm:$0x1] %vm310_vm9, %v1343_v46 }
0x133f   :  { %v1365_v39 = vld [vmem:[#allocation3 + $0x7] sm:$0x1] }
0x1340   :  { %1373 = vst.msk [vmem:[%s2099_s5 + $0x7] sm:$0x1] %vm310_vm9, %v1365_v39 }
0x1341   :  { %1422 = vst.msk [vmem:[%s2099_s5 + $0x7] sm:$0x1] %vm1414_vm10, %v1405_v0 }
0x1347   :  { %v1355_v40 = vpop.permute.xlu0 %1354 }
0x1348   :  { %1357 = vst.msk [vmem:[#allocation4] sm:$0x1] %vm310_vm9, %v1355_v40  ;;  %v1395_v47 = vpop.permute.xlu2 %1394 }
0x134f   :  { %v606_v27 = vpop.permute.xlu0 %605  ;;  %v1374_v41 = vld [vmem:[#allocation4] sm:$0x1] }
0x1350   :  { %609 = vst.msk [vmem:[#allocation3 + $0x2] sm:$0x1] %vm310_vm9, %v606_v27  ;;  %1390 = vrot.lane.b32.xlu0 %v1374_v41, %s1616_s4  ;;  %v1401_v50 = vpop.permute.xlu2 %1400 }
0x1357   :  { %v1360_v44 = vld [vmem:[#allocation3 + $0x2] sm:$0x1]  ;;  %v1049_v45 = vpop.permute.xlu0 %1048 }
0x1358   :  { %1368 = vst.msk [vmem:[%s2099_s5 + $0x2] sm:$0x1] %vm310_vm9, %v1360_v44  ;;  %1402 = vrot.lane.b32.xlu0 %v1380_v56, %s1616_s4 }
0x1359   :  { %1417 = vst.msk [vmem:[%s2099_s5 + $0x2] sm:$0x1] %vm1414_vm10, %v1395_v47 }
0x135a   :  { %1052 = vst.msk [vmem:[#allocation3 + $0x5] sm:$0x1] %vm310_vm9, %v1049_v45 }
0x135f   :  { %v1397_v49 = vpop.permute.xlu0 %1396 }
0x1360   :  { %1418 = vst.msk [vmem:[%s2099_s5 + $0x3] sm:$0x1] %vm1414_vm10, %v1397_v49 }
0x1361   :  { %v1363_v11 = vld [vmem:[#allocation3 + $0x5] sm:$0x1] }
0x1362   :  { %1371 = vst.msk [vmem:[%s2099_s5 + $0x5] sm:$0x1] %vm310_vm9, %v1363_v11 }
0x1363   :  { %1420 = vst.msk [vmem:[%s2099_s5 + $0x5] sm:$0x1] %vm1414_vm10, %v1401_v50 }
0x13c2   :  { %v1391_v17 = vpop.permute.xlu0 %1390 }
0x13c3   :  { %1415 = vst.msk [vmem:[%s2099_s5] sm:$0x1] %vm1414_vm10, %v1391_v17 }
0x13ca   :  { %v1403_v24 = vpop.permute.xlu0 %1402 }
0x13cb   :  { %1421 = vst.msk [vmem:[%s2099_s5 + $0x6] sm:$0x1] %vm1414_vm10, %v1403_v24 }

// kernel: rnn_forward.3
= control target key start
LH: loop header
LB: loop body
LE: loop exit
PB: predicated region body
PF: predicated region fallthrough
CT: control target
= control target key end

     0   :  { %s1976_s0 = inlined_call_operand.vmem [shape: bf16[8,2,64], index: 0, kind: input, shape index: {}]   ;;  %s1977_s1 = inlined_call_operand.vmem [shape: bf16[64,256], index: 1, kind: input, shape index: {}]   ;;  %s1978_s2 = inlined_call_operand.vmem [shape: bf16[32,128], index: 2, kind: input, shape index: {}]   ;;  %s1979_s3 = inlined_call_operand.vmem [shape: bf16[32,128], index: 3, kind: input, shape index: {}]   ;;  %s1980_s4 = inlined_call_operand.vmem [shape: f32[1,256], index: 4, kind: input, shape index: {}]   ;;  %s1981_s5 = inlined_call_operand.vmem [shape: f32[64,100], index: 5, kind: input, shape index: {}]   ;;  %s1982_s6 = inlined_call_operand.vmem [shape: f32[1,100], index: 6, kind: input, shape index: {}]   ;;  %s1983_s7 = inlined_call_operand.vmem [shape: f32[100,2], index: 7, kind: input, shape index: {}]   ;;  %s1984_s8 = inlined_call_operand.vmem [shape: f32[1,2], index: 8, kind: input, shape index: {}]   ;;  %s1985_s9 = inlined_call_operand.hbm [shape: f32[2,2], index: 9, kind: output, shape index: {}]  }
   0x1   :  { %v1338_v0 = vld [vmem:[%s1977_s1 + $0x30] sm:$0xf]  ;;  %v1418_v1 = vld [vmem:[%s1977_s1 + $0x34] sm:$0xf0]  ;;  %v1417_v2 = vld [vmem:[%s1977_s1 + $0x34] sm:$0xf] }
   0x2   :  { %v1339_v3 = vor.u32 %v1418_v1, %v1338_v0  ;;  %v1340_v4 = vld [vmem:[%s1977_s1 + $0x38] sm:$0xf0]  ;;  %v1330_v5 = vld [vmem:[%s1977_s1 + $0x20] sm:$0xf]  ;;  %v1416_v6 = vld [vmem:[%s1977_s1 + $0x24] sm:$0xf0] }
   0x3   :  { %v1343_v7 = vor.u32 %v1417_v2, %v1340_v4  ;;  %v1415_v8 = vld [vmem:[%s1977_s1 + $0x24] sm:$0xf]  ;;  %v1332_v9 = vld [vmem:[%s1977_s1 + $0x28] sm:$0xf0]  ;;  %v1331_v10 = vor.u32 %v1416_v6, %v1330_v5  ;;  %v1322_v12 = vld [vmem:[%s1977_s1 + $0x10] sm:$0xf] }
   0x4   :  { %127 = vmatpush.bf16.msra.mxu0 %v1339_v3  ;;  %v1335_v11 = vor.u32 %v1415_v8, %v1332_v9  ;;  %v1414_v13 = vld [vmem:[%s1977_s1 + $0x14] sm:$0xf0]  ;;  %v1640_v14 = vld [vmem:[%s1978_s2 + $0x8] sm:$0xff]  ;;  %v1413_v15 = vld [vmem:[%s1977_s1 + $0x14] sm:$0xf] }
   0x5   :  { %141 = vmatpush.bf16.msra.mxu1 %v1343_v7  ;;  %v1324_v16 = vld [vmem:[%s1977_s1 + $0x18] sm:$0xf0]  ;;  %v34_v17 = vld [vmem:[%s1976_s0] sm:$0x1]  ;;  %224 = vmatpush.bf16.msra.mxu2 %v1640_v14  ;;  %v1412_v19 = vld [vmem:[%s1977_s1 + $0x4] sm:$0xf0]  ;;  %v1323_v21 = vor.u32 %v1414_v13, %v1322_v12 }
   0x6   :  { %v1314_v18 = vld [vmem:[%s1977_s1] sm:$0xf]  ;;  %v1411_v22 = vld [vmem:[%s1977_s1 + $0x4] sm:$0xf]  ;;  %v1316_v23 = vld [vmem:[%s1977_s1 + $0x8] sm:$0xf0]  ;;  %v1327_v27 = vor.u32 %v1413_v15, %v1324_v16 }
   0x7   :  { %v35_v20 = vld [vmem:[%s1976_s0 + $0x1] sm:$0x1]  ;;  %v36_v24 = vld [vmem:[%s1976_s0 + $0x2] sm:$0x1]  ;;  %v37_v25 = vld [vmem:[%s1976_s0 + $0x3] sm:$0x1]  ;;  %v1315_v33 = vor.u32 %v1412_v19, %v1314_v18 }
   0x8   :  { %128 = vmatpush.bf16.msra.mxu0 %v1331_v10  ;;  %v38_v26 = vld [vmem:[%s1976_s0 + $0x4] sm:$0x1]  ;;  %v39_v28 = vld [vmem:[%s1976_s0 + $0x5] sm:$0x1]  ;;  %57 = vst [vmem:[#allocation1] ss:$9 sm:$0xff] %v34_v17 }
   0x9   :  { %142 = vmatpush.bf16.msra.mxu1 %v1335_v11  ;;  %v1682_v29 = vld [vmem:[%s1978_s2] sm:$0xff]  ;;  %60 = vst [vmem:[#allocation1 + $0x1] ss:$9 sm:$0xff] %v35_v20  ;;  %v1690_v31 = vld [vmem:[%s1979_s3 + $0x8] sm:$0xff] }
   0xa   :  { %v40_v30 = vld [vmem:[%s1976_s0 + $0x6] sm:$0x1]  ;;  %63 = vst [vmem:[#allocation1 + $0x2] ss:$9 sm:$0xff] %v36_v24  ;;  %225 = vmatpush.bf16.msra.mxu2 %v1682_v29  ;;  %250 = vmatpush.bf16.msra.mxu3 %v1690_v31 }
   0xb   :  { %v1696_v32 = vld [vmem:[%s1979_s3] sm:$0xff]  ;;  %66 = vst [vmem:[#allocation1 + $0x3] ss:$9 sm:$0xff] %v37_v25 }
   0xc   :  { %129 = vmatpush.bf16.msra.mxu0 %v1323_v21 }
   0xd   :  { %14 = vsyncpa [#allocation4], 0  ;;  %143 = vmatpush.bf16.msra.mxu1 %v1327_v27  ;;  %v1319_v34 = vor.u32 %v1411_v22, %v1316_v23  ;;  %v41_v35 = vld [vmem:[%s1976_s0 + $0x7] sm:$0x1]  ;;  %69 = vst [vmem:[#allocation1 + $0x4] ss:$9 sm:$0xff] %v38_v26 }
   0xe   :  { %355 = vmatpush.bf16.msrb.mxu2 %v1640_v14  ;;  %72 = vst [vmem:[#allocation1 + $0x5] ss:$9 sm:$0xff] %v39_v28  ;;  %v1553_v36 = vmov 0   ;;  %251 = vmatpush.bf16.msra.mxu3 %v1696_v32  ;;  %vm120_vm0 = vcmask 523264   ;;  %v50_v38 = vld [vmem:[%s1980_s4] sm:$0x3] }
   0xf   :  { %226 = vmatmul.bf16.vlgmr.msra.gmra.mxu2 %v1553_v36  ;;  %75 = vst [vmem:[#allocation1 + $0x6] ss:$9 sm:$0xff] %v40_v30  ;;  %v52_v40 = vperm.slane %v50_v38, 0  ;;  %v53_v41 = vperm.slane %v50_v38, 1  ;;  %vm157_vm1 = vcmask 1041408   ;;  %vm159_vm2 = vcmask 1043458  }
  0x10   :  { %130 = vmatpush.bf16.msra.mxu0 %v1315_v33  ;;  %78 = vst [vmem:[#allocation1 + $0x7] ss:$9 sm:$0xff] %v41_v35  ;;  %vm162_vm3 = vcmask 1045508   ;;  %vm165_vm4 = vcmask 1045504   ;;  %s1554_s4 = smov 64   ;;  %s1555_s21 = smov 32  }
  0x11   :  { %144 = vmatpush.bf16.msra.mxu1 %v1319_v34  ;;  %252 = vmatmul.bf16.vlgmr.msra.gmra.mxu3 %v1553_v36  ;;  %vm214_vm13 = vcmask 261120   ;;  %s1556_s19 = smov [#allocation3]  }
  0x12   :  { %375 = vmatpush.bf16.msrb.mxu3 %v1690_v31  ;;  %356 = vmatpush.bf16.msrb.mxu2 %v1682_v29  ;;  %s1301_s2 = sshll.u32 %s1556_s19, 4  ;;  %s1302_s2 = int_to_ptr.vmem [resolvable:$true] %s1301_s2 }
  0x14   :  { %480 = vmatpush.bf16.msrb.mxu0 %v1640_v14 }
  0x15   :  { %500 = vmatpush.bf16.msrb.mxu1 %v1690_v31 }
  0x16   :  { %605 = vmatpush.bf16.msra.mxu2 %v1640_v14  ;;  %376 = vmatpush.bf16.msrb.mxu3 %v1696_v32 }
  0x17   :  { %v79_v37 = vld [vmem:[#allocation1] sm:$0xff] }
  0x18   :  { %481 = vmatpush.bf16.msrb.mxu0 %v1682_v29  ;;  %1345 = vmatmul.msk.bf16.vlgmr.msra.gmra.mxu1 %vm120_vm0, %v79_v37 }
  0x19   :  { %501 = vmatpush.bf16.msrb.mxu1 %v1696_v32  ;;  %1344 = vmatmul.msk.bf16.vlgmr.msra.gmra.mxu0 %vm120_vm0, %v79_v37 }
  0x1a   :  { %625 = vmatpush.bf16.msra.mxu3 %v1690_v31  ;;  %606 = vmatpush.bf16.msra.mxu2 %v1682_v29 }
  0x1c   :  { %726 = vmatpush.bf16.msra.mxu0 %v1640_v14 }
  0x1d   :  { %746 = vmatpush.bf16.msra.mxu1 %v1690_v31 }
  0x1e   :  { %626 = vmatpush.bf16.msra.mxu3 %v1696_v32 }
  0x20   :  { %727 = vmatpush.bf16.msra.mxu0 %v1682_v29 }
  0x21   :  { %747 = vmatpush.bf16.msra.mxu1 %v1696_v32 }
  0x92   :  { %v227_v39 = vpop.f32.mrf.mxu2 }
  0x94   :  { %v253_v46 = vpop.f32.mrf.mxu3 }
  0x95   :  { %v146_v43 = vpop.f32.mrf.mxu1 }
  0x96   :  { %v132_v42 = vpop.f32.mrf.mxu0  ;;  %v147_v45 = vadd.f32 %v146_v43, %v53_v41 }
  0x97   :  { %v133_v44 = vadd.f32 %v132_v42, %v52_v40 }
  0x98   :  { %v155_v47 = vrot.slane %v147_v45, 6 }
  0x9a   :  { %v229_v48 = vpop.f32.mrf.mxu2  ;;  %v158_v49 = vsel %vm157_vm1, %v133_v44, %v155_v47  ;;  %v160_v50 = vsel %vm159_vm2, %v133_v44, %v155_v47  ;;  %v163_v51 = vsel %vm162_vm3, %v133_v44, %v155_v47  ;;  %v166_v52 = vsel %vm165_vm4, %v155_v47, %v133_v44 }
  0x9b   :  { %v161_v53 = vrot.slane %v160_v50, 2  ;;  %v164_v54 = vrot.slane %v163_v51, 4  ;;  %v167_v55 = vrot.slane %v166_v52, 6  ;;  %183 = vst [vmem:[#allocation2] sm:$0xf] %v158_v49 }
  0x9c   :  { %v255_v59 = vpop.f32.mrf.mxu3 }
  0x9d   :  { %184 = vst [vmem:[#allocation2 + $0x4] sm:$0xf] %v161_v53  ;;  %v148_v57 = vpop.f32.mrf.mxu1 }
  0x9e   :  { %v134_v56 = vpop.f32.mrf.mxu0  ;;  %185 = vst [vmem:[#allocation2 + $0x8] sm:$0xf] %v164_v54  ;;  %v149_v58 = vadd.f32 %v148_v57, %v53_v41 }
  0x9f   :  { %186 = vst [vmem:[#allocation2 + $0xc] sm:$0xf] %v167_v55  ;;  %v135_v60 = vadd.f32 %v134_v56, %v52_v40 }
  0xa0   :  { %v156_v61 = vrot.slane %v149_v58, 6 }
  0xa2   :  { %v168_v62 = vsel %vm157_vm1, %v135_v60, %v156_v61  ;;  %v169_v63 = vsel %vm159_vm2, %v135_v60, %v156_v61  ;;  %v171_v0 = vsel %vm162_vm3, %v135_v60, %v156_v61  ;;  %v173_v1 = vsel %vm165_vm4, %v156_v61, %v135_v60  ;;  %v199_v2 = vld [vmem:[#allocation2] sm:$0xf] }
  0xa3   :  { %v170_v3 = vrot.slane %v169_v63, 2  ;;  %v172_v4 = vrot.slane %v171_v0, 4  ;;  %v174_v5 = vrot.slane %v173_v1, 6  ;;  %187 = vst [vmem:[#allocation2 + $0x10] sm:$0xf] %v168_v62  ;;  %v231_v6 = vadd.f32 %v227_v39, %v199_v2 }
  0xa4   :  { %v1752_v0 = vld [vmem:[#allocation2 + $0x4] sm:$0xf] }
  0xa5   :  { %188 = vst [vmem:[#allocation2 + $0x14] sm:$0xf] %v170_v3  ;;  %v1362_v7 = vmul.f32 -1.442695, %v231_v6 }
  0xa6   :  { %189 = vst [vmem:[#allocation2 + $0x18] sm:$0xf] %v172_v4 }
  0xa7   :  { %190 = vst [vmem:[#allocation2 + $0x1c] sm:$0xf] %v174_v5  ;;  %1429 = vpow2.f32 %v1362_v7 }
  0xad   :  { %v1430_v8 = vpop.eup %1429  ;;  %v1755_v5 = vld [vmem:[#allocation2 + $0x18] sm:$0xf] }
  0xae   :  { %v264_v9 = vadd.f32 1.0, %v1430_v8  ;;  %v201_v10 = vld [vmem:[#allocation2 + $0x1c] sm:$0xf]  ;;  %v383_v8 = vrot.slane %v1755_v5, 2 }
  0xaf   :  { %v258_v11 = vrot.slane %v201_v10, 2 }
  0xb0   :  { %1431 = vrcp.f32 %v264_v9  ;;  %v276_v18 = vand.u32 2147483648, %v264_v9  ;;  %v274_v21 = vand.u32 2147483647, %v264_v9  ;;  %vm270_vm6 = vweird.f32 %v264_v9 }
  0xb1   :  { %v260_v12 = vadd.f32 %v258_v11, %v253_v46 }
  0xb2   :  { %v277_v24 = vor.u32 1.1754944e-38, %v276_v18  ;;  %vm275_vm8 = vcmp.eq.f32.partialorder %v274_v21, 8.507059e+37 }
  0xb3   :  { %v1363_v13 = vmul.f32 -1.442695, %v260_v12 }
  0xb5   :  { %1433 = vpow2.f32 %v1363_v13 }
  0xb6   :  { %v1432_v15 = vpop.eup %1431 }
  0xb7   :  { %v266_v16 = vmul.f32 %v1432_v15, %v264_v9  ;;  %vm271_vm5 = vweird.f32 %v1432_v15 }
  0xb8   :  { %vm272_vm7 = vmor %vm270_vm6, %vm271_vm5 }
  0xb9   :  { %v267_v17 = vsub.f32 1.0, %v266_v16 }
  0xbb   :  { %v1434_v19 = vpop.eup %1433  ;;  %v268_v20 = vmul.f32 %v1432_v15, %v267_v17 }
  0xbc   :  { %v283_v22 = vadd.f32 1.0, %v1434_v19 }
  0xbd   :  { %v269_v23 = vadd.f32 %v1432_v15, %v268_v20 }
  0xbe   :  { %1435 = vrcp.f32 %v283_v22  ;;  %v295_v35 = vand.u32 2147483648, %v283_v22  ;;  %v293_v37 = vand.u32 2147483647, %v283_v22  ;;  %vm289_vm10 = vweird.f32 %v283_v22 }
  0xbf   :  { %v273_v25 = vsel %vm272_vm7, %v1432_v15, %v269_v23 }
  0xc0   :  { %v278_v26 = vsel %vm275_vm8, %v277_v24, %v273_v25  ;;  %v296_v39 = vor.u32 1.1754944e-38, %v295_v35  ;;  %vm294_vm12 = vcmp.eq.f32.partialorder %v293_v37, 8.507059e+37 }
  0xc1   :  { %v299_v27 = vmul.f32 2.0, %v278_v26  ;;  %v303_v48 = vmul.f32 0.0, %v278_v26 }
  0xc3   :  { %v1364_v28 = vadd.f32 -1.0, %v299_v27 }
  0xc4   :  { %v1436_v30 = vpop.eup %1435 }
  0xc5   :  { %v285_v33 = vmul.f32 %v1436_v30, %v283_v22  ;;  %305 = vrot.lane.b32.xlu0 %v1364_v28, %s1554_s4  ;;  %vm290_vm9 = vweird.f32 %v1436_v30 }
  0xc6   :  { %vm291_vm11 = vmor %vm289_vm10, %vm290_vm9 }
  0xc7   :  { %v286_v34 = vsub.f32 1.0, %v285_v33 }
  0xc9   :  { %v287_v36 = vmul.f32 %v1436_v30, %v286_v34 }
  0xcb   :  { %v288_v38 = vadd.f32 %v1436_v30, %v287_v36 }
  0xcd   :  { %v292_v40 = vsel %vm291_vm11, %v1436_v30, %v288_v38 }
  0xce   :  { %v297_v41 = vsel %vm294_vm12, %v296_v39, %v292_v40 }
  0xcf   :  { %v301_v42 = vmul.f32 2.0, %v297_v41  ;;  %v314_v52 = vmul.f32 0.0, %v297_v41 }
  0xd1   :  { %v1365_v43 = vadd.f32 -1.0, %v301_v42 }
  0xd3   :  { %316 = vrot.lane.b32.xlu0 %v1365_v43, %s1554_s4 }
 0x137   :  { %v306_v44 = vpop.permute.xlu0 %305 }
 0x138   :  { %v308_v45 = vmul.f32 %v306_v44, %v278_v26 }
 0x13a   :  { %310 = vrot.lane.b32.xlu1 %v308_v45, %s1555_s21 }
 0x145   :  { %v317_v46 = vpop.permute.xlu0 %316 }
 0x146   :  { %v319_v47 = vmul.f32 %v317_v46, %v297_v41 }
 0x148   :  { %321 = vrot.lane.b32.xlu1 %v319_v47, %s1555_s21 }
 0x1ac   :  { %v311_v49 = vpop.permute.xlu1 %310 }
 0x1ad   :  { %v1736_v50 = vadd.f32 %v311_v49, %v303_v48 }
 0x1af   :  { %1437 = vtanh.f32 %v1736_v50 }
 0x1b5   :  { %v1438_v51 = vpop.eup %1437 }
 0x1b6   :  { %327 = vrot.lane.b32.xlu2 %v1438_v51, %s1554_s4 }
 0x1ba   :  { %v322_v53 = vpop.permute.xlu1 %321 }
 0x1bb   :  { %v1740_v54 = vadd.f32 %v322_v53, %v314_v52 }
 0x1bd   :  { %1439 = vtanh.f32 %v1740_v54 }
 0x1c3   :  { %v1440_v55 = vpop.eup %1439 }
 0x1c4   :  { %333 = vrot.lane.b32.xlu2 %v1440_v55, %s1554_s4 }
 0x210   :  { %v328_v56 = vpop.permute.xlu2 %327 }
 0x211   :  { %v330_v57 = vmul.f32 %v328_v56, %v278_v26 }
 0x213   :  { %v337_v58 = vpack.c.bf16 %v330_v57, %v330_v57 }
 0x215   :  { %344 = vrot.lane.b32.xlu0 %v337_v58, %s1555_s21 }
 0x21e   :  { %v334_v59 = vpop.permute.xlu2 %333 }
 0x21f   :  { %v336_v60 = vmul.f32 %v334_v59, %v297_v41 }
 0x221   :  { %v338_v61 = vpack.c.bf16 %v336_v60, %v336_v60 }
 0x223   :  { %364 = vrot.lane.b32.xlu1 %v338_v61, %s1555_s21 }
 0x287   :  { %v345_v62 = vpop.permute.xlu0 %344 }
 0x288   :  { %1366 = vmatmul.msk.bf16.vlgmr.msrb.gmra.mxu2 %vm214_vm13, %v345_v62 }
 0x289   :  { %847 = vmatpush.bf16.msrb.mxu2 %v1640_v14 }
 0x28d   :  { %848 = vmatpush.bf16.msrb.mxu2 %v1682_v29 }
 0x295   :  { %v365_v63 = vpop.permute.xlu1 %364 }
 0x296   :  { %1367 = vmatmul.msk.bf16.vlgmr.msrb.gmra.mxu3 %vm214_vm13, %v365_v63  ;;  %v1780_v63 = vld [vmem:[#allocation2 + $0x8] sm:$0xf] }
 0x297   :  { %867 = vmatpush.bf16.msrb.mxu3 %v1690_v31 }
 0x29b   :  { %868 = vmatpush.bf16.msrb.mxu3 %v1696_v32 }
 0x30b   :  { %v358_v1 = vpop.f32.mrf.mxu2 }
 0x30c   :  { %v362_v2 = vadd.f32 %v358_v1, %v1752_v0 }
 0x30e   :  { %v1368_v3 = vmul.f32 -1.442695, %v362_v2 }
 0x310   :  { %1441 = vpow2.f32 %v1368_v3 }
 0x313   :  { %v360_v4 = vpop.f32.mrf.mxu2 }
 0x316   :  { %v1442_v6 = vpop.eup %1441 }
 0x317   :  { %v389_v7 = vadd.f32 1.0, %v1442_v6 }
 0x319   :  { %1443 = vrcp.f32 %v389_v7  ;;  %v378_v9 = vpop.f32.mrf.mxu3  ;;  %v401_v17 = vand.u32 2147483648, %v389_v7  ;;  %v399_v20 = vand.u32 2147483647, %v389_v7  ;;  %vm395_vm15 = vweird.f32 %v389_v7 }
 0x31a   :  { %v385_v10 = vadd.f32 %v383_v8, %v378_v9 }
 0x31b   :  { %v402_v23 = vor.u32 1.1754944e-38, %v401_v17  ;;  %vm400_vm2 = vcmp.eq.f32.partialorder %v399_v20, 8.507059e+37 }
 0x31c   :  { %v1369_v11 = vmul.f32 -1.442695, %v385_v10 }
 0x31e   :  { %1445 = vpow2.f32 %v1369_v11 }
 0x31f   :  { %v1444_v12 = vpop.eup %1443 }
 0x320   :  { %v391_v13 = vmul.f32 %v1444_v12, %v389_v7  ;;  %vm396_vm14 = vweird.f32 %v1444_v12 }
 0x321   :  { %v380_v15 = vpop.f32.mrf.mxu3  ;;  %vm397_vm1 = vmor %vm395_vm15, %vm396_vm14 }
 0x322   :  { %v392_v16 = vsub.f32 1.0, %v391_v13 }
 0x324   :  { %v1446_v18 = vpop.eup %1445  ;;  %v393_v19 = vmul.f32 %v1444_v12, %v392_v16 }
 0x325   :  { %v408_v21 = vadd.f32 1.0, %v1446_v18 }
 0x326   :  { %v394_v22 = vadd.f32 %v1444_v12, %v393_v19 }
 0x327   :  { %1447 = vrcp.f32 %v408_v21  ;;  %v420_v34 = vand.u32 2147483648, %v408_v21  ;;  %v418_v36 = vand.u32 2147483647, %v408_v21  ;;  %vm414_vm4 = vweird.f32 %v408_v21 }
 0x328   :  { %v398_v24 = vsel %vm397_vm1, %v1444_v12, %v394_v22 }
 0x329   :  { %v403_v25 = vsel %vm400_vm2, %v402_v23, %v398_v24  ;;  %v421_v38 = vor.u32 1.1754944e-38, %v420_v34  ;;  %vm419_vm6 = vcmp.eq.f32.partialorder %v418_v36, 8.507059e+37 }
 0x32a   :  { %v424_v26 = vmul.f32 2.0, %v403_v25  ;;  %v428_v47 = vmul.f32 %v403_v25, %v1736_v50 }
 0x32c   :  { %v1370_v27 = vadd.f32 -1.0, %v424_v26 }
 0x32d   :  { %v1448_v28 = vpop.eup %1447 }
 0x32e   :  { %v410_v30 = vmul.f32 %v1448_v28, %v408_v21  ;;  %430 = vrot.lane.b32.xlu2 %v1370_v27, %s1554_s4  ;;  %vm415_vm3 = vweird.f32 %v1448_v28  ;;  %v1783_v21 = vld [vmem:[#allocation2 + $0x14] sm:$0xf] }
 0x32f   :  { %vm416_vm5 = vmor %vm414_vm4, %vm415_vm3  ;;  %v508_v22 = vrot.slane %v1783_v21, 2 }
 0x330   :  { %v411_v33 = vsub.f32 1.0, %v410_v30 }
 0x332   :  { %v412_v35 = vmul.f32 %v1448_v28, %v411_v33 }
 0x334   :  { %v413_v37 = vadd.f32 %v1448_v28, %v412_v35 }
 0x336   :  { %v417_v39 = vsel %vm416_vm5, %v1448_v28, %v413_v37 }
 0x337   :  { %v422_v40 = vsel %vm419_vm6, %v421_v38, %v417_v39 }
 0x338   :  { %v426_v41 = vmul.f32 2.0, %v422_v40  ;;  %v439_v52 = vmul.f32 %v422_v40, %v1740_v54 }
 0x33a   :  { %v1371_v42 = vadd.f32 -1.0, %v426_v41 }
 0x33c   :  { %441 = vrot.lane.b32.xlu0 %v1371_v42, %s1554_s4 }
 0x388   :  { %v431_v43 = vpop.permute.xlu2 %430 }
 0x389   :  { %v433_v44 = vmul.f32 %v431_v43, %v403_v25 }
 0x38b   :  { %435 = vrot.lane.b32.xlu1 %v433_v44, %s1555_s21 }
 0x3ae   :  { %v442_v45 = vpop.permute.xlu0 %441 }
 0x3af   :  { %v444_v46 = vmul.f32 %v442_v45, %v422_v40 }
 0x3b1   :  { %446 = vrot.lane.b32.xlu2 %v444_v46, %s1555_s21 }
 0x3fd   :  { %v436_v48 = vpop.permute.xlu1 %435 }
 0x3fe   :  { %v1763_v49 = vadd.f32 %v436_v48, %v428_v47 }
 0x400   :  { %1449 = vtanh.f32 %v1763_v49 }
 0x406   :  { %v1450_v51 = vpop.eup %1449 }
 0x407   :  { %452 = vrot.lane.b32.xlu0 %v1450_v51, %s1554_s4 }
 0x40b   :  { %v447_v53 = vpop.permute.xlu2 %446 }
 0x40c   :  { %v1768_v55 = vadd.f32 %v447_v53, %v439_v52 }
 0x40e   :  { %1451 = vtanh.f32 %v1768_v55 }
 0x414   :  { %v1452_v56 = vpop.eup %1451 }
 0x415   :  { %458 = vrot.lane.b32.xlu1 %v1452_v56, %s1554_s4 }
 0x479   :  { %v453_v57 = vpop.permute.xlu0 %452 }
 0x47a   :  { %v455_v50 = vmul.f32 %v453_v57, %v403_v25 }
 0x47c   :  { %v462_v58 = vpack.c.bf16 %v455_v50, %v455_v50 }
 0x47e   :  { %469 = vrot.lane.b32.xlu2 %v462_v58, %s1555_s21 }
 0x487   :  { %v459_v59 = vpop.permute.xlu1 %458 }
 0x488   :  { %v461_v60 = vmul.f32 %v459_v59, %v422_v40 }
 0x48a   :  { %v463_v61 = vpack.c.bf16 %v461_v60, %v461_v60 }
 0x48c   :  { %489 = vrot.lane.b32.xlu0 %v463_v61, %s1555_s21 }
 0x4d8   :  { %v470_v62 = vpop.permute.xlu2 %469 }
 0x4d9   :  { %1372 = vmatmul.msk.bf16.vlgmr.msrb.gmra.mxu0 %vm214_vm13, %v470_v62 }
 0x4da   :  { %968 = vmatpush.bf16.msrb.mxu0 %v1640_v14 }
 0x4de   :  { %969 = vmatpush.bf16.msrb.mxu0 %v1682_v29 }
 0x4fe   :  { %v490_v54 = vpop.permute.xlu0 %489 }
 0x4ff   :  { %1373 = vmatmul.msk.bf16.vlgmr.msrb.gmra.mxu1 %vm214_vm13, %v490_v54 }
 0x500   :  { %988 = vmatpush.bf16.msrb.mxu1 %v1690_v31 }
 0x504   :  { %989 = vmatpush.bf16.msrb.mxu1 %v1696_v32 }
 0x556   :  { %v483_v1 = vpop.f32.mrf.mxu0 }
 0x557   :  { %v487_v2 = vadd.f32 %v483_v1, %v1780_v63 }
 0x559   :  { %v1374_v3 = vmul.f32 -1.442695, %v487_v2  ;;  %v1808_v2 = vld [vmem:[#allocation2 + $0xc] sm:$0xf] }
 0x55b   :  { %1453 = vpow2.f32 %v1374_v3 }
 0x55e   :  { %v485_v4 = vpop.f32.mrf.mxu0 }
 0x561   :  { %v1454_v6 = vpop.eup %1453 }
 0x562   :  { %v514_v7 = vadd.f32 1.0, %v1454_v6 }
 0x564   :  { %1455 = vrcp.f32 %v514_v7  ;;  %v526_v11 = vand.u32 2147483648, %v514_v7  ;;  %v524_v13 = vand.u32 2147483647, %v514_v7  ;;  %vm520_vm8 = vweird.f32 %v514_v7 }
 0x566   :  { %v527_v16 = vor.u32 1.1754944e-38, %v526_v11  ;;  %vm525_vm10 = vcmp.eq.f32.partialorder %v524_v13, 8.507059e+37 }
 0x56a   :  { %v1456_v8 = vpop.eup %1455 }
 0x56b   :  { %v516_v9 = vmul.f32 %v1456_v8, %v514_v7  ;;  %vm521_vm7 = vweird.f32 %v1456_v8 }
 0x56c   :  { %vm522_vm9 = vmor %vm520_vm8, %vm521_vm7 }
 0x56d   :  { %v517_v10 = vsub.f32 1.0, %v516_v9 }
 0x56f   :  { %v518_v12 = vmul.f32 %v1456_v8, %v517_v10 }
 0x571   :  { %v519_v15 = vadd.f32 %v1456_v8, %v518_v12 }
 0x573   :  { %v523_v17 = vsel %vm522_vm9, %v1456_v8, %v519_v15  ;;  %v1811_v8 = vld [vmem:[#allocation2 + $0x10] sm:$0xf] }
 0x574   :  { %v528_v18 = vsel %vm525_vm10, %v527_v16, %v523_v17 }
 0x575   :  { %v549_v19 = vmul.f32 2.0, %v528_v18  ;;  %v553_v48 = vmul.f32 %v528_v18, %v1763_v49 }
 0x577   :  { %v1376_v20 = vadd.f32 -1.0, %v549_v19 }
 0x579   :  { %555 = vrot.lane.b32.xlu1 %v1376_v20, %s1554_s4 }
 0x57c   :  { %v503_v23 = vpop.f32.mrf.mxu1 }
 0x57d   :  { %v510_v24 = vadd.f32 %v508_v22, %v503_v23 }
 0x57f   :  { %v1375_v25 = vmul.f32 -1.442695, %v510_v24 }
 0x581   :  { %1457 = vpow2.f32 %v1375_v25 }
 0x584   :  { %v505_v26 = vpop.f32.mrf.mxu1 }
 0x587   :  { %v1458_v27 = vpop.eup %1457 }
 0x588   :  { %v533_v28 = vadd.f32 1.0, %v1458_v27 }
 0x58a   :  { %1459 = vrcp.f32 %v533_v28  ;;  %v545_v35 = vand.u32 2147483648, %v533_v28  ;;  %v543_v37 = vand.u32 2147483647, %v533_v28  ;;  %vm539_vm12 = vweird.f32 %v533_v28 }
 0x58c   :  { %v546_v39 = vor.u32 1.1754944e-38, %v545_v35  ;;  %vm544_vm15 = vcmp.eq.f32.partialorder %v543_v37, 8.507059e+37 }
 0x590   :  { %v1460_v30 = vpop.eup %1459 }
 0x591   :  { %v535_v33 = vmul.f32 %v1460_v30, %v533_v28  ;;  %vm540_vm11 = vweird.f32 %v1460_v30 }
 0x592   :  { %vm541_vm14 = vmor %vm539_vm12, %vm540_vm11 }
 0x593   :  { %v536_v34 = vsub.f32 1.0, %v535_v33 }
 0x595   :  { %v537_v36 = vmul.f32 %v1460_v30, %v536_v34 }
 0x597   :  { %v538_v38 = vadd.f32 %v1460_v30, %v537_v36 }
 0x599   :  { %v542_v40 = vsel %vm541_vm14, %v1460_v30, %v538_v38 }
 0x59a   :  { %v547_v41 = vsel %vm544_vm15, %v546_v39, %v542_v40 }
 0x59b   :  { %v551_v42 = vmul.f32 2.0, %v547_v41  ;;  %v564_v56 = vmul.f32 %v547_v41, %v1768_v55 }
 0x59d   :  { %v1377_v43 = vadd.f32 -1.0, %v551_v42 }
 0x59f   :  { %566 = vrot.lane.b32.xlu2 %v1377_v43, %s1554_s4 }
 0x5eb   :  { %v556_v44 = vpop.permute.xlu1 %555 }
 0x5ec   :  { %v558_v45 = vmul.f32 %v556_v44, %v528_v18 }
 0x5ee   :  { %560 = vrot.lane.b32.xlu0 %v558_v45, %s1555_s21 }
 0x5f9   :  { %v567_v46 = vpop.permute.xlu2 %566 }
 0x5fa   :  { %v569_v47 = vmul.f32 %v567_v46, %v547_v41 }
 0x5fc   :  { %571 = vrot.lane.b32.xlu1 %v569_v47, %s1555_s21 }
 0x660   :  { %v561_v51 = vpop.permute.xlu0 %560 }
 0x661   :  { %v1791_v52 = vadd.f32 %v561_v51, %v553_v48 }
 0x663   :  { %1461 = vtanh.f32 %v1791_v52 }
 0x669   :  { %v1462_v53 = vpop.eup %1461 }
 0x66a   :  { %577 = vrot.lane.b32.xlu2 %v1462_v53, %s1554_s4 }
 0x66e   :  { %v572_v57 = vpop.permute.xlu1 %571 }
 0x66f   :  { %v1796_v50 = vadd.f32 %v572_v57, %v564_v56 }
 0x671   :  { %1463 = vtanh.f32 %v1796_v50 }
 0x677   :  { %v1464_v58 = vpop.eup %1463 }
 0x678   :  { %583 = vrot.lane.b32.xlu0 %v1464_v58, %s1554_s4 }
 0x6c4   :  { %v578_v59 = vpop.permute.xlu2 %577 }
 0x6c5   :  { %v580_v49 = vmul.f32 %v578_v59, %v528_v18 }
 0x6c7   :  { %v587_v60 = vpack.c.bf16 %v580_v49, %v580_v49 }
 0x6c9   :  { %594 = vrot.lane.b32.xlu1 %v587_v60, %s1555_s21 }
 0x6ea   :  { %v584_v61 = vpop.permute.xlu0 %583 }
 0x6eb   :  { %v586_v62 = vmul.f32 %v584_v61, %v547_v41 }
 0x6ed   :  { %v588_v54 = vpack.c.bf16 %v586_v62, %v586_v62 }
 0x6ef   :  { %614 = vrot.lane.b32.xlu2 %v588_v54, %s1555_s21 }
 0x73b   :  { %v595_v1 = vpop.permute.xlu1 %594 }
 0x73c   :  { %1378 = vmatmul.msk.bf16.vlgmr.msra.gmra.mxu2 %vm214_vm13, %v595_v1 }
 0x73d   :  { %1089 = vmatpush.bf16.msra.mxu2 %v1640_v14 }
 0x741   :  { %1090 = vmatpush.bf16.msra.mxu2 %v1682_v29  ;;  %v633_v29 = vrot.slane %v1811_v8, 2 }
 0x749   :  { %v615_v55 = vpop.permute.xlu2 %614 }
 0x74a   :  { %1379 = vmatmul.msk.bf16.vlgmr.msra.gmra.mxu3 %vm214_vm13, %v615_v55 }
 0x74b   :  { %1109 = vmatpush.bf16.msra.mxu3 %v1690_v31 }
 0x74f   :  { %1110 = vmatpush.bf16.msra.mxu3 %v1696_v32 }
 0x7bf   :  { %v608_v3 = vpop.f32.mrf.mxu2 }
 0x7c0   :  { %v612_v4 = vadd.f32 %v608_v3, %v1808_v2 }
 0x7c2   :  { %v1380_v6 = vmul.f32 -1.442695, %v612_v4 }
 0x7c4   :  { %1465 = vpow2.f32 %v1380_v6 }
 0x7c7   :  { %v610_v7 = vpop.f32.mrf.mxu2 }
 0x7ca   :  { %v1466_v14 = vpop.eup %1465 }
 0x7cb   :  { %v639_v9 = vadd.f32 1.0, %v1466_v14 }
 0x7cd   :  { %1467 = vrcp.f32 %v639_v9  ;;  %v628_v10 = vpop.f32.mrf.mxu3  ;;  %v651_v16 = vand.u32 2147483648, %v639_v9  ;;  %v649_v19 = vand.u32 2147483647, %v639_v9  ;;  %vm645_vm2 = vweird.f32 %v639_v9 }
 0x7ce   :  { %v635_v11 = vadd.f32 %v633_v29, %v628_v10 }
 0x7cf   :  { %v652_v23 = vor.u32 1.1754944e-38, %v651_v16  ;;  %vm650_vm4 = vcmp.eq.f32.partialorder %v649_v19, 8.507059e+37 }
 0x7d0   :  { %v1381_v31 = vmul.f32 -1.442695, %v635_v11 }
 0x7d2   :  { %1469 = vpow2.f32 %v1381_v31 }
 0x7d3   :  { %v1468_v32 = vpop.eup %1467 }
 0x7d4   :  { %v641_v12 = vmul.f32 %v1468_v32, %v639_v9  ;;  %vm646_vm1 = vweird.f32 %v1468_v32  ;;  %v754_v9 = vrot.slane %v1808_v2, 2 }
 0x7d5   :  { %v630_v13 = vpop.f32.mrf.mxu3  ;;  %vm647_vm3 = vmor %vm645_vm2, %vm646_vm1 }
 0x7d6   :  { %v642_v15 = vsub.f32 1.0, %v641_v12 }
 0x7d8   :  { %v1470_v17 = vpop.eup %1469  ;;  %v643_v18 = vmul.f32 %v1468_v32, %v642_v15 }
 0x7d9   :  { %v658_v20 = vadd.f32 1.0, %v1470_v17 }
 0x7da   :  { %v644_v22 = vadd.f32 %v1468_v32, %v643_v18 }
 0x7db   :  { %1471 = vrcp.f32 %v658_v20  ;;  %v670_v34 = vand.u32 2147483648, %v658_v20  ;;  %v668_v36 = vand.u32 2147483647, %v658_v20  ;;  %vm664_vm6 = vweird.f32 %v658_v20 }
 0x7dc   :  { %v648_v24 = vsel %vm647_vm3, %v1468_v32, %v644_v22 }
 0x7dd   :  { %v653_v25 = vsel %vm650_vm4, %v652_v23, %v648_v24  ;;  %v671_v38 = vor.u32 1.1754944e-38, %v670_v34  ;;  %vm669_vm8 = vcmp.eq.f32.partialorder %v668_v36, 8.507059e+37 }
 0x7de   :  { %v674_v26 = vmul.f32 2.0, %v653_v25  ;;  %v678_v47 = vmul.f32 %v653_v25, %v1791_v52 }
 0x7e0   :  { %v1382_v27 = vadd.f32 -1.0, %v674_v26 }
 0x7e1   :  { %v1472_v28 = vpop.eup %1471 }
 0x7e2   :  { %v660_v30 = vmul.f32 %v1472_v28, %v658_v20  ;;  %680 = vrot.lane.b32.xlu0 %v1382_v27, %s1554_s4  ;;  %vm665_vm5 = vweird.f32 %v1472_v28 }
 0x7e3   :  { %vm666_vm7 = vmor %vm664_vm6, %vm665_vm5 }
 0x7e4   :  { %v661_v33 = vsub.f32 1.0, %v660_v30 }
 0x7e6   :  { %v662_v35 = vmul.f32 %v1472_v28, %v661_v33 }
 0x7e8   :  { %v663_v37 = vadd.f32 %v1472_v28, %v662_v35 }
 0x7ea   :  { %v667_v39 = vsel %vm666_vm7, %v1472_v28, %v663_v37 }
 0x7eb   :  { %v672_v40 = vsel %vm669_vm8, %v671_v38, %v667_v39 }
 0x7ec   :  { %v676_v41 = vmul.f32 2.0, %v672_v40  ;;  %v689_v56 = vmul.f32 %v672_v40, %v1796_v50 }
 0x7ee   :  { %v1383_v42 = vadd.f32 -1.0, %v676_v41 }
 0x7f0   :  { %691 = vrot.lane.b32.xlu1 %v1383_v42, %s1554_s4 }
 0x854   :  { %v681_v43 = vpop.permute.xlu0 %680 }
 0x855   :  { %v683_v44 = vmul.f32 %v681_v43, %v653_v25 }
 0x857   :  { %685 = vrot.lane.b32.xlu2 %v683_v44, %s1555_s21 }
 0x862   :  { %v692_v45 = vpop.permute.xlu1 %691 }
 0x863   :  { %v694_v46 = vmul.f32 %v692_v45, %v672_v40 }
 0x865   :  { %696 = vrot.lane.b32.xlu0 %v694_v46, %s1555_s21 }
 0x8b1   :  { %v686_v48 = vpop.permute.xlu2 %685 }
 0x8b2   :  { %v1819_v51 = vadd.f32 %v686_v48, %v678_v47 }
 0x8b4   :  { %1473 = vtanh.f32 %v1819_v51 }
 0x8ba   :  { %v1474_v53 = vpop.eup %1473 }
 0x8bb   :  { %702 = vrot.lane.b32.xlu1 %v1474_v53, %s1554_s4 }
 0x8d7   :  { %v697_v57 = vpop.permute.xlu0 %696 }
 0x8d8   :  { %v1824_v58 = vadd.f32 %v697_v57, %v689_v56 }
 0x8da   :  { %1475 = vtanh.f32 %v1824_v58 }
 0x8e0   :  { %v1476_v59 = vpop.eup %1475 }
 0x8e1   :  { %708 = vrot.lane.b32.xlu2 %v1476_v59, %s1554_s4 }
 0x92d   :  { %v703_v49 = vpop.permute.xlu1 %702 }
 0x92e   :  { %v705_v52 = vmul.f32 %v703_v49, %v653_v25 }
 0x930   :  { %v712_v60 = vpack.c.bf16 %v705_v52, %v705_v52 }
 0x932   :  { %715 = vrot.lane.b32.xlu0 %v712_v60, %s1555_s21 }
 0x93b   :  { %v709_v61 = vpop.permute.xlu2 %708 }
 0x93c   :  { %v711_v62 = vmul.f32 %v709_v61, %v672_v40 }
 0x93e   :  { %v713_v54 = vpack.c.bf16 %v711_v62, %v711_v62 }
 0x940   :  { %735 = vrot.lane.b32.xlu1 %v713_v54, %s1555_s21 }
 0x9a4   :  { %v716_v1 = vpop.permute.xlu0 %715 }
 0x9a5   :  { %1384 = vmatmul.msk.bf16.vlgmr.msra.gmra.mxu0 %vm214_vm13, %v716_v1 }
 0x9b2   :  { %v736_v50 = vpop.permute.xlu1 %735 }
 0x9b3   :  { %1385 = vmatmul.msk.bf16.vlgmr.msra.gmra.mxu1 %vm214_vm13, %v736_v50 }
 0xa22   :  { %v729_v55 = vpop.f32.mrf.mxu0 }
 0xa23   :  { %v733_v3 = vadd.f32 %v729_v55, %v1811_v8 }
 0xa25   :  { %v1386_v4 = vmul.f32 -1.442695, %v733_v3 }
 0xa27   :  { %1477 = vpow2.f32 %v1386_v4 }
 0xa2a   :  { %v731_v6 = vpop.f32.mrf.mxu0 }
 0xa2d   :  { %v1478_v7 = vpop.eup %1477 }
 0xa2e   :  { %v760_v14 = vadd.f32 1.0, %v1478_v7 }
 0xa30   :  { %1479 = vrcp.f32 %v760_v14  ;;  %v749_v29 = vpop.f32.mrf.mxu1  ;;  %v772_v15 = vand.u32 2147483648, %v760_v14  ;;  %v770_v8 = vand.u32 2147483647, %v760_v14  ;;  %vm766_vm10 = vweird.f32 %v760_v14 }
 0xa31   :  { %v756_v10 = vadd.f32 %v754_v9, %v749_v29 }
 0xa32   :  { %v773_v2 = vor.u32 1.1754944e-38, %v772_v15  ;;  %vm771_vm12 = vcmp.eq.f32.partialorder %v770_v8, 8.507059e+37  ;;  %v875_v15 = vrot.slane %v1780_v63, 2 }
 0xa33   :  { %v1387_v11 = vmul.f32 -1.442695, %v756_v10 }
 0xa35   :  { %1481 = vpow2.f32 %v1387_v11 }
 0xa36   :  { %v1480_v31 = vpop.eup %1479 }
 0xa37   :  { %v762_v32 = vmul.f32 %v1480_v31, %v760_v14  ;;  %vm767_vm9 = vweird.f32 %v1480_v31 }
 0xa38   :  { %v751_v12 = vpop.f32.mrf.mxu1  ;;  %vm768_vm11 = vmor %vm766_vm10, %vm767_vm9 }
 0xa39   :  { %v763_v13 = vsub.f32 1.0, %v762_v32 }
 0xa3b   :  { %v1482_v16 = vpop.eup %1481  ;;  %v764_v17 = vmul.f32 %v1480_v31, %v763_v13 }
 0xa3c   :  { %v779_v18 = vadd.f32 1.0, %v1482_v16 }
 0xa3d   :  { %v765_v19 = vadd.f32 %v1480_v31, %v764_v17 }
 0xa3e   :  { %1483 = vrcp.f32 %v779_v18  ;;  %v791_v28 = vand.u32 2147483648, %v779_v18  ;;  %v789_v33 = vand.u32 2147483647, %v779_v18  ;;  %vm785_vm15 = vweird.f32 %v779_v18 }
 0xa3f   :  { %v769_v20 = vsel %vm768_vm11, %v1480_v31, %v765_v19 }
 0xa40   :  { %v774_v22 = vsel %vm771_vm12, %v773_v2, %v769_v20  ;;  %v792_v35 = vor.u32 1.1754944e-38, %v791_v28  ;;  %vm790_vm2 = vcmp.eq.f32.partialorder %v789_v33, 8.507059e+37 }
 0xa41   :  { %v795_v23 = vmul.f32 2.0, %v774_v22  ;;  %v799_v44 = vmul.f32 %v774_v22, %v1819_v51 }
 0xa43   :  { %v1388_v24 = vadd.f32 -1.0, %v795_v23 }
 0xa44   :  { %v1484_v25 = vpop.eup %1483 }
 0xa45   :  { %v781_v26 = vmul.f32 %v1484_v25, %v779_v18  ;;  %801 = vrot.lane.b32.xlu2 %v1388_v24, %s1554_s4  ;;  %vm786_vm14 = vweird.f32 %v1484_v25 }
 0xa46   :  { %vm787_vm1 = vmor %vm785_vm15, %vm786_vm14 }
 0xa47   :  { %v782_v27 = vsub.f32 1.0, %v781_v26 }
 0xa49   :  { %v783_v30 = vmul.f32 %v1484_v25, %v782_v27 }
 0xa4b   :  { %v784_v34 = vadd.f32 %v1484_v25, %v783_v30 }
 0xa4d   :  { %v788_v36 = vsel %vm787_vm1, %v1484_v25, %v784_v34 }
 0xa4e   :  { %v793_v37 = vsel %vm790_vm2, %v792_v35, %v788_v36 }
 0xa4f   :  { %v797_v38 = vmul.f32 2.0, %v793_v37  ;;  %v810_v48 = vmul.f32 %v793_v37, %v1824_v58 }
 0xa51   :  { %v1389_v39 = vadd.f32 -1.0, %v797_v38 }
 0xa53   :  { %812 = vrot.lane.b32.xlu0 %v1389_v39, %s1554_s4 }
 0xa9f   :  { %v802_v40 = vpop.permute.xlu2 %801 }
 0xaa0   :  { %v804_v41 = vmul.f32 %v802_v40, %v774_v22 }
 0xaa2   :  { %806 = vrot.lane.b32.xlu1 %v804_v41, %s1555_s21 }
 0xac5   :  { %v813_v42 = vpop.permute.xlu0 %812 }
 0xac6   :  { %v815_v43 = vmul.f32 %v813_v42, %v793_v37 }
 0xac8   :  { %817 = vrot.lane.b32.xlu2 %v815_v43, %s1555_s21 }
 0xb14   :  { %v807_v45 = vpop.permute.xlu1 %806 }
 0xb15   :  { %v1839_v46 = vadd.f32 %v807_v45, %v799_v44 }
 0xb17   :  { %1485 = vtanh.f32 %v1839_v46 }
 0xb1d   :  { %v1486_v47 = vpop.eup %1485 }
 0xb1e   :  { %823 = vrot.lane.b32.xlu0 %v1486_v47, %s1554_s4 }
 0xb22   :  { %v818_v53 = vpop.permute.xlu2 %817 }
 0xb23   :  { %v1844_v56 = vadd.f32 %v818_v53, %v810_v48 }
 0xb25   :  { %1487 = vtanh.f32 %v1844_v56 }
 0xb2b   :  { %v1488_v57 = vpop.eup %1487 }
 0xb2c   :  { %829 = vrot.lane.b32.xlu1 %v1488_v57, %s1554_s4 }
 0xb90   :  { %v824_v59 = vpop.permute.xlu0 %823 }
 0xb91   :  { %v826_v51 = vmul.f32 %v824_v59, %v774_v22 }
 0xb93   :  { %v833_v49 = vpack.c.bf16 %v826_v51, %v826_v51 }
 0xb95   :  { %836 = vrot.lane.b32.xlu2 %v833_v49, %s1555_s21 }
 0xb9e   :  { %v830_v52 = vpop.permute.xlu1 %829 }
 0xb9f   :  { %v832_v60 = vmul.f32 %v830_v52, %v793_v37 }
 0xba1   :  { %v834_v61 = vpack.c.bf16 %v832_v60, %v832_v60 }
 0xba3   :  { %856 = vrot.lane.b32.xlu0 %v834_v61, %s1555_s21 }
 0xbef   :  { %v837_v62 = vpop.permute.xlu2 %836 }
 0xbf0   :  { %1390 = vmatmul.msk.bf16.vlgmr.msrb.gmra.mxu2 %vm214_vm13, %v837_v62 }
 0xc15   :  { %v857_v58 = vpop.permute.xlu0 %856 }
 0xc16   :  { %1391 = vmatmul.msk.bf16.vlgmr.msrb.gmra.mxu3 %vm214_vm13, %v857_v58 }
 0xc73   :  { %v850_v54 = vpop.f32.mrf.mxu2 }
 0xc74   :  { %v854_v1 = vadd.f32 %v850_v54, %v1783_v21 }
 0xc76   :  { %v1392_v50 = vmul.f32 -1.442695, %v854_v1  ;;  %v996_v1 = vrot.slane %v1752_v0, 2 }
 0xc78   :  { %1489 = vpow2.f32 %v1392_v50 }
 0xc7b   :  { %v852_v55 = vpop.f32.mrf.mxu2 }
 0xc7e   :  { %v1490_v3 = vpop.eup %1489 }
 0xc7f   :  { %v881_v4 = vadd.f32 1.0, %v1490_v3 }
 0xc81   :  { %1491 = vrcp.f32 %v881_v4  ;;  %v893_v9 = vand.u32 2147483648, %v881_v4  ;;  %v891_v10 = vand.u32 2147483647, %v881_v4  ;;  %vm887_vm4 = vweird.f32 %v881_v4 }
 0xc83   :  { %v894_v31 = vor.u32 1.1754944e-38, %v893_v9  ;;  %vm892_vm6 = vcmp.eq.f32.partialorder %v891_v10, 8.507059e+37 }
 0xc87   :  { %v1492_v6 = vpop.eup %1491 }
 0xc88   :  { %v883_v7 = vmul.f32 %v1492_v6, %v881_v4  ;;  %vm888_vm3 = vweird.f32 %v1492_v6 }
 0xc89   :  { %vm889_vm5 = vmor %vm887_vm4, %vm888_vm3 }
 0xc8a   :  { %v884_v14 = vsub.f32 1.0, %v883_v7 }
 0xc8c   :  { %v885_v29 = vmul.f32 %v1492_v6, %v884_v14 }
 0xc8e   :  { %v886_v11 = vadd.f32 %v1492_v6, %v885_v29 }
 0xc90   :  { %v890_v32 = vsel %vm889_vm5, %v1492_v6, %v886_v11 }
 0xc91   :  { %v895_v21 = vsel %vm892_vm6, %v894_v31, %v890_v32 }
 0xc92   :  { %v916_v12 = vmul.f32 2.0, %v895_v21  ;;  %v920_v39 = vmul.f32 %v895_v21, %v1839_v46 }
 0xc94   :  { %v1394_v13 = vadd.f32 -1.0, %v916_v12 }
 0xc96   :  { %922 = vrot.lane.b32.xlu1 %v1394_v13, %s1554_s4 }
 0xc99   :  { %v870_v16 = vpop.f32.mrf.mxu3 }
 0xc9a   :  { %v877_v17 = vadd.f32 %v875_v15, %v870_v16 }
 0xc9c   :  { %v1393_v8 = vmul.f32 -1.442695, %v877_v17 }
 0xc9e   :  { %1493 = vpow2.f32 %v1393_v8 }
 0xca1   :  { %v872_v18 = vpop.f32.mrf.mxu3 }
 0xca4   :  { %v1494_v19 = vpop.eup %1493 }
 0xca5   :  { %v900_v2 = vadd.f32 1.0, %v1494_v19 }
 0xca7   :  { %1495 = vrcp.f32 %v900_v2  ;;  %v912_v24 = vand.u32 2147483648, %v900_v2  ;;  %v910_v26 = vand.u32 2147483647, %v900_v2  ;;  %vm906_vm8 = vweird.f32 %v900_v2 }
 0xca9   :  { %v913_v28 = vor.u32 1.1754944e-38, %v912_v24  ;;  %vm911_vm10 = vcmp.eq.f32.partialorder %v910_v26, 8.507059e+37 }
 0xcad   :  { %v1496_v20 = vpop.eup %1495 }
 0xcae   :  { %v902_v22 = vmul.f32 %v1496_v20, %v900_v2  ;;  %vm907_vm7 = vweird.f32 %v1496_v20 }
 0xcaf   :  { %vm908_vm9 = vmor %vm906_vm8, %vm907_vm7 }
 0xcb0   :  { %v903_v23 = vsub.f32 1.0, %v902_v22 }
 0xcb2   :  { %v904_v25 = vmul.f32 %v1496_v20, %v903_v23 }
 0xcb4   :  { %v905_v27 = vadd.f32 %v1496_v20, %v904_v25 }
 0xcb6   :  { %v909_v63 = vsel %vm908_vm9, %v1496_v20, %v905_v27 }
 0xcb7   :  { %v914_v30 = vsel %vm911_vm10, %v913_v28, %v909_v63 }
 0xcb8   :  { %v918_v33 = vmul.f32 2.0, %v914_v30  ;;  %v931_v43 = vmul.f32 %v914_v30, %v1844_v56 }
 0xcba   :  { %v1395_v34 = vadd.f32 -1.0, %v918_v33 }
 0xcbc   :  { %933 = vrot.lane.b32.xlu2 %v1395_v34, %s1554_s4 }
 0xd08   :  { %v923_v35 = vpop.permute.xlu1 %922 }
 0xd09   :  { %v925_v36 = vmul.f32 %v923_v35, %v895_v21 }
 0xd0b   :  { %927 = vrot.lane.b32.xlu0 %v925_v36, %s1555_s21 }
 0xd16   :  { %v934_v37 = vpop.permute.xlu2 %933 }
 0xd17   :  { %v936_v38 = vmul.f32 %v934_v37, %v914_v30 }
 0xd19   :  { %938 = vrot.lane.b32.xlu1 %v936_v38, %s1555_s21 }
 0xd7d   :  { %v928_v40 = vpop.permute.xlu0 %927 }
 0xd7e   :  { %v1859_v41 = vadd.f32 %v928_v40, %v920_v39 }
 0xd80   :  { %1497 = vtanh.f32 %v1859_v41 }
 0xd86   :  { %v1498_v42 = vpop.eup %1497 }
 0xd87   :  { %944 = vrot.lane.b32.xlu2 %v1498_v42, %s1554_s4 }
 0xd8b   :  { %v939_v44 = vpop.permute.xlu1 %938 }
 0xd8c   :  { %v1864_v45 = vadd.f32 %v939_v44, %v931_v43 }
 0xd8e   :  { %1499 = vtanh.f32 %v1864_v45 }
 0xd94   :  { %v1500_v47 = vpop.eup %1499 }
 0xd95   :  { %950 = vrot.lane.b32.xlu0 %v1500_v47, %s1554_s4 }
 0xde1   :  { %v945_v48 = vpop.permute.xlu2 %944 }
 0xde2   :  { %v947_v46 = vmul.f32 %v945_v48, %v895_v21 }
 0xde4   :  { %v954_v53 = vpack.c.bf16 %v947_v46, %v947_v46 }
 0xde6   :  { %957 = vrot.lane.b32.xlu1 %v954_v53, %s1555_s21  ;;  %v1525_v53 = vld [vmem:[#allocation2 + $0x1c] sm:$0xf] }
 0xe07   :  { %v951_v57 = vpop.permute.xlu0 %950 }
 0xe08   :  { %v953_v59 = vmul.f32 %v951_v57, %v914_v30 }
 0xe0a   :  { %v955_v51 = vpack.c.bf16 %v953_v59, %v953_v59 }
 0xe0c   :  { %977 = vrot.lane.b32.xlu2 %v955_v51, %s1555_s21 }
 0xe58   :  { %v958_v49 = vpop.permute.xlu1 %957 }
 0xe59   :  { %1396 = vmatmul.msk.bf16.vlgmr.msrb.gmra.mxu0 %vm214_vm13, %v958_v49 }
 0xe66   :  { %v978_v56 = vpop.permute.xlu2 %977 }
 0xe67   :  { %1397 = vmatmul.msk.bf16.vlgmr.msrb.gmra.mxu1 %vm214_vm13, %v978_v56 }
 0xed6   :  { %v971_v52 = vpop.f32.mrf.mxu0 }
 0xed7   :  { %v975_v60 = vadd.f32 %v971_v52, %v1755_v5  ;;  %v1526_v52 = vld [vmem:[#allocation2] sm:$0xf] }
 0xed9   :  { %v1398_v61 = vmul.f32 -1.442695, %v975_v60  ;;  %v1117_v60 = vrot.slane %v1526_v52, 2  ;;  %v1259_v52 = vld [vmem:[%s1983_s7 + $0x50] sm:$0xff] }
 0xedb   :  { %1501 = vpow2.f32 %v1398_v61 }
 0xede   :  { %v973_v62 = vpop.f32.mrf.mxu0 }
 0xee1   :  { %v1502_v58 = vpop.eup %1501 }
 0xee2   :  { %v1002_v54 = vadd.f32 1.0, %v1502_v58 }
 0xee4   :  { %1503 = vrcp.f32 %v1002_v54  ;;  %v991_v50 = vpop.f32.mrf.mxu1  ;;  %v1014_v9 = vand.u32 2147483648, %v1002_v54  ;;  %v1012_v5 = vand.u32 2147483647, %v1002_v54  ;;  %vm1008_vm12 = vweird.f32 %v1002_v54 }
 0xee5   :  { %v998_v55 = vadd.f32 %v996_v1, %v991_v50 }
 0xee6   :  { %v1015_v0 = vor.u32 1.1754944e-38, %v1014_v9  ;;  %vm1013_vm15 = vcmp.eq.f32.partialorder %v1012_v5, 8.507059e+37 }
 0xee7   :  { %v1399_v3 = vmul.f32 -1.442695, %v998_v55 }
 0xee9   :  { %1505 = vpow2.f32 %v1399_v3 }
 0xeea   :  { %v1504_v4 = vpop.eup %1503 }
 0xeeb   :  { %v1004_v6 = vmul.f32 %v1504_v4, %v1002_v54  ;;  %vm1009_vm11 = vweird.f32 %v1504_v4 }
 0xeec   :  { %v993_v7 = vpop.f32.mrf.mxu1  ;;  %vm1010_vm14 = vmor %vm1008_vm12, %vm1009_vm11 }
 0xeed   :  { %v1005_v14 = vsub.f32 1.0, %v1004_v6 }
 0xeef   :  { %v1506_v29 = vpop.eup %1505  ;;  %v1006_v10 = vmul.f32 %v1504_v4, %v1005_v14 }
 0xef0   :  { %v1021_v11 = vadd.f32 1.0, %v1506_v29 }
 0xef1   :  { %v1007_v31 = vadd.f32 %v1504_v4, %v1006_v10 }
 0xef2   :  { %1507 = vrcp.f32 %v1021_v11  ;;  %v1033_v8 = vand.u32 2147483648, %v1021_v11  ;;  %v1031_v19 = vand.u32 2147483647, %v1021_v11  ;;  %vm1027_vm2 = vweird.f32 %v1021_v11 }
 0xef3   :  { %v1011_v32 = vsel %vm1010_vm14, %v1504_v4, %v1007_v31  ;;  %vm1270_vm14 = vcmask 1043456  }
 0xef4   :  { %v1016_v21 = vsel %vm1013_vm15, %v1015_v0, %v1011_v32  ;;  %v1034_v20 = vor.u32 1.1754944e-38, %v1033_v8  ;;  %vm1032_vm4 = vcmp.eq.f32.partialorder %v1031_v19, 8.507059e+37 }
 0xef5   :  { %v1037_v12 = vmul.f32 2.0, %v1016_v21  ;;  %v1041_v30 = vmul.f32 %v1016_v21, %v1859_v41 }
 0xef7   :  { %v1400_v13 = vadd.f32 -1.0, %v1037_v12 }
 0xef8   :  { %v1508_v15 = vpop.eup %1507 }
 0xef9   :  { %v1023_v16 = vmul.f32 %v1508_v15, %v1021_v11  ;;  %1043 = vrot.lane.b32.xlu0 %v1400_v13, %s1554_s4  ;;  %vm1028_vm1 = vweird.f32 %v1508_v15 }
 0xefa   :  { %vm1029_vm3 = vmor %vm1027_vm2, %vm1028_vm1 }
 0xefb   :  { %v1024_v17 = vsub.f32 1.0, %v1023_v16 }
 0xefd   :  { %v1025_v18 = vmul.f32 %v1508_v15, %v1024_v17 }
 0xeff   :  { %v1026_v2 = vadd.f32 %v1508_v15, %v1025_v18 }
 0xf01   :  { %v1030_v22 = vsel %vm1029_vm3, %v1508_v15, %v1026_v2 }
 0xf02   :  { %v1035_v23 = vsel %vm1032_vm4, %v1034_v20, %v1030_v22 }
 0xf03   :  { %v1039_v24 = vmul.f32 2.0, %v1035_v23  ;;  %v1052_v36 = vmul.f32 %v1035_v23, %v1864_v45 }
 0xf05   :  { %v1401_v25 = vadd.f32 -1.0, %v1039_v24 }
 0xf07   :  { %1054 = vrot.lane.b32.xlu1 %v1401_v25, %s1554_s4 }
 0xf6b   :  { %v1044_v26 = vpop.permute.xlu0 %1043 }
 0xf6c   :  { %v1046_v27 = vmul.f32 %v1044_v26, %v1016_v21 }
 0xf6e   :  { %1048 = vrot.lane.b32.xlu2 %v1046_v27, %s1555_s21 }
 0xf79   :  { %v1055_v28 = vpop.permute.xlu1 %1054 }
 0xf7a   :  { %v1057_v63 = vmul.f32 %v1055_v28, %v1035_v23 }
 0xf7c   :  { %1059 = vrot.lane.b32.xlu0 %v1057_v63, %s1555_s21 }
 0xfc8   :  { %v1049_v33 = vpop.permute.xlu2 %1048 }
 0xfc9   :  { %v1879_v34 = vadd.f32 %v1049_v33, %v1041_v30 }
 0xfcb   :  { %1509 = vtanh.f32 %v1879_v34 }
 0xfd1   :  { %v1510_v35 = vpop.eup %1509 }
 0xfd2   :  { %1065 = vrot.lane.b32.xlu1 %v1510_v35, %s1554_s4 }
 0xfee   :  { %v1060_v37 = vpop.permute.xlu0 %1059 }
 0xfef   :  { %v1884_v38 = vadd.f32 %v1060_v37, %v1052_v36 }
 0xff1   :  { %1511 = vtanh.f32 %v1884_v38 }
 0xff7   :  { %v1512_v39 = vpop.eup %1511 }
 0xff8   :  { %1071 = vrot.lane.b32.xlu2 %v1512_v39, %s1554_s4 }
0x1044   :  { %v1066_v40 = vpop.permute.xlu1 %1065 }
0x1045   :  { %v1068_v41 = vmul.f32 %v1066_v40, %v1016_v21 }
0x1047   :  { %v1075_v42 = vpack.c.bf16 %v1068_v41, %v1068_v41 }
0x1049   :  { %1078 = vrot.lane.b32.xlu0 %v1075_v42, %s1555_s21 }
0x1052   :  { %v1072_v43 = vpop.permute.xlu2 %1071 }
0x1053   :  { %v1074_v44 = vmul.f32 %v1072_v43, %v1035_v23 }
0x1055   :  { %v1076_v47 = vpack.c.bf16 %v1074_v44, %v1074_v44 }
0x1057   :  { %1098 = vrot.lane.b32.xlu1 %v1076_v47, %s1555_s21 }
0x10bb   :  { %v1079_v48 = vpop.permute.xlu0 %1078 }
0x10bc   :  { %1402 = vmatmul.msk.bf16.vlgmr.msra.gmra.mxu2 %vm214_vm13, %v1079_v48  ;;  %v1219_v48 = vld [vmem:[%s1981_s5 + $0x30] sm:$0xff] }
0x10c9   :  { %v1099_v45 = vpop.permute.xlu1 %1098 }
0x10ca   :  { %1403 = vmatmul.msk.bf16.vlgmr.msra.gmra.mxu3 %vm214_vm13, %v1099_v45  ;;  %v1218_v45 = vld [vmem:[%s1981_s5 + $0x28] sm:$0xff] }
0x113f   :  { %v1092_v46 = vpop.f32.mrf.mxu2 }
0x1140   :  { %v1096_v57 = vadd.f32 %v1525_v53, %v1092_v46  ;;  %v1217_v46 = vld [vmem:[%s1981_s5 + $0x20] sm:$0xff]  ;;  %v1216_v53 = vld [vmem:[%s1981_s5 + $0x18] sm:$0xff] }
0x1142   :  { %v1404_v59 = vmul.f32 -1.442695, %v1096_v57  ;;  %v1215_v57 = vld [vmem:[%s1981_s5 + $0x10] sm:$0xff] }
0x1144   :  { %1513 = vpow2.f32 %v1404_v59  ;;  %v1214_v59 = vld [vmem:[%s1981_s5 + $0x8] sm:$0xff] }
0x1147   :  { %v1094_v51 = vpop.f32.mrf.mxu2 }
0x1148   :  { %v1213_v51 = vld [vmem:[%s1981_s5] sm:$0xff] }
0x114a   :  { %v1514_v49 = vpop.eup %1513 }
0x114b   :  { %v1123_v56 = vadd.f32 1.0, %v1514_v49  ;;  %v1261_v49 = vld [vmem:[%s1983_s7 + $0x60] sm:$0xf] }
0x114c   :  { %1409 = vmatpush.msk.msra.mxu1 %vm1270_vm14, %v1261_v49 }
0x114d   :  { %1515 = vrcp.f32 %v1123_v56  ;;  %v1112_v61 = vpop.f32.mrf.mxu3  ;;  %v1135_v3 = vand.u32 2147483648, %v1123_v56  ;;  %v1133_v7 = vand.u32 2147483647, %v1123_v56  ;;  %vm1129_vm6 = vweird.f32 %v1123_v56 }
0x114e   :  { %v1119_v62 = vadd.f32 %v1117_v60, %v1112_v61  ;;  %v1258_v60 = vld [vmem:[%s1983_s7 + $0x48] sm:$0xff]  ;;  %v1257_v61 = vld [vmem:[%s1983_s7 + $0x40] sm:$0xff] }
0x114f   :  { %v1136_v29 = vor.u32 1.1754944e-38, %v1135_v3  ;;  %vm1134_vm8 = vcmp.eq.f32.partialorder %v1133_v7, 8.507059e+37  ;;  %v1251_v7 = vld [vmem:[%s1983_s7 + $0x10] sm:$0xff] }
0x1150   :  { %v1405_v58 = vmul.f32 -1.442695, %v1119_v62  ;;  %v1256_v62 = vld [vmem:[%s1983_s7 + $0x38] sm:$0xff] }
0x1152   :  { %1517 = vpow2.f32 %v1405_v58  ;;  %v1255_v58 = vld [vmem:[%s1983_s7 + $0x30] sm:$0xff] }
0x1153   :  { %v1516_v54 = vpop.eup %1515 }
0x1154   :  { %v1125_v1 = vmul.f32 %v1516_v54, %v1123_v56  ;;  %vm1130_vm5 = vweird.f32 %v1516_v54  ;;  %v1260_v56 = vld [vmem:[%s1983_s7 + $0x58] sm:$0xff] }
0x1155   :  { %v1114_v50 = vpop.f32.mrf.mxu3  ;;  %vm1131_vm7 = vmor %vm1129_vm6, %vm1130_vm5  ;;  %1278 = vmatpush.msra.mxu1 %v1260_v56 }
0x1156   :  { %v1126_v55 = vsub.f32 1.0, %v1125_v1  ;;  %v1253_v1 = vld [vmem:[%s1983_s7 + $0x20] sm:$0xff]  ;;  %v1252_v50 = vld [vmem:[%s1983_s7 + $0x18] sm:$0xff] }
0x1157   :  { %1279 = vmatpush.msra.mxu1 %v1259_v52 }
0x1158   :  { %v1518_v4 = vpop.eup %1517  ;;  %v1127_v6 = vmul.f32 %v1516_v54, %v1126_v55 }
0x1159   :  { %v1142_v14 = vadd.f32 1.0, %v1518_v4  ;;  %1280 = vmatpush.msra.mxu1 %v1258_v60 }
0x115a   :  { %v1128_v9 = vadd.f32 %v1516_v54, %v1127_v6 }
0x115b   :  { %1519 = vrcp.f32 %v1142_v14  ;;  %v1154_v12 = vand.u32 2147483648, %v1142_v14  ;;  %v1152_v15 = vand.u32 2147483647, %v1142_v14  ;;  %vm1148_vm10 = vweird.f32 %v1142_v14  ;;  %1281 = vmatpush.msra.mxu1 %v1257_v61 }
0x115c   :  { %v1132_v10 = vsel %vm1131_vm7, %v1516_v54, %v1128_v9  ;;  %v1254_v54 = vld [vmem:[%s1983_s7 + $0x28] sm:$0xff]  ;;  %v1249_v9 = vld [vmem:[%s1983_s7] sm:$0xff] }
0x115d   :  { %v1137_v5 = vsel %vm1134_vm8, %v1136_v29, %v1132_v10  ;;  %v1155_v17 = vor.u32 1.1754944e-38, %v1154_v12  ;;  %vm1153_vm12 = vcmp.eq.f32.partialorder %v1152_v15, 8.507059e+37  ;;  %1282 = vmatpush.msra.mxu1 %v1256_v62  ;;  %v1427_v29 = vld [vmem:[%s1982_s6] ss:$0 sm:$0xff] }
0x115e   :  { %v1158_v11 = vmul.f32 2.0, %v1137_v5  ;;  %v1162_v25 = vmul.f32 %v1137_v5, %v1879_v34 }
0x115f   :  { %1283 = vmatpush.msra.mxu1 %v1255_v58 }
0x1160   :  { %v1406_v31 = vadd.f32 -1.0, %v1158_v11 }
0x1161   :  { %v1520_v0 = vpop.eup %1519  ;;  %1284 = vmatpush.msra.mxu1 %v1254_v54 }
0x1162   :  { %v1144_v32 = vmul.f32 %v1520_v0, %v1142_v14  ;;  %1164 = vrot.lane.b32.xlu2 %v1406_v31, %s1554_s4  ;;  %vm1149_vm9 = vweird.f32 %v1520_v0  ;;  %v1250_v14 = vld [vmem:[%s1983_s7 + $0x8] sm:$0xff]  ;;  %v1428_v31 = vld [vmem:[%s1984_s8] ss:$0 sm:$0xff]  ;;  %s1303_s7 = sshll.u32 %s1985_s9, 4  ;;  %s1304_s7 = int_to_ptr.hbm [resolvable:$true] %s1303_s7 }
0x1163   :  { %vm1150_vm11 = vmor %vm1148_vm10, %vm1149_vm9  ;;  %1285 = vmatpush.msra.mxu1 %v1253_v1 }
0x1164   :  { %v1145_v21 = vsub.f32 1.0, %v1144_v32 }
0x1165   :  { %1286 = vmatpush.msra.mxu1 %v1252_v50 }
0x1166   :  { %v1146_v13 = vmul.f32 %v1520_v0, %v1145_v21 }
0x1167   :  { %1287 = vmatpush.msra.mxu1 %v1251_v7 }
0x1168   :  { %v1147_v16 = vadd.f32 %v1520_v0, %v1146_v13 }
0x1169   :  { %1288 = vmatpush.msra.mxu1 %v1250_v14 }
0x116a   :  { %v1151_v8 = vsel %vm1150_vm11, %v1520_v0, %v1147_v16 }
0x116b   :  { %v1156_v18 = vsel %vm1153_vm12, %v1155_v17, %v1151_v8  ;;  %1289 = vmatpush.msra.mxu1 %v1249_v9 }
0x116c   :  { %v1160_v19 = vmul.f32 2.0, %v1156_v18  ;;  %v1173_v63 = vmul.f32 %v1156_v18, %v1884_v38  ;;  %v1220_v38 = vld [vmem:[%s1981_s5 + $0x38] sm:$0xff] }
0x116d   :  { %1236 = vmatpush.msra.mxu0 %v1220_v38 }
0x116e   :  { %v1407_v2 = vadd.f32 -1.0, %v1160_v19 }
0x116f   :  { %1237 = vmatpush.msra.mxu0 %v1219_v48 }
0x1170   :  { %1175 = vrot.lane.b32.xlu0 %v1407_v2, %s1554_s4 }
0x1171   :  { %1238 = vmatpush.msra.mxu0 %v1218_v45 }
0x1173   :  { %1239 = vmatpush.msra.mxu0 %v1217_v46 }
0x1175   :  { %1240 = vmatpush.msra.mxu0 %v1216_v53 }
0x1177   :  { %1241 = vmatpush.msra.mxu0 %v1215_v57 }
0x1179   :  { %1242 = vmatpush.msra.mxu0 %v1214_v59 }
0x117b   :  { %1243 = vmatpush.msra.mxu0 %v1213_v51 }
0x11bc   :  { %v1165_v20 = vpop.permute.xlu2 %1164 }
0x11bd   :  { %v1167_v22 = vmul.f32 %v1165_v20, %v1137_v5 }
0x11bf   :  { %1169 = vrot.lane.b32.xlu1 %v1167_v22, %s1555_s21 }
0x11e2   :  { %v1176_v23 = vpop.permute.xlu0 %1175 }
0x11e3   :  { %v1178_v24 = vmul.f32 %v1176_v23, %v1156_v18 }
0x11e5   :  { %1180 = vrot.lane.b32.xlu2 %v1178_v24, %s1555_s21 }
0x1231   :  { %v1170_v26 = vpop.permute.xlu1 %1169 }
0x1232   :  { %v1172_v27 = vadd.f32 %v1170_v26, %v1162_v25 }
0x1234   :  { %1521 = vtanh.f32 %v1172_v27 }
0x123a   :  { %v1522_v28 = vpop.eup %1521 }
0x123b   :  { %1186 = vrot.lane.b32.xlu0 %v1522_v28, %s1554_s4 }
0x123f   :  { %v1181_v30 = vpop.permute.xlu2 %1180 }
0x1240   :  { %v1183_v33 = vadd.f32 %v1181_v30, %v1173_v63 }
0x1242   :  { %1523 = vtanh.f32 %v1183_v33 }
0x1248   :  { %v1524_v35 = vpop.eup %1523 }
0x1249   :  { %1192 = vrot.lane.b32.xlu1 %v1524_v35, %s1554_s4 }
0x12ad   :  { %v1187_v36 = vpop.permute.xlu0 %1186 }
0x12ae   :  { %v1189_v37 = vmul.f32 %v1187_v36, %v1137_v5 }
0x12b0   :  { %v1196_v39 = vpack.c.bf16 %v1189_v37, %v1189_v37 }
0x12b2   :  { %v1199_v40 = vunpack.c.l.b16 %v1196_v39 }
0x12b4   :  { %v1200_v41 = vpack.c.b16 %v1199_v40, %v1199_v40 }
0x12b6   :  { %1201 = vrot.lane.b32.xlu2 %v1200_v41, %s1555_s21 }
0x12bb   :  { %v1193_v34 = vpop.permute.xlu1 %1192 }
0x12bc   :  { %v1195_v42 = vmul.f32 %v1193_v34, %v1156_v18 }
0x12be   :  { %v1197_v43 = vpack.c.bf16 %v1195_v42, %v1195_v42 }
0x12c0   :  { %v1204_v44 = vunpack.c.l.b16 %v1197_v43 }
0x12c2   :  { %v1205_v47 = vpack.c.b16 %v1204_v44, %v1204_v44 }
0x12c4   :  { %1206 = vrot.lane.b32.xlu0 %v1205_v47, %s1554_s4 }
0x1310   :  { %v1202_v55 = vpop.permute.xlu2 %1201 }
0x1336   :  { %v1207_v3 = vpop.permute.xlu0 %1206 }
0x1337   :  { %v1210_v4 = vsel %vm214_vm13, %v1202_v55, %v1207_v3  ;;  %vm1294_vm13 = vcmask 9216  }
0x1338   :  { %v1212_v6 = vunpack.c.l.bf16 %v1210_v4 }
0x133a   :  { %1408 = vmatmul.msk.f32.vlgmr.msra.gmra.mxu0 %vm120_vm0, %v1212_v6  ;;  %vm1266_vm0 = vcmask 818176  }
0x13b7   :  { %v1245_v10 = vpop.f32.mrf.mxu0 }
0x13b8   :  { %v1246_v5 = vadd.f32 %v1427_v29, %v1245_v10 }
0x13ba   :  { %v1248_v11 = vmax.f32 %v1246_v5, 0.0 }
0x13bc   :  { %1410 = vmatmul.msk.f32.vlgmr.msra.gmra.mxu1 %vm1266_vm0, %v1248_v11 }
0x1439   :  { %v1291_v0 = vpop.f32.mrf.mxu1 }
0x143a   :  { %v1292_v32 = vadd.f32 %v1428_v31, %v1291_v0 }
0x143c   :  { %1295 = vst.msk [vmem:[#allocation3] sm:$0x3] %vm1294_vm13, %v1292_v32 }
0x143d   :  { %1306 = dma.vmem_to_hbm [thread:$0]  %s1302_s2, 32, %s1304_s7, [#allocation4]  }
0x143e   :  { %1551 = dma.done.wait [#allocation4], 32  }
0x143f   :  { %1552 = vsyncadd [#allocation4], 4294967264 }
0x1440   :  { %1311 = vsyncpa [#allocation4], 1 }

</bundles_post_ra>
